<compile_context>
chip_gen: v6e
topology: v6e:2x2x1
jax: 0.10.0
libtpu: 0.0.40
codegen_flags: <defaults>
</compile_context>

<pallas_src>
import functools
import math

import jax
import jax.numpy as jnp
from jax.experimental import pallas as pl
from jax.experimental.pallas import tpu as pltpu


# ----------------------------------------------------------------------------
# Fused Pallas kernel: all layers + full recurrence for one batch chunk.
# Rows of the (T*BB, ...) arrays are ordered row = t*BB + b_local.
# ----------------------------------------------------------------------------
def _qlstm_kernel(*refs, num_layers, T, BB, H, mm_dtype):
    i = 0
    x_ref = refs[i]; i += 1            # (T*BB, In)
    wih0_ref = refs[i]; i += 1         # (In, 4H)
    wihr_ref = None
    if num_layers > 1:
        wihr_ref = refs[i]; i += 1     # (L-1, H, 4H)
    (whh_ref,                          # (L, H, 4H)
     sc_ih_ref, sc_hh_ref, shift_ref,  # (L*T, 4H) each (shift = sh_ih+sh_hh+bias)
     sc_c_ref, sh_c_ref,               # (L*T, H)
     mask_ref,                         # (T*BB, 1)
     h0_ref, c0_ref,                   # (L, BB, H)
     out_ref,                          # (T*BB, H)   also the inter-layer buffer
     hn_ref, cn_ref,                   # (L, BB, H)
     wi_buf) = refs[i:]                # scratch (T*BB, 4H)

    H3 = 3 * H
    unroll = T <= 32

    for layer in range(num_layers):            # static loop; per-layer weights differ
        # ---- Hoisted non-recurrent projection: one matmul for all timesteps. ----
        if layer == 0:
            inp = x_ref[...]
            w_ih = wih0_ref[...]
        else:
            inp = out_ref[...]                 # previous layer's output (T*BB, H)
            w_ih = wihr_ref[layer - 1]
        wi_buf[...] = jnp.dot(inp.astype(mm_dtype), w_ih,
                              preferred_element_type=jnp.float32)

        w_hh = whh_ref[layer]                  # (H, 4H), resident
        row0 = layer * T                       # static per-layer BN-table offset

        h = h0_ref[layer]                      # (BB, H)
        c = c0_ref[layer]

        def step(t, hc, row0=row0, w_hh=w_hh):
            h, c = hc
            start = pl.multiple_of(t * BB, BB)
            row = pl.ds(row0 + t, 1)
            wi_t = wi_buf[pl.ds(start, BB), :]                      # (BB, 4H)
            wh = jnp.dot(h.astype(mm_dtype), w_hh,
                         preferred_element_type=jnp.float32)        # (BB, 4H)
            # Folded per-timestep BN affines, broadcast over the batch rows.
            pre = wi_t * sc_ih_ref[row] + wh * sc_hh_ref[row] + shift_ref[row]
            sig = jax.nn.sigmoid(pre[:, :H3])                       # one EUP push
            f = sig[:, 0:H]
            i_g = sig[:, H:2 * H]
            o = sig[:, 2 * H:H3]
            g = jnp.tanh(pre[:, H3:])
            c_new = f * c + i_g * g
            h_new = o * jnp.tanh(c_new * sc_c_ref[row] + sh_c_ref[row])
            m = mask_ref[pl.ds(start, BB), :]                       # (BB, 1)
            h = h + m * (h_new - h)
            c = c + m * (c_new - c)
            out_ref[pl.ds(start, BB), :] = h
            return (h, c)

        h, c = jax.lax.fori_loop(0, T, step, (h, c), unroll=unroll)
        hn_ref[layer] = h
        cn_ref[layer] = c


# ----------------------------------------------------------------------------
# Host-side folding of the per-timestep eval-mode batch norms into affines.
# ----------------------------------------------------------------------------
def _bn_affine_per_time(gamma, beta, running_mean, running_var, eps, T, max_length):
    idx = jnp.minimum(jnp.arange(T), max_length - 1)
    rm = running_mean[idx]                            # (T, F)
    rv = running_var[idx]                             # (T, F)
    scale = gamma[None, :] / jnp.sqrt(rv + eps)       # (T, F)
    shift = beta[None, :] - rm * scale                # (T, F)
    return scale, shift


# ----------------------------------------------------------------------------
# Parameter construction (mirrors the PyTorch __init__ / reset_parameters).
# ----------------------------------------------------------------------------
def _orthogonal(key, rows, cols):
    a = jax.random.normal(key, (cols, rows), dtype=jnp.float32)
    q, _ = jnp.linalg.qr(a)        # (cols, rows), orthonormal columns
    return q.T                     # (rows, cols), orthonormal rows


def make_qlstm_params(key, input_size, hidden_size, num_layers, max_length):
    params = []
    eps = 1e-5
    for layer in range(num_layers):
        key, k1 = jax.random.split(key)
        in_l = input_size if layer == 0 else hidden_size
        w_ih = _orthogonal(k1, in_l, 4 * hidden_size)                       # (In, 4H)
        w_hh = jnp.tile(jnp.eye(hidden_size, dtype=jnp.float32), (1, 4))    # (H, 4H)
        bias = jnp.zeros((1, 4 * hidden_size), dtype=jnp.float32)

        g4 = jnp.full((4 * hidden_size,), 0.1, dtype=jnp.float32)
        b4 = jnp.zeros((4 * hidden_size,), dtype=jnp.float32)
        gH = jnp.full((hidden_size,), 0.1, dtype=jnp.float32)
        bH = jnp.zeros((hidden_size,), dtype=jnp.float32)
        rm4 = jnp.zeros((max_length, 4 * hidden_size), dtype=jnp.float32)
        rv4 = jnp.ones((max_length, 4 * hidden_size), dtype=jnp.float32)
        rmH = jnp.zeros((max_length, hidden_size), dtype=jnp.float32)
        rvH = jnp.ones((max_length, hidden_size), dtype=jnp.float32)

        params.append(dict(
            w_ih=w_ih, w_hh=w_hh, bias=bias,
            bn_ih=(g4, b4, rm4, rv4, eps),
            bn_hh=(g4, b4, rm4, rv4, eps),
            bn_c=(gH, bH, rmH, rvH, eps),
        ))
    return params


def xavier_uniform_like_torch(key, shape):
    receptive = 1
    for d in shape[2:]:
        receptive *= d
    fan_in = shape[1] * receptive
    fan_out = shape[0] * receptive
    std = math.sqrt(2.0 / float(fan_in + fan_out))
    a = math.sqrt(3.0) * std
    return jax.random.uniform(key, shape, dtype=jnp.float32, minval=-a, maxval=a)


# ----------------------------------------------------------------------------
# QLSTM forward wrapper: one fused pallas_call; grid over batch chunks.
# ----------------------------------------------------------------------------
def qlstm_forward(x, params, hidden_size, time_window, max_length,
                  length=None, hc=None, key=None,
                  matmul_dtype=jnp.float32, batch_chunks=None):
    T, B, In = x.shape
    H = hidden_size
    L = len(params)

    if length is None:
        length = jnp.full((B,), time_window, dtype=jnp.int32)
    if hc is None:
        kh, kc = jax.random.split(key)
        h0_all = xavier_uniform_like_torch(kh, (L, B, H))
        c0_all = xavier_uniform_like_torch(kc, (L, B, H))
    else:
        h0_all, c0_all = hc

    # Batch-chunk grid: 2 parallel cells when the batch is big enough (feeds the
    # second TensorCore on v7x), otherwise a single cell.
    if batch_chunks is None:
        batch_chunks = 2 if (B % 2 == 0 and B >= 16) else 1
    nc = batch_chunks
    assert B % nc == 0, "batch must divide evenly into chunks"
    BB = B // nc

    # Chunked, time-major-within-chunk layouts (row = t*BB + b_local).
    x_c = x.reshape(T, nc, BB, In).transpose(1, 0, 2, 3).reshape(nc, T * BB, In)
    mask_tb = (jnp.arange(T)[:, None] < length[None, :]).astype(jnp.float32)   # (T, B)
    mask_c = mask_tb.reshape(T, nc, BB).transpose(1, 0, 2).reshape(nc, T * BB, 1)
    h0_c = h0_all.reshape(L, nc, BB, H).transpose(1, 0, 2, 3)                   # (nc, L, BB, H)
    c0_c = c0_all.reshape(L, nc, BB, H).transpose(1, 0, 2, 3)

    # Fold BN running stats into per-(layer, time) affines; NOT expanded over batch.
    sc_ih_l, sc_hh_l, shift_l, sc_c_l, sh_c_l = [], [], [], [], []
    for p in params:
        sc_ih, sh_ih = _bn_affine_per_time(*p["bn_ih"], T=T, max_length=max_length)
        sc_hh, sh_hh = _bn_affine_per_time(*p["bn_hh"], T=T, max_length=max_length)
        sc_c, sh_c = _bn_affine_per_time(*p["bn_c"], T=T, max_length=max_length)
        sc_ih_l.append(sc_ih)
        sc_hh_l.append(sc_hh)
        shift_l.append(sh_ih + sh_hh + p["bias"])      # all additive terms folded
        sc_c_l.append(sc_c)
        sh_c_l.append(sh_c)
    sc_ih_t = jnp.concatenate(sc_ih_l, axis=0)          # (L*T, 4H)
    sc_hh_t = jnp.concatenate(sc_hh_l, axis=0)          # (L*T, 4H)
    shift_t = jnp.concatenate(shift_l, axis=0)          # (L*T, 4H)
    sc_c_t = jnp.concatenate(sc_c_l, axis=0)            # (L*T, H)
    sh_c_t = jnp.concatenate(sh_c_l, axis=0)            # (L*T, H)

    wih0 = params[0]["w_ih"].astype(matmul_dtype)                         # (In, 4H)
    whh = jnp.stack([p["w_hh"] for p in params], 0).astype(matmul_dtype)  # (L, H, 4H)

    operands = [x_c, wih0]
    in_specs = [
        pl.BlockSpec((None, T * BB, In), lambda b: (b, 0, 0)),
        pl.BlockSpec((In, 4 * H), lambda b: (0, 0)),
    ]
    if L > 1:
        wihr = jnp.stack([params[l]["w_ih"] for l in range(1, L)],
                         axis=0).astype(matmul_dtype)                     # (L-1, H, 4H)
        operands.append(wihr)
        in_specs.append(pl.BlockSpec((L - 1, H, 4 * H), lambda b: (0, 0, 0)))
    operands += [whh, sc_ih_t, sc_hh_t, shift_t, sc_c_t, sh_c_t, mask_c, h0_c, c0_c]
    in_specs += [
        pl.BlockSpec((L, H, 4 * H), lambda b: (0, 0, 0)),
        pl.BlockSpec((L * T, 4 * H), lambda b: (0, 0)),
        pl.BlockSpec((L * T, 4 * H), lambda b: (0, 0)),
        pl.BlockSpec((L * T, 4 * H), lambda b: (0, 0)),
        pl.BlockSpec((L * T, H), lambda b: (0, 0)),
        pl.BlockSpec((L * T, H), lambda b: (0, 0)),
        pl.BlockSpec((None, T * BB, 1), lambda b: (b, 0, 0)),
        pl.BlockSpec((None, L, BB, H), lambda b: (b, 0, 0, 0)),
        pl.BlockSpec((None, L, BB, H), lambda b: (b, 0, 0, 0)),
    ]

    out_shape = (
        jax.ShapeDtypeStruct((nc, T * BB, H), jnp.float32),
        jax.ShapeDtypeStruct((nc, L, BB, H), jnp.float32),
        jax.ShapeDtypeStruct((nc, L, BB, H), jnp.float32),
    )
    out_specs = (
        pl.BlockSpec((None, T * BB, H), lambda b: (b, 0, 0)),
        pl.BlockSpec((None, L, BB, H), lambda b: (b, 0, 0, 0)),
        pl.BlockSpec((None, L, BB, H), lambda b: (b, 0, 0, 0)),
    )

    # Explicit VMEM budget with headroom (v5e 16 MiB scoped default; v7x 64 MiB phys).
    def _bytes(shape, itemsize=4):
        n = 1
        for d in shape:
            n *= int(d)
        return n * itemsize

    w_isz = jnp.dtype(matmul_dtype).itemsize
    est = (_bytes((T * BB, In)) + _bytes((In, 4 * H), w_isz)
           + (_bytes((L - 1, H, 4 * H), w_isz) if L > 1 else 0)
           + _bytes((L, H, 4 * H), w_isz)
           + 3 * _bytes((L * T, 4 * H)) + 2 * _bytes((L * T, H))
           + _bytes((T * BB, 1)) + 4 * _bytes((L, BB, H))
           + _bytes((T * BB, H)) + _bytes((T * BB, 4 * H)))
    vmem_limit = int(min(max(2 * est + (4 << 20), 8 << 20), 112 << 20))

    kernel = functools.partial(_qlstm_kernel, num_layers=L, T=T, BB=BB, H=H,
                               mm_dtype=matmul_dtype)

    out_c, hn_c, cn_c = pl.pallas_call(
        kernel,
        grid=(nc,),
        in_specs=in_specs,
        out_specs=out_specs,
        out_shape=out_shape,
        scratch_shapes=[pltpu.VMEM((T * BB, 4 * H), jnp.float32)],
        compiler_params=pltpu.CompilerParams(
            dimension_semantics=("parallel",),
            vmem_limit_bytes=vmem_limit),
    )(*operands)

    output = out_c.reshape(nc, T, BB, H).transpose(1, 0, 2, 3).reshape(T, B, H)
    h_n = hn_c.transpose(1, 0, 2, 3).reshape(L, B, H)
    c_n = cn_c.transpose(1, 0, 2, 3).reshape(L, B, H)
    return output, (h_n, c_n)


# ----------------------------------------------------------------------------
# Pure-JAX reference (same eval-mode semantics) for a correctness check.
# ----------------------------------------------------------------------------
def qlstm_reference(x, params, hidden_size, length, h0_all, c0_all, max_length):
    T, B, _ = x.shape

    def bn(v, g, be, rm, rv, eps, t):
        tt = min(t, max_length - 1)
        return (v - rm[tt]) / jnp.sqrt(rv[tt] + eps) * g + be

    layer_in = x
    h_n, c_n = [], []
    for l, p in enumerate(params):
        h = h0_all[l]
        c = c0_all[l]
        outs = []
        for t in range(T):
            wi = layer_in[t] @ p["w_ih"]
            wh = h @ p["w_hh"]
            pre = bn(wh, *p["bn_hh"], t) + bn(wi, *p["bn_ih"], t) + p["bias"]
            f, i, o, g = jnp.split(pre, 4, axis=1)
            c_new = jax.nn.sigmoid(f) * c + jax.nn.sigmoid(i) * jnp.tanh(g)
            h_new = jax.nn.sigmoid(o) * jnp.tanh(bn(c_new, *p["bn_c"], t))
            m = (t < length).astype(jnp.float32)[:, None]
            h = m * h_new + (1.0 - m) * h
            c = m * c_new + (1.0 - m) * c
            outs.append(h)
        layer_in = jnp.stack(outs, 0)
        h_n.append(h)
        c_n.append(c)
    return layer_in, (jnp.stack(h_n, 0), jnp.stack(c_n, 0))


if __name__ == "__main__":
    T = 8            # sequence length
    B = 2            # batch
    INPUT_SIZE = 8
    HIDDEN = 32
    NUM_LAYERS = 2
    TIME_WINDOW = 32
    MAX_LENGTH = 32  # SeparatedBatchNorm1d max_length

    root = jax.random.PRNGKey(0)
    k_x, k_p, k_h, k_c = jax.random.split(root, 4)

    x = jax.random.normal(k_x, (T, B, INPUT_SIZE), dtype=jnp.float32)
    params = make_qlstm_params(k_p, INPUT_SIZE, HIDDEN, NUM_LAYERS, MAX_LENGTH)
    length = jnp.array([T, 5], dtype=jnp.int32)            # exercise the length mask
    h0_all = xavier_uniform_like_torch(k_h, (NUM_LAYERS, B, HIDDEN))
    c0_all = xavier_uniform_like_torch(k_c, (NUM_LAYERS, B, HIDDEN))

    output, (h_n, c_n) = qlstm_forward(
        x, params, hidden_size=HIDDEN, time_window=TIME_WINDOW,
        max_length=MAX_LENGTH, length=length, hc=(h0_all, c0_all))
    jax.block_until_ready((output, h_n, c_n))

    assert output.shape == (T, B, HIDDEN)
    assert h_n.shape == (NUM_LAYERS, B, HIDDEN)
    assert c_n.shape == (NUM_LAYERS, B, HIDDEN)
    assert bool(jnp.all(jnp.isfinite(output)))
    assert bool(jnp.all(jnp.isfinite(h_n)))
    assert bool(jnp.all(jnp.isfinite(c_n)))

    # Numerical check against the pure-JAX reference.
    ref_out, (ref_hn, ref_cn) = qlstm_reference(
        x, params, HIDDEN, length, h0_all, c0_all, MAX_LENGTH)
    assert float(jnp.max(jnp.abs(output - ref_out))) < 1e-4
    assert float(jnp.max(jnp.abs(h_n - ref_hn))) < 1e-4
    assert float(jnp.max(jnp.abs(c_n - ref_cn))) < 1e-4

    print("KERNEL_OK")
</pallas_src>

<mosaic_0001>
module attributes {stable_mosaic.version = 11 : i64} {
  func.func @_qlstm_kernel(%arg0: i32, %arg1: memref<1x16x8xf32, #tpu.memory_space<vmem>>, %arg2: memref<8x128xf32, #tpu.memory_space<vmem>>, %arg3: memref<1x32x128xf32, #tpu.memory_space<vmem>>, %arg4: memref<2x32x128xf32, #tpu.memory_space<vmem>>, %arg5: memref<16x128xf32, #tpu.memory_space<vmem>>, %arg6: memref<16x128xf32, #tpu.memory_space<vmem>>, %arg7: memref<16x128xf32, #tpu.memory_space<vmem>>, %arg8: memref<16x32xf32, #tpu.memory_space<vmem>>, %arg9: memref<16x32xf32, #tpu.memory_space<vmem>>, %arg10: memref<1x16x1xf32, #tpu.memory_space<vmem>>, %arg11: memref<1x2x2x32xf32, #tpu.memory_space<vmem>>, %arg12: memref<1x2x2x32xf32, #tpu.memory_space<vmem>>, %arg13: memref<1x16x32xf32, #tpu.memory_space<vmem>>, %arg14: memref<1x2x2x32xf32, #tpu.memory_space<vmem>>, %arg15: memref<1x2x2x32xf32, #tpu.memory_space<vmem>>, %arg16: memref<16x128xf32, #tpu.memory_space<vmem>>) attributes {dimension_semantics = [#tpu.dimension_semantics<parallel>], iteration_bounds = array<i64: 1>, scalar_prefetch = 0 : i64, scratch_operands = 1 : i64, tpu.core_type = #tpu.core_type<tc>, window_params = [{transform_indices = @transform_0, window_bounds = array<i64: 1, 16, 8>}, {pipeline_mode = #tpu.pipeline_mode<synchronous>, transform_indices = @transform_1, window_bounds = array<i64: 8, 128>}, {pipeline_mode = #tpu.pipeline_mode<synchronous>, transform_indices = @transform_2, window_bounds = array<i64: 1, 32, 128>}, {pipeline_mode = #tpu.pipeline_mode<synchronous>, transform_indices = @transform_3, window_bounds = array<i64: 2, 32, 128>}, {pipeline_mode = #tpu.pipeline_mode<synchronous>, transform_indices = @transform_4, window_bounds = array<i64: 16, 128>}, {pipeline_mode = #tpu.pipeline_mode<synchronous>, transform_indices = @transform_5, window_bounds = array<i64: 16, 128>}, {pipeline_mode = #tpu.pipeline_mode<synchronous>, transform_indices = @transform_6, window_bounds = array<i64: 16, 128>}, {pipeline_mode = #tpu.pipeline_mode<synchronous>, transform_indices = @transform_7, window_bounds = array<i64: 16, 32>}, {pipeline_mode = #tpu.pipeline_mode<synchronous>, transform_indices = @transform_8, window_bounds = array<i64: 16, 32>}, {transform_indices = @transform_9, window_bounds = array<i64: 1, 16, 1>}, {transform_indices = @transform_10, window_bounds = array<i64: 1, 2, 2, 32>}, {transform_indices = @transform_11, window_bounds = array<i64: 1, 2, 2, 32>}, {transform_indices = @transform_12, window_bounds = array<i64: 1, 16, 32>}, {transform_indices = @transform_13, window_bounds = array<i64: 1, 2, 2, 32>}, {transform_indices = @transform_14, window_bounds = array<i64: 1, 2, 2, 32>}]} {
    %c0 = arith.constant 0 : index
    %c0_0 = arith.constant 0 : index
    %c0_1 = arith.constant 0 : index
    %0 = vector.load %arg1[%c0, %c0_0, %c0_1] : memref<1x16x8xf32, #tpu.memory_space<vmem>>, vector<1x16x8xf32>
    %1 = vector.shape_cast %0 : vector<1x16x8xf32> to vector<16x8xf32>
    %c0_2 = arith.constant 0 : index
    %c0_3 = arith.constant 0 : index
    %2 = vector.load %arg2[%c0_2, %c0_3] : memref<8x128xf32, #tpu.memory_space<vmem>>, vector<8x128xf32>
    %cst = arith.constant dense<0.000000e+00> : vector<16x128xf32>
    %3 = tpu.matmul %1, %2, %cst {dimension_numbers = #tpu.dot_dimension_numbers<[1], [0], [0], [1], [0, 0, 1, 1], [], []>} : vector<16x8xf32>, vector<8x128xf32>, vector<16x128xf32> -> vector<16x128xf32>
    %c0_4 = arith.constant 0 : index
    %c0_5 = arith.constant 0 : index
    %4 = vector.load %arg16[%c0_4, %c0_5] : memref<16x128xf32, #tpu.memory_space<vmem>>, vector<16x128xf32>
    tpu.vector_store %arg16[%c0_4, %c0_5], %3 {strides = array<i32>} : memref<16x128xf32, #tpu.memory_space<vmem>>, vector<16x128xf32>,
    %c0_6 = arith.constant 0 : index
    %c0_7 = arith.constant 0 : index
    %c0_8 = arith.constant 0 : index
    %5 = vector.load %arg4[%c0_6, %c0_7, %c0_8] : memref<2x32x128xf32, #tpu.memory_space<vmem>>, vector<1x32x128xf32>
    %6 = vector.shape_cast %5 : vector<1x32x128xf32> to vector<32x128xf32>
    %c0_9 = arith.constant 0 : index
    %c0_10 = arith.constant 0 : index
    %c0_11 = arith.constant 0 : index
    %c0_12 = arith.constant 0 : index
    %7 = vector.load %arg11[%c0_9, %c0_10, %c0_11, %c0_12] : memref<1x2x2x32xf32, #tpu.memory_space<vmem>>, vector<1x1x2x32xf32>
    %8 = vector.shape_cast %7 : vector<1x1x2x32xf32> to vector<2x32xf32>
    %c0_13 = arith.constant 0 : index
    %c0_14 = arith.constant 0 : index
    %c0_15 = arith.constant 0 : index
    %c0_16 = arith.constant 0 : index
    %9 = vector.load %arg12[%c0_13, %c0_14, %c0_15, %c0_16] : memref<1x2x2x32xf32, #tpu.memory_space<vmem>>, vector<1x1x2x32xf32>
    %10 = vector.shape_cast %9 : vector<1x1x2x32xf32> to vector<2x32xf32>
    %c0_i32 = arith.constant 0 : i32
    %c2_i32 = arith.constant 2 : i32
    %11 = arith.muli %c0_i32, %c2_i32 : i32
    %12 = tpu.assume_multiple %11, 2 : i32
    %c0_i32_17 = arith.constant 0 : i32
    %13 = arith.addi %c0_i32_17, %c0_i32 : i32
    %14 = arith.index_cast %12 : i32 to index
    %c0_18 = arith.constant 0 : index
    %15 = vector.load %arg16[%14, %c0_18] : memref<16x128xf32, #tpu.memory_space<vmem>>, vector<2x128xf32>
    %cst_19 = arith.constant dense<0.000000e+00> : vector<2x128xf32>
    %16 = tpu.matmul %8, %6, %cst_19 {dimension_numbers = #tpu.dot_dimension_numbers<[1], [0], [0], [1], [0, 0, 1, 1], [], []>} : vector<2x32xf32>, vector<32x128xf32>, vector<2x128xf32> -> vector<2x128xf32>
    %17 = arith.index_cast %13 : i32 to index
    %c0_20 = arith.constant 0 : index
    %18 = vector.load %arg5[%17, %c0_20] : memref<16x128xf32, #tpu.memory_space<vmem>>, vector<1x128xf32>
    %19 = vector.broadcast %18 : vector<1x128xf32> to vector<2x128xf32>
    %20 = arith.mulf %15, %19 : vector<2x128xf32>
    %21 = arith.index_cast %13 : i32 to index
    %c0_21 = arith.constant 0 : index
    %22 = vector.load %arg6[%21, %c0_21] : memref<16x128xf32, #tpu.memory_space<vmem>>, vector<1x128xf32>
    %23 = vector.broadcast %22 : vector<1x128xf32> to vector<2x128xf32>
    %24 = arith.mulf %16, %23 : vector<2x128xf32>
    %25 = arith.addf %20, %24 : vector<2x128xf32>
    %26 = arith.index_cast %13 : i32 to index
    %c0_22 = arith.constant 0 : index
    %27 = vector.load %arg7[%26, %c0_22] : memref<16x128xf32, #tpu.memory_space<vmem>>, vector<1x128xf32>
    %28 = vector.broadcast %27 : vector<1x128xf32> to vector<2x128xf32>
    %29 = arith.addf %25, %28 : vector<2x128xf32>
    %30 = vector.extract_strided_slice %29 {offsets = [0, 0], sizes = [2, 96], strides = [1, 1]} : vector<2x128xf32> to vector<2x96xf32>
    %31 = arith.negf %30 : vector<2x96xf32>
    %32 = math.exp %31 : vector<2x96xf32>
    %cst_23 = arith.constant 1.000000e+00 : f32
    %33 = vector.broadcast %cst_23 : f32 to vector<2x96xf32>
    %34 = arith.addf %33, %32 : vector<2x96xf32>
    %35 = arith.divf %33, %34 : vector<2x96xf32>
    %36 = vector.extract_strided_slice %35 {offsets = [0, 0], sizes = [2, 32], strides = [1, 1]} : vector<2x96xf32> to vector<2x32xf32>
    %37 = vector.extract_strided_slice %35 {offsets = [0, 32], sizes = [2, 32], strides = [1, 1]} : vector<2x96xf32> to vector<2x32xf32>
    %38 = vector.extract_strided_slice %35 {offsets = [0, 64], sizes = [2, 32], strides = [1, 1]} : vector<2x96xf32> to vector<2x32xf32>
    %39 = vector.extract_strided_slice %29 {offsets = [0, 96], sizes = [2, 32], strides = [1, 1]} : vector<2x128xf32> to vector<2x32xf32>
    %40 = math.tanh %39 : vector<2x32xf32>
    %41 = arith.mulf %36, %10 : vector<2x32xf32>
    %42 = arith.mulf %37, %40 : vector<2x32xf32>
    %43 = arith.addf %41, %42 : vector<2x32xf32>
    %44 = arith.index_cast %13 : i32 to index
    %c0_24 = arith.constant 0 : index
    %45 = vector.load %arg8[%44, %c0_24] : memref<16x32xf32, #tpu.memory_space<vmem>>, vector<1x32xf32>
    %46 = vector.broadcast %45 : vector<1x32xf32> to vector<2x32xf32>
    %47 = arith.mulf %43, %46 : vector<2x32xf32>
    %48 = arith.index_cast %13 : i32 to index
    %c0_25 = arith.constant 0 : index
    %49 = vector.load %arg9[%48, %c0_25] : memref<16x32xf32, #tpu.memory_space<vmem>>, vector<1x32xf32>
    %50 = vector.broadcast %49 : vector<1x32xf32> to vector<2x32xf32>
    %51 = arith.addf %47, %50 : vector<2x32xf32>
    %52 = math.tanh %51 : vector<2x32xf32>
    %53 = arith.mulf %38, %52 : vector<2x32xf32>
    %c0_26 = arith.constant 0 : index
    %54 = arith.index_cast %12 : i32 to index
    %c0_27 = arith.constant 0 : index
    %55 = vector.load %arg10[%c0_26, %54, %c0_27] : memref<1x16x1xf32, #tpu.memory_space<vmem>>, vector<1x2x1xf32>
    %56 = vector.shape_cast %55 : vector<1x2x1xf32> to vector<2x1xf32>
    %57 = arith.subf %53, %8 : vector<2x32xf32>
    %58 = vector.broadcast %56 : vector<2x1xf32> to vector<2x32xf32>
    %59 = arith.mulf %58, %57 : vector<2x32xf32>
    %60 = arith.addf %8, %59 : vector<2x32xf32>
    %61 = arith.subf %43, %10 : vector<2x32xf32>
    %62 = vector.broadcast %56 : vector<2x1xf32> to vector<2x32xf32>
    %63 = arith.mulf %62, %61 : vector<2x32xf32>
    %64 = arith.addf %10, %63 : vector<2x32xf32>
    %c0_28 = arith.constant 0 : index
    %65 = arith.index_cast %12 : i32 to index
    %c0_29 = arith.constant 0 : index
    %66 = vector.load %arg13[%c0_28, %65, %c0_29] : memref<1x16x32xf32, #tpu.memory_space<vmem>>, vector<1x2x32xf32>
    %67 = vector.shape_cast %66 : vector<1x2x32xf32> to vector<2x32xf32>
    %68 = vector.shape_cast %60 : vector<2x32xf32> to vector<1x2x32xf32>
    tpu.vector_store %arg13[%c0_28, %65, %c0_29], %68 {strides = array<i32>} : memref<1x16x32xf32, #tpu.memory_space<vmem>>, vector<1x2x32xf32>,
    %c1_i32 = arith.constant 1 : i32
    %c2_i32_30 = arith.constant 2 : i32
    %69 = arith.muli %c1_i32, %c2_i32_30 : i32
    %70 = tpu.assume_multiple %69, 2 : i32
    %c0_i32_31 = arith.constant 0 : i32
    %71 = arith.addi %c0_i32_31, %c1_i32 : i32
    %72 = arith.index_cast %70 : i32 to index
    %c0_32 = arith.constant 0 : index
    %73 = vector.load %arg16[%72, %c0_32] : memref<16x128xf32, #tpu.memory_space<vmem>>, vector<2x128xf32>
    %cst_33 = arith.constant dense<0.000000e+00> : vector<2x128xf32>
    %74 = tpu.matmul %60, %6, %cst_33 {dimension_numbers = #tpu.dot_dimension_numbers<[1], [0], [0], [1], [0, 0, 1, 1], [], []>} : vector<2x32xf32>, vector<32x128xf32>, vector<2x128xf32> -> vector<2x128xf32>
    %75 = arith.index_cast %71 : i32 to index
    %c0_34 = arith.constant 0 : index
    %76 = vector.load %arg5[%75, %c0_34] : memref<16x128xf32, #tpu.memory_space<vmem>>, vector<1x128xf32>
    %77 = vector.broadcast %76 : vector<1x128xf32> to vector<2x128xf32>
    %78 = arith.mulf %73, %77 : vector<2x128xf32>
    %79 = arith.index_cast %71 : i32 to index
    %c0_35 = arith.constant 0 : index
    %80 = vector.load %arg6[%79, %c0_35] : memref<16x128xf32, #tpu.memory_space<vmem>>, vector<1x128xf32>
    %81 = vector.broadcast %80 : vector<1x128xf32> to vector<2x128xf32>
    %82 = arith.mulf %74, %81 : vector<2x128xf32>
    %83 = arith.addf %78, %82 : vector<2x128xf32>
    %84 = arith.index_cast %71 : i32 to index
    %c0_36 = arith.constant 0 : index
    %85 = vector.load %arg7[%84, %c0_36] : memref<16x128xf32, #tpu.memory_space<vmem>>, vector<1x128xf32>
    %86 = vector.broadcast %85 : vector<1x128xf32> to vector<2x128xf32>
    %87 = arith.addf %83, %86 : vector<2x128xf32>
    %88 = vector.extract_strided_slice %87 {offsets = [0, 0], sizes = [2, 96], strides = [1, 1]} : vector<2x128xf32> to vector<2x96xf32>
    %89 = arith.negf %88 : vector<2x96xf32>
    %90 = math.exp %89 : vector<2x96xf32>
    %cst_37 = arith.constant 1.000000e+00 : f32
    %91 = vector.broadcast %cst_37 : f32 to vector<2x96xf32>
    %92 = arith.addf %91, %90 : vector<2x96xf32>
    %93 = arith.divf %91, %92 : vector<2x96xf32>
    %94 = vector.extract_strided_slice %93 {offsets = [0, 0], sizes = [2, 32], strides = [1, 1]} : vector<2x96xf32> to vector<2x32xf32>
    %95 = vector.extract_strided_slice %93 {offsets = [0, 32], sizes = [2, 32], strides = [1, 1]} : vector<2x96xf32> to vector<2x32xf32>
    %96 = vector.extract_strided_slice %93 {offsets = [0, 64], sizes = [2, 32], strides = [1, 1]} : vector<2x96xf32> to vector<2x32xf32>
    %97 = vector.extract_strided_slice %87 {offsets = [0, 96], sizes = [2, 32], strides = [1, 1]} : vector<2x128xf32> to vector<2x32xf32>
    %98 = math.tanh %97 : vector<2x32xf32>
    %99 = arith.mulf %94, %64 : vector<2x32xf32>
    %100 = arith.mulf %95, %98 : vector<2x32xf32>
    %101 = arith.addf %99, %100 : vector<2x32xf32>
    %102 = arith.index_cast %71 : i32 to index
    %c0_38 = arith.constant 0 : index
    %103 = vector.load %arg8[%102, %c0_38] : memref<16x32xf32, #tpu.memory_space<vmem>>, vector<1x32xf32>
    %104 = vector.broadcast %103 : vector<1x32xf32> to vector<2x32xf32>
    %105 = arith.mulf %101, %104 : vector<2x32xf32>
    %106 = arith.index_cast %71 : i32 to index
    %c0_39 = arith.constant 0 : index
    %107 = vector.load %arg9[%106, %c0_39] : memref<16x32xf32, #tpu.memory_space<vmem>>, vector<1x32xf32>
    %108 = vector.broadcast %107 : vector<1x32xf32> to vector<2x32xf32>
    %109 = arith.addf %105, %108 : vector<2x32xf32>
    %110 = math.tanh %109 : vector<2x32xf32>
    %111 = arith.mulf %96, %110 : vector<2x32xf32>
    %c0_40 = arith.constant 0 : index
    %112 = arith.index_cast %70 : i32 to index
    %c0_41 = arith.constant 0 : index
    %113 = vector.load %arg10[%c0_40, %112, %c0_41] : memref<1x16x1xf32, #tpu.memory_space<vmem>>, vector<1x2x1xf32>
    %114 = vector.shape_cast %113 : vector<1x2x1xf32> to vector<2x1xf32>
    %115 = arith.subf %111, %60 : vector<2x32xf32>
    %116 = vector.broadcast %114 : vector<2x1xf32> to vector<2x32xf32>
    %117 = arith.mulf %116, %115 : vector<2x32xf32>
    %118 = arith.addf %60, %117 : vector<2x32xf32>
    %119 = arith.subf %101, %64 : vector<2x32xf32>
    %120 = vector.broadcast %114 : vector<2x1xf32> to vector<2x32xf32>
    %121 = arith.mulf %120, %119 : vector<2x32xf32>
    %122 = arith.addf %64, %121 : vector<2x32xf32>
    %c0_42 = arith.constant 0 : index
    %123 = arith.index_cast %70 : i32 to index
    %c0_43 = arith.constant 0 : index
    %124 = vector.load %arg13[%c0_42, %123, %c0_43] : memref<1x16x32xf32, #tpu.memory_space<vmem>>, vector<1x2x32xf32>
    %125 = vector.shape_cast %124 : vector<1x2x32xf32> to vector<2x32xf32>
    %126 = vector.shape_cast %118 : vector<2x32xf32> to vector<1x2x32xf32>
    tpu.vector_store %arg13[%c0_42, %123, %c0_43], %126 {strides = array<i32>} : memref<1x16x32xf32, #tpu.memory_space<vmem>>, vector<1x2x32xf32>,
    %c2_i32_44 = arith.constant 2 : i32
    %c2_i32_45 = arith.constant 2 : i32
    %127 = arith.muli %c2_i32_44, %c2_i32_45 : i32
    %128 = tpu.assume_multiple %127, 2 : i32
    %c0_i32_46 = arith.constant 0 : i32
    %129 = arith.addi %c0_i32_46, %c2_i32_44 : i32
    %130 = arith.index_cast %128 : i32 to index
    %c0_47 = arith.constant 0 : index
    %131 = vector.load %arg16[%130, %c0_47] : memref<16x128xf32, #tpu.memory_space<vmem>>, vector<2x128xf32>
    %cst_48 = arith.constant dense<0.000000e+00> : vector<2x128xf32>
    %132 = tpu.matmul %118, %6, %cst_48 {dimension_numbers = #tpu.dot_dimension_numbers<[1], [0], [0], [1], [0, 0, 1, 1], [], []>} : vector<2x32xf32>, vector<32x128xf32>, vector<2x128xf32> -> vector<2x128xf32>
    %133 = arith.index_cast %129 : i32 to index
    %c0_49 = arith.constant 0 : index
    %134 = vector.load %arg5[%133, %c0_49] : memref<16x128xf32, #tpu.memory_space<vmem>>, vector<1x128xf32>
    %135 = vector.broadcast %134 : vector<1x128xf32> to vector<2x128xf32>
    %136 = arith.mulf %131, %135 : vector<2x128xf32>
    %137 = arith.index_cast %129 : i32 to index
    %c0_50 = arith.constant 0 : index
    %138 = vector.load %arg6[%137, %c0_50] : memref<16x128xf32, #tpu.memory_space<vmem>>, vector<1x128xf32>
    %139 = vector.broadcast %138 : vector<1x128xf32> to vector<2x128xf32>
    %140 = arith.mulf %132, %139 : vector<2x128xf32>
    %141 = arith.addf %136, %140 : vector<2x128xf32>
    %142 = arith.index_cast %129 : i32 to index
    %c0_51 = arith.constant 0 : index
    %143 = vector.load %arg7[%142, %c0_51] : memref<16x128xf32, #tpu.memory_space<vmem>>, vector<1x128xf32>
    %144 = vector.broadcast %143 : vector<1x128xf32> to vector<2x128xf32>
    %145 = arith.addf %141, %144 : vector<2x128xf32>
    %146 = vector.extract_strided_slice %145 {offsets = [0, 0], sizes = [2, 96], strides = [1, 1]} : vector<2x128xf32> to vector<2x96xf32>
    %147 = arith.negf %146 : vector<2x96xf32>
    %148 = math.exp %147 : vector<2x96xf32>
    %cst_52 = arith.constant 1.000000e+00 : f32
    %149 = vector.broadcast %cst_52 : f32 to vector<2x96xf32>
    %150 = arith.addf %149, %148 : vector<2x96xf32>
    %151 = arith.divf %149, %150 : vector<2x96xf32>
    %152 = vector.extract_strided_slice %151 {offsets = [0, 0], sizes = [2, 32], strides = [1, 1]} : vector<2x96xf32> to vector<2x32xf32>
    %153 = vector.extract_strided_slice %151 {offsets = [0, 32], sizes = [2, 32], strides = [1, 1]} : vector<2x96xf32> to vector<2x32xf32>
    %154 = vector.extract_strided_slice %151 {offsets = [0, 64], sizes = [2, 32], strides = [1, 1]} : vector<2x96xf32> to vector<2x32xf32>
    %155 = vector.extract_strided_slice %145 {offsets = [0, 96], sizes = [2, 32], strides = [1, 1]} : vector<2x128xf32> to vector<2x32xf32>
    %156 = math.tanh %155 : vector<2x32xf32>
    %157 = arith.mulf %152, %122 : vector<2x32xf32>
    %158 = arith.mulf %153, %156 : vector<2x32xf32>
    %159 = arith.addf %157, %158 : vector<2x32xf32>
    %160 = arith.index_cast %129 : i32 to index
    %c0_53 = arith.constant 0 : index
    %161 = vector.load %arg8[%160, %c0_53] : memref<16x32xf32, #tpu.memory_space<vmem>>, vector<1x32xf32>
    %162 = vector.broadcast %161 : vector<1x32xf32> to vector<2x32xf32>
    %163 = arith.mulf %159, %162 : vector<2x32xf32>
    %164 = arith.index_cast %129 : i32 to index
    %c0_54 = arith.constant 0 : index
    %165 = vector.load %arg9[%164, %c0_54] : memref<16x32xf32, #tpu.memory_space<vmem>>, vector<1x32xf32>
    %166 = vector.broadcast %165 : vector<1x32xf32> to vector<2x32xf32>
    %167 = arith.addf %163, %166 : vector<2x32xf32>
    %168 = math.tanh %167 : vector<2x32xf32>
    %169 = arith.mulf %154, %168 : vector<2x32xf32>
    %c0_55 = arith.constant 0 : index
    %170 = arith.index_cast %128 : i32 to index
    %c0_56 = arith.constant 0 : index
    %171 = vector.load %arg10[%c0_55, %170, %c0_56] : memref<1x16x1xf32, #tpu.memory_space<vmem>>, vector<1x2x1xf32>
    %172 = vector.shape_cast %171 : vector<1x2x1xf32> to vector<2x1xf32>
    %173 = arith.subf %169, %118 : vector<2x32xf32>
    %174 = vector.broadcast %172 : vector<2x1xf32> to vector<2x32xf32>
    %175 = arith.mulf %174, %173 : vector<2x32xf32>
    %176 = arith.addf %118, %175 : vector<2x32xf32>
    %177 = arith.subf %159, %122 : vector<2x32xf32>
    %178 = vector.broadcast %172 : vector<2x1xf32> to vector<2x32xf32>
    %179 = arith.mulf %178, %177 : vector<2x32xf32>
    %180 = arith.addf %122, %179 : vector<2x32xf32>
    %c0_57 = arith.constant 0 : index
    %181 = arith.index_cast %128 : i32 to index
    %c0_58 = arith.constant 0 : index
    %182 = vector.load %arg13[%c0_57, %181, %c0_58] : memref<1x16x32xf32, #tpu.memory_space<vmem>>, vector<1x2x32xf32>
    %183 = vector.shape_cast %182 : vector<1x2x32xf32> to vector<2x32xf32>
    %184 = vector.shape_cast %176 : vector<2x32xf32> to vector<1x2x32xf32>
    tpu.vector_store %arg13[%c0_57, %181, %c0_58], %184 {strides = array<i32>} : memref<1x16x32xf32, #tpu.memory_space<vmem>>, vector<1x2x32xf32>,
    %c3_i32 = arith.constant 3 : i32
    %c2_i32_59 = arith.constant 2 : i32
    %185 = arith.muli %c3_i32, %c2_i32_59 : i32
    %186 = tpu.assume_multiple %185, 2 : i32
    %c0_i32_60 = arith.constant 0 : i32
    %187 = arith.addi %c0_i32_60, %c3_i32 : i32
    %188 = arith.index_cast %186 : i32 to index
    %c0_61 = arith.constant 0 : index
    %189 = vector.load %arg16[%188, %c0_61] : memref<16x128xf32, #tpu.memory_space<vmem>>, vector<2x128xf32>
    %cst_62 = arith.constant dense<0.000000e+00> : vector<2x128xf32>
    %190 = tpu.matmul %176, %6, %cst_62 {dimension_numbers = #tpu.dot_dimension_numbers<[1], [0], [0], [1], [0, 0, 1, 1], [], []>} : vector<2x32xf32>, vector<32x128xf32>, vector<2x128xf32> -> vector<2x128xf32>
    %191 = arith.index_cast %187 : i32 to index
    %c0_63 = arith.constant 0 : index
    %192 = vector.load %arg5[%191, %c0_63] : memref<16x128xf32, #tpu.memory_space<vmem>>, vector<1x128xf32>
    %193 = vector.broadcast %192 : vector<1x128xf32> to vector<2x128xf32>
    %194 = arith.mulf %189, %193 : vector<2x128xf32>
    %195 = arith.index_cast %187 : i32 to index
    %c0_64 = arith.constant 0 : index
    %196 = vector.load %arg6[%195, %c0_64] : memref<16x128xf32, #tpu.memory_space<vmem>>, vector<1x128xf32>
    %197 = vector.broadcast %196 : vector<1x128xf32> to vector<2x128xf32>
    %198 = arith.mulf %190, %197 : vector<2x128xf32>
    %199 = arith.addf %194, %198 : vector<2x128xf32>
    %200 = arith.index_cast %187 : i32 to index
    %c0_65 = arith.constant 0 : index
    %201 = vector.load %arg7[%200, %c0_65] : memref<16x128xf32, #tpu.memory_space<vmem>>, vector<1x128xf32>
    %202 = vector.broadcast %201 : vector<1x128xf32> to vector<2x128xf32>
    %203 = arith.addf %199, %202 : vector<2x128xf32>
    %204 = vector.extract_strided_slice %203 {offsets = [0, 0], sizes = [2, 96], strides = [1, 1]} : vector<2x128xf32> to vector<2x96xf32>
    %205 = arith.negf %204 : vector<2x96xf32>
    %206 = math.exp %205 : vector<2x96xf32>
    %cst_66 = arith.constant 1.000000e+00 : f32
    %207 = vector.broadcast %cst_66 : f32 to vector<2x96xf32>
    %208 = arith.addf %207, %206 : vector<2x96xf32>
    %209 = arith.divf %207, %208 : vector<2x96xf32>
    %210 = vector.extract_strided_slice %209 {offsets = [0, 0], sizes = [2, 32], strides = [1, 1]} : vector<2x96xf32> to vector<2x32xf32>
    %211 = vector.extract_strided_slice %209 {offsets = [0, 32], sizes = [2, 32], strides = [1, 1]} : vector<2x96xf32> to vector<2x32xf32>
    %212 = vector.extract_strided_slice %209 {offsets = [0, 64], sizes = [2, 32], strides = [1, 1]} : vector<2x96xf32> to vector<2x32xf32>
    %213 = vector.extract_strided_slice %203 {offsets = [0, 96], sizes = [2, 32], strides = [1, 1]} : vector<2x128xf32> to vector<2x32xf32>
    %214 = math.tanh %213 : vector<2x32xf32>
    %215 = arith.mulf %210, %180 : vector<2x32xf32>
    %216 = arith.mulf %211, %214 : vector<2x32xf32>
    %217 = arith.addf %215, %216 : vector<2x32xf32>
    %218 = arith.index_cast %187 : i32 to index
    %c0_67 = arith.constant 0 : index
    %219 = vector.load %arg8[%218, %c0_67] : memref<16x32xf32, #tpu.memory_space<vmem>>, vector<1x32xf32>
    %220 = vector.broadcast %219 : vector<1x32xf32> to vector<2x32xf32>
    %221 = arith.mulf %217, %220 : vector<2x32xf32>
    %222 = arith.index_cast %187 : i32 to index
    %c0_68 = arith.constant 0 : index
    %223 = vector.load %arg9[%222, %c0_68] : memref<16x32xf32, #tpu.memory_space<vmem>>, vector<1x32xf32>
    %224 = vector.broadcast %223 : vector<1x32xf32> to vector<2x32xf32>
    %225 = arith.addf %221, %224 : vector<2x32xf32>
    %226 = math.tanh %225 : vector<2x32xf32>
    %227 = arith.mulf %212, %226 : vector<2x32xf32>
    %c0_69 = arith.constant 0 : index
    %228 = arith.index_cast %186 : i32 to index
    %c0_70 = arith.constant 0 : index
    %229 = vector.load %arg10[%c0_69, %228, %c0_70] : memref<1x16x1xf32, #tpu.memory_space<vmem>>, vector<1x2x1xf32>
    %230 = vector.shape_cast %229 : vector<1x2x1xf32> to vector<2x1xf32>
    %231 = arith.subf %227, %176 : vector<2x32xf32>
    %232 = vector.broadcast %230 : vector<2x1xf32> to vector<2x32xf32>
    %233 = arith.mulf %232, %231 : vector<2x32xf32>
    %234 = arith.addf %176, %233 : vector<2x32xf32>
    %235 = arith.subf %217, %180 : vector<2x32xf32>
    %236 = vector.broadcast %230 : vector<2x1xf32> to vector<2x32xf32>
    %237 = arith.mulf %236, %235 : vector<2x32xf32>
    %238 = arith.addf %180, %237 : vector<2x32xf32>
    %c0_71 = arith.constant 0 : index
    %239 = arith.index_cast %186 : i32 to index
    %c0_72 = arith.constant 0 : index
    %240 = vector.load %arg13[%c0_71, %239, %c0_72] : memref<1x16x32xf32, #tpu.memory_space<vmem>>, vector<1x2x32xf32>
    %241 = vector.shape_cast %240 : vector<1x2x32xf32> to vector<2x32xf32>
    %242 = vector.shape_cast %234 : vector<2x32xf32> to vector<1x2x32xf32>
    tpu.vector_store %arg13[%c0_71, %239, %c0_72], %242 {strides = array<i32>} : memref<1x16x32xf32, #tpu.memory_space<vmem>>, vector<1x2x32xf32>,
    %c4_i32 = arith.constant 4 : i32
    %c2_i32_73 = arith.constant 2 : i32
    %243 = arith.muli %c4_i32, %c2_i32_73 : i32
    %244 = tpu.assume_multiple %243, 2 : i32
    %c0_i32_74 = arith.constant 0 : i32
    %245 = arith.addi %c0_i32_74, %c4_i32 : i32
    %246 = arith.index_cast %244 : i32 to index
    %c0_75 = arith.constant 0 : index
    %247 = vector.load %arg16[%246, %c0_75] : memref<16x128xf32, #tpu.memory_space<vmem>>, vector<2x128xf32>
    %cst_76 = arith.constant dense<0.000000e+00> : vector<2x128xf32>
    %248 = tpu.matmul %234, %6, %cst_76 {dimension_numbers = #tpu.dot_dimension_numbers<[1], [0], [0], [1], [0, 0, 1, 1], [], []>} : vector<2x32xf32>, vector<32x128xf32>, vector<2x128xf32> -> vector<2x128xf32>
    %249 = arith.index_cast %245 : i32 to index
    %c0_77 = arith.constant 0 : index
    %250 = vector.load %arg5[%249, %c0_77] : memref<16x128xf32, #tpu.memory_space<vmem>>, vector<1x128xf32>
    %251 = vector.broadcast %250 : vector<1x128xf32> to vector<2x128xf32>
    %252 = arith.mulf %247, %251 : vector<2x128xf32>
    %253 = arith.index_cast %245 : i32 to index
    %c0_78 = arith.constant 0 : index
    %254 = vector.load %arg6[%253, %c0_78] : memref<16x128xf32, #tpu.memory_space<vmem>>, vector<1x128xf32>
    %255 = vector.broadcast %254 : vector<1x128xf32> to vector<2x128xf32>
    %256 = arith.mulf %248, %255 : vector<2x128xf32>
    %257 = arith.addf %252, %256 : vector<2x128xf32>
    %258 = arith.index_cast %245 : i32 to index
    %c0_79 = arith.constant 0 : index
    %259 = vector.load %arg7[%258, %c0_79] : memref<16x128xf32, #tpu.memory_space<vmem>>, vector<1x128xf32>
    %260 = vector.broadcast %259 : vector<1x128xf32> to vector<2x128xf32>
    %261 = arith.addf %257, %260 : vector<2x128xf32>
    %262 = vector.extract_strided_slice %261 {offsets = [0, 0], sizes = [2, 96], strides = [1, 1]} : vector<2x128xf32> to vector<2x96xf32>
    %263 = arith.negf %262 : vector<2x96xf32>
    %264 = math.exp %263 : vector<2x96xf32>
    %cst_80 = arith.constant 1.000000e+00 : f32
    %265 = vector.broadcast %cst_80 : f32 to vector<2x96xf32>
    %266 = arith.addf %265, %264 : vector<2x96xf32>
    %267 = arith.divf %265, %266 : vector<2x96xf32>
    %268 = vector.extract_strided_slice %267 {offsets = [0, 0], sizes = [2, 32], strides = [1, 1]} : vector<2x96xf32> to vector<2x32xf32>
    %269 = vector.extract_strided_slice %267 {offsets = [0, 32], sizes = [2, 32], strides = [1, 1]} : vector<2x96xf32> to vector<2x32xf32>
    %270 = vector.extract_strided_slice %267 {offsets = [0, 64], sizes = [2, 32], strides = [1, 1]} : vector<2x96xf32> to vector<2x32xf32>
    %271 = vector.extract_strided_slice %261 {offsets = [0, 96], sizes = [2, 32], strides = [1, 1]} : vector<2x128xf32> to vector<2x32xf32>
    %272 = math.tanh %271 : vector<2x32xf32>
    %273 = arith.mulf %268, %238 : vector<2x32xf32>
    %274 = arith.mulf %269, %272 : vector<2x32xf32>
    %275 = arith.addf %273, %274 : vector<2x32xf32>
    %276 = arith.index_cast %245 : i32 to index
    %c0_81 = arith.constant 0 : index
    %277 = vector.load %arg8[%276, %c0_81] : memref<16x32xf32, #tpu.memory_space<vmem>>, vector<1x32xf32>
    %278 = vector.broadcast %277 : vector<1x32xf32> to vector<2x32xf32>
    %279 = arith.mulf %275, %278 : vector<2x32xf32>
    %280 = arith.index_cast %245 : i32 to index
    %c0_82 = arith.constant 0 : index
    %281 = vector.load %arg9[%280, %c0_82] : memref<16x32xf32, #tpu.memory_space<vmem>>, vector<1x32xf32>
    %282 = vector.broadcast %281 : vector<1x32xf32> to vector<2x32xf32>
    %283 = arith.addf %279, %282 : vector<2x32xf32>
    %284 = math.tanh %283 : vector<2x32xf32>
    %285 = arith.mulf %270, %284 : vector<2x32xf32>
    %c0_83 = arith.constant 0 : index
    %286 = arith.index_cast %244 : i32 to index
    %c0_84 = arith.constant 0 : index
    %287 = vector.load %arg10[%c0_83, %286, %c0_84] : memref<1x16x1xf32, #tpu.memory_space<vmem>>, vector<1x2x1xf32>
    %288 = vector.shape_cast %287 : vector<1x2x1xf32> to vector<2x1xf32>
    %289 = arith.subf %285, %234 : vector<2x32xf32>
    %290 = vector.broadcast %288 : vector<2x1xf32> to vector<2x32xf32>
    %291 = arith.mulf %290, %289 : vector<2x32xf32>
    %292 = arith.addf %234, %291 : vector<2x32xf32>
    %293 = arith.subf %275, %238 : vector<2x32xf32>
    %294 = vector.broadcast %288 : vector<2x1xf32> to vector<2x32xf32>
    %295 = arith.mulf %294, %293 : vector<2x32xf32>
    %296 = arith.addf %238, %295 : vector<2x32xf32>
    %c0_85 = arith.constant 0 : index
    %297 = arith.index_cast %244 : i32 to index
    %c0_86 = arith.constant 0 : index
    %298 = vector.load %arg13[%c0_85, %297, %c0_86] : memref<1x16x32xf32, #tpu.memory_space<vmem>>, vector<1x2x32xf32>
    %299 = vector.shape_cast %298 : vector<1x2x32xf32> to vector<2x32xf32>
    %300 = vector.shape_cast %292 : vector<2x32xf32> to vector<1x2x32xf32>
    tpu.vector_store %arg13[%c0_85, %297, %c0_86], %300 {strides = array<i32>} : memref<1x16x32xf32, #tpu.memory_space<vmem>>, vector<1x2x32xf32>,
    %c5_i32 = arith.constant 5 : i32
    %c2_i32_87 = arith.constant 2 : i32
    %301 = arith.muli %c5_i32, %c2_i32_87 : i32
    %302 = tpu.assume_multiple %301, 2 : i32
    %c0_i32_88 = arith.constant 0 : i32
    %303 = arith.addi %c0_i32_88, %c5_i32 : i32
    %304 = arith.index_cast %302 : i32 to index
    %c0_89 = arith.constant 0 : index
    %305 = vector.load %arg16[%304, %c0_89] : memref<16x128xf32, #tpu.memory_space<vmem>>, vector<2x128xf32>
    %cst_90 = arith.constant dense<0.000000e+00> : vector<2x128xf32>
    %306 = tpu.matmul %292, %6, %cst_90 {dimension_numbers = #tpu.dot_dimension_numbers<[1], [0], [0], [1], [0, 0, 1, 1], [], []>} : vector<2x32xf32>, vector<32x128xf32>, vector<2x128xf32> -> vector<2x128xf32>
    %307 = arith.index_cast %303 : i32 to index
    %c0_91 = arith.constant 0 : index
    %308 = vector.load %arg5[%307, %c0_91] : memref<16x128xf32, #tpu.memory_space<vmem>>, vector<1x128xf32>
    %309 = vector.broadcast %308 : vector<1x128xf32> to vector<2x128xf32>
    %310 = arith.mulf %305, %309 : vector<2x128xf32>
    %311 = arith.index_cast %303 : i32 to index
    %c0_92 = arith.constant 0 : index
    %312 = vector.load %arg6[%311, %c0_92] : memref<16x128xf32, #tpu.memory_space<vmem>>, vector<1x128xf32>
    %313 = vector.broadcast %312 : vector<1x128xf32> to vector<2x128xf32>
    %314 = arith.mulf %306, %313 : vector<2x128xf32>
    %315 = arith.addf %310, %314 : vector<2x128xf32>
    %316 = arith.index_cast %303 : i32 to index
    %c0_93 = arith.constant 0 : index
    %317 = vector.load %arg7[%316, %c0_93] : memref<16x128xf32, #tpu.memory_space<vmem>>, vector<1x128xf32>
    %318 = vector.broadcast %317 : vector<1x128xf32> to vector<2x128xf32>
    %319 = arith.addf %315, %318 : vector<2x128xf32>
    %320 = vector.extract_strided_slice %319 {offsets = [0, 0], sizes = [2, 96], strides = [1, 1]} : vector<2x128xf32> to vector<2x96xf32>
    %321 = arith.negf %320 : vector<2x96xf32>
    %322 = math.exp %321 : vector<2x96xf32>
    %cst_94 = arith.constant 1.000000e+00 : f32
    %323 = vector.broadcast %cst_94 : f32 to vector<2x96xf32>
    %324 = arith.addf %323, %322 : vector<2x96xf32>
    %325 = arith.divf %323, %324 : vector<2x96xf32>
    %326 = vector.extract_strided_slice %325 {offsets = [0, 0], sizes = [2, 32], strides = [1, 1]} : vector<2x96xf32> to vector<2x32xf32>
    %327 = vector.extract_strided_slice %325 {offsets = [0, 32], sizes = [2, 32], strides = [1, 1]} : vector<2x96xf32> to vector<2x32xf32>
    %328 = vector.extract_strided_slice %325 {offsets = [0, 64], sizes = [2, 32], strides = [1, 1]} : vector<2x96xf32> to vector<2x32xf32>
    %329 = vector.extract_strided_slice %319 {offsets = [0, 96], sizes = [2, 32], strides = [1, 1]} : vector<2x128xf32> to vector<2x32xf32>
    %330 = math.tanh %329 : vector<2x32xf32>
    %331 = arith.mulf %326, %296 : vector<2x32xf32>
    %332 = arith.mulf %327, %330 : vector<2x32xf32>
    %333 = arith.addf %331, %332 : vector<2x32xf32>
    %334 = arith.index_cast %303 : i32 to index
    %c0_95 = arith.constant 0 : index
    %335 = vector.load %arg8[%334, %c0_95] : memref<16x32xf32, #tpu.memory_space<vmem>>, vector<1x32xf32>
    %336 = vector.broadcast %335 : vector<1x32xf32> to vector<2x32xf32>
    %337 = arith.mulf %333, %336 : vector<2x32xf32>
    %338 = arith.index_cast %303 : i32 to index
    %c0_96 = arith.constant 0 : index
    %339 = vector.load %arg9[%338, %c0_96] : memref<16x32xf32, #tpu.memory_space<vmem>>, vector<1x32xf32>
    %340 = vector.broadcast %339 : vector<1x32xf32> to vector<2x32xf32>
    %341 = arith.addf %337, %340 : vector<2x32xf32>
    %342 = math.tanh %341 : vector<2x32xf32>
    %343 = arith.mulf %328, %342 : vector<2x32xf32>
    %c0_97 = arith.constant 0 : index
    %344 = arith.index_cast %302 : i32 to index
    %c0_98 = arith.constant 0 : index
    %345 = vector.load %arg10[%c0_97, %344, %c0_98] : memref<1x16x1xf32, #tpu.memory_space<vmem>>, vector<1x2x1xf32>
    %346 = vector.shape_cast %345 : vector<1x2x1xf32> to vector<2x1xf32>
    %347 = arith.subf %343, %292 : vector<2x32xf32>
    %348 = vector.broadcast %346 : vector<2x1xf32> to vector<2x32xf32>
    %349 = arith.mulf %348, %347 : vector<2x32xf32>
    %350 = arith.addf %292, %349 : vector<2x32xf32>
    %351 = arith.subf %333, %296 : vector<2x32xf32>
    %352 = vector.broadcast %346 : vector<2x1xf32> to vector<2x32xf32>
    %353 = arith.mulf %352, %351 : vector<2x32xf32>
    %354 = arith.addf %296, %353 : vector<2x32xf32>
    %c0_99 = arith.constant 0 : index
    %355 = arith.index_cast %302 : i32 to index
    %c0_100 = arith.constant 0 : index
    %356 = vector.load %arg13[%c0_99, %355, %c0_100] : memref<1x16x32xf32, #tpu.memory_space<vmem>>, vector<1x2x32xf32>
    %357 = vector.shape_cast %356 : vector<1x2x32xf32> to vector<2x32xf32>
    %358 = vector.shape_cast %350 : vector<2x32xf32> to vector<1x2x32xf32>
    tpu.vector_store %arg13[%c0_99, %355, %c0_100], %358 {strides = array<i32>} : memref<1x16x32xf32, #tpu.memory_space<vmem>>, vector<1x2x32xf32>,
    %c6_i32 = arith.constant 6 : i32
    %c2_i32_101 = arith.constant 2 : i32
    %359 = arith.muli %c6_i32, %c2_i32_101 : i32
    %360 = tpu.assume_multiple %359, 2 : i32
    %c0_i32_102 = arith.constant 0 : i32
    %361 = arith.addi %c0_i32_102, %c6_i32 : i32
    %362 = arith.index_cast %360 : i32 to index
    %c0_103 = arith.constant 0 : index
    %363 = vector.load %arg16[%362, %c0_103] : memref<16x128xf32, #tpu.memory_space<vmem>>, vector<2x128xf32>
    %cst_104 = arith.constant dense<0.000000e+00> : vector<2x128xf32>
    %364 = tpu.matmul %350, %6, %cst_104 {dimension_numbers = #tpu.dot_dimension_numbers<[1], [0], [0], [1], [0, 0, 1, 1], [], []>} : vector<2x32xf32>, vector<32x128xf32>, vector<2x128xf32> -> vector<2x128xf32>
    %365 = arith.index_cast %361 : i32 to index
    %c0_105 = arith.constant 0 : index
    %366 = vector.load %arg5[%365, %c0_105] : memref<16x128xf32, #tpu.memory_space<vmem>>, vector<1x128xf32>
    %367 = vector.broadcast %366 : vector<1x128xf32> to vector<2x128xf32>
    %368 = arith.mulf %363, %367 : vector<2x128xf32>
    %369 = arith.index_cast %361 : i32 to index
    %c0_106 = arith.constant 0 : index
    %370 = vector.load %arg6[%369, %c0_106] : memref<16x128xf32, #tpu.memory_space<vmem>>, vector<1x128xf32>
    %371 = vector.broadcast %370 : vector<1x128xf32> to vector<2x128xf32>
    %372 = arith.mulf %364, %371 : vector<2x128xf32>
    %373 = arith.addf %368, %372 : vector<2x128xf32>
    %374 = arith.index_cast %361 : i32 to index
    %c0_107 = arith.constant 0 : index
    %375 = vector.load %arg7[%374, %c0_107] : memref<16x128xf32, #tpu.memory_space<vmem>>, vector<1x128xf32>
    %376 = vector.broadcast %375 : vector<1x128xf32> to vector<2x128xf32>
    %377 = arith.addf %373, %376 : vector<2x128xf32>
    %378 = vector.extract_strided_slice %377 {offsets = [0, 0], sizes = [2, 96], strides = [1, 1]} : vector<2x128xf32> to vector<2x96xf32>
    %379 = arith.negf %378 : vector<2x96xf32>
    %380 = math.exp %379 : vector<2x96xf32>
    %cst_108 = arith.constant 1.000000e+00 : f32
    %381 = vector.broadcast %cst_108 : f32 to vector<2x96xf32>
    %382 = arith.addf %381, %380 : vector<2x96xf32>
    %383 = arith.divf %381, %382 : vector<2x96xf32>
    %384 = vector.extract_strided_slice %383 {offsets = [0, 0], sizes = [2, 32], strides = [1, 1]} : vector<2x96xf32> to vector<2x32xf32>
    %385 = vector.extract_strided_slice %383 {offsets = [0, 32], sizes = [2, 32], strides = [1, 1]} : vector<2x96xf32> to vector<2x32xf32>
    %386 = vector.extract_strided_slice %383 {offsets = [0, 64], sizes = [2, 32], strides = [1, 1]} : vector<2x96xf32> to vector<2x32xf32>
    %387 = vector.extract_strided_slice %377 {offsets = [0, 96], sizes = [2, 32], strides = [1, 1]} : vector<2x128xf32> to vector<2x32xf32>
    %388 = math.tanh %387 : vector<2x32xf32>
    %389 = arith.mulf %384, %354 : vector<2x32xf32>
    %390 = arith.mulf %385, %388 : vector<2x32xf32>
    %391 = arith.addf %389, %390 : vector<2x32xf32>
    %392 = arith.index_cast %361 : i32 to index
    %c0_109 = arith.constant 0 : index
    %393 = vector.load %arg8[%392, %c0_109] : memref<16x32xf32, #tpu.memory_space<vmem>>, vector<1x32xf32>
    %394 = vector.broadcast %393 : vector<1x32xf32> to vector<2x32xf32>
    %395 = arith.mulf %391, %394 : vector<2x32xf32>
    %396 = arith.index_cast %361 : i32 to index
    %c0_110 = arith.constant 0 : index
    %397 = vector.load %arg9[%396, %c0_110] : memref<16x32xf32, #tpu.memory_space<vmem>>, vector<1x32xf32>
    %398 = vector.broadcast %397 : vector<1x32xf32> to vector<2x32xf32>
    %399 = arith.addf %395, %398 : vector<2x32xf32>
    %400 = math.tanh %399 : vector<2x32xf32>
    %401 = arith.mulf %386, %400 : vector<2x32xf32>
    %c0_111 = arith.constant 0 : index
    %402 = arith.index_cast %360 : i32 to index
    %c0_112 = arith.constant 0 : index
    %403 = vector.load %arg10[%c0_111, %402, %c0_112] : memref<1x16x1xf32, #tpu.memory_space<vmem>>, vector<1x2x1xf32>
    %404 = vector.shape_cast %403 : vector<1x2x1xf32> to vector<2x1xf32>
    %405 = arith.subf %401, %350 : vector<2x32xf32>
    %406 = vector.broadcast %404 : vector<2x1xf32> to vector<2x32xf32>
    %407 = arith.mulf %406, %405 : vector<2x32xf32>
    %408 = arith.addf %350, %407 : vector<2x32xf32>
    %409 = arith.subf %391, %354 : vector<2x32xf32>
    %410 = vector.broadcast %404 : vector<2x1xf32> to vector<2x32xf32>
    %411 = arith.mulf %410, %409 : vector<2x32xf32>
    %412 = arith.addf %354, %411 : vector<2x32xf32>
    %c0_113 = arith.constant 0 : index
    %413 = arith.index_cast %360 : i32 to index
    %c0_114 = arith.constant 0 : index
    %414 = vector.load %arg13[%c0_113, %413, %c0_114] : memref<1x16x32xf32, #tpu.memory_space<vmem>>, vector<1x2x32xf32>
    %415 = vector.shape_cast %414 : vector<1x2x32xf32> to vector<2x32xf32>
    %416 = vector.shape_cast %408 : vector<2x32xf32> to vector<1x2x32xf32>
    tpu.vector_store %arg13[%c0_113, %413, %c0_114], %416 {strides = array<i32>} : memref<1x16x32xf32, #tpu.memory_space<vmem>>, vector<1x2x32xf32>,
    %c7_i32 = arith.constant 7 : i32
    %c2_i32_115 = arith.constant 2 : i32
    %417 = arith.muli %c7_i32, %c2_i32_115 : i32
    %418 = tpu.assume_multiple %417, 2 : i32
    %c0_i32_116 = arith.constant 0 : i32
    %419 = arith.addi %c0_i32_116, %c7_i32 : i32
    %420 = arith.index_cast %418 : i32 to index
    %c0_117 = arith.constant 0 : index
    %421 = vector.load %arg16[%420, %c0_117] : memref<16x128xf32, #tpu.memory_space<vmem>>, vector<2x128xf32>
    %cst_118 = arith.constant dense<0.000000e+00> : vector<2x128xf32>
    %422 = tpu.matmul %408, %6, %cst_118 {dimension_numbers = #tpu.dot_dimension_numbers<[1], [0], [0], [1], [0, 0, 1, 1], [], []>} : vector<2x32xf32>, vector<32x128xf32>, vector<2x128xf32> -> vector<2x128xf32>
    %423 = arith.index_cast %419 : i32 to index
    %c0_119 = arith.constant 0 : index
    %424 = vector.load %arg5[%423, %c0_119] : memref<16x128xf32, #tpu.memory_space<vmem>>, vector<1x128xf32>
    %425 = vector.broadcast %424 : vector<1x128xf32> to vector<2x128xf32>
    %426 = arith.mulf %421, %425 : vector<2x128xf32>
    %427 = arith.index_cast %419 : i32 to index
    %c0_120 = arith.constant 0 : index
    %428 = vector.load %arg6[%427, %c0_120] : memref<16x128xf32, #tpu.memory_space<vmem>>, vector<1x128xf32>
    %429 = vector.broadcast %428 : vector<1x128xf32> to vector<2x128xf32>
    %430 = arith.mulf %422, %429 : vector<2x128xf32>
    %431 = arith.addf %426, %430 : vector<2x128xf32>
    %432 = arith.index_cast %419 : i32 to index
    %c0_121 = arith.constant 0 : index
    %433 = vector.load %arg7[%432, %c0_121] : memref<16x128xf32, #tpu.memory_space<vmem>>, vector<1x128xf32>
    %434 = vector.broadcast %433 : vector<1x128xf32> to vector<2x128xf32>
    %435 = arith.addf %431, %434 : vector<2x128xf32>
    %436 = vector.extract_strided_slice %435 {offsets = [0, 0], sizes = [2, 96], strides = [1, 1]} : vector<2x128xf32> to vector<2x96xf32>
    %437 = arith.negf %436 : vector<2x96xf32>
    %438 = math.exp %437 : vector<2x96xf32>
    %cst_122 = arith.constant 1.000000e+00 : f32
    %439 = vector.broadcast %cst_122 : f32 to vector<2x96xf32>
    %440 = arith.addf %439, %438 : vector<2x96xf32>
    %441 = arith.divf %439, %440 : vector<2x96xf32>
    %442 = vector.extract_strided_slice %441 {offsets = [0, 0], sizes = [2, 32], strides = [1, 1]} : vector<2x96xf32> to vector<2x32xf32>
    %443 = vector.extract_strided_slice %441 {offsets = [0, 32], sizes = [2, 32], strides = [1, 1]} : vector<2x96xf32> to vector<2x32xf32>
    %444 = vector.extract_strided_slice %441 {offsets = [0, 64], sizes = [2, 32], strides = [1, 1]} : vector<2x96xf32> to vector<2x32xf32>
    %445 = vector.extract_strided_slice %435 {offsets = [0, 96], sizes = [2, 32], strides = [1, 1]} : vector<2x128xf32> to vector<2x32xf32>
    %446 = math.tanh %445 : vector<2x32xf32>
    %447 = arith.mulf %442, %412 : vector<2x32xf32>
    %448 = arith.mulf %443, %446 : vector<2x32xf32>
    %449 = arith.addf %447, %448 : vector<2x32xf32>
    %450 = arith.index_cast %419 : i32 to index
    %c0_123 = arith.constant 0 : index
    %451 = vector.load %arg8[%450, %c0_123] : memref<16x32xf32, #tpu.memory_space<vmem>>, vector<1x32xf32>
    %452 = vector.broadcast %451 : vector<1x32xf32> to vector<2x32xf32>
    %453 = arith.mulf %449, %452 : vector<2x32xf32>
    %454 = arith.index_cast %419 : i32 to index
    %c0_124 = arith.constant 0 : index
    %455 = vector.load %arg9[%454, %c0_124] : memref<16x32xf32, #tpu.memory_space<vmem>>, vector<1x32xf32>
    %456 = vector.broadcast %455 : vector<1x32xf32> to vector<2x32xf32>
    %457 = arith.addf %453, %456 : vector<2x32xf32>
    %458 = math.tanh %457 : vector<2x32xf32>
    %459 = arith.mulf %444, %458 : vector<2x32xf32>
    %c0_125 = arith.constant 0 : index
    %460 = arith.index_cast %418 : i32 to index
    %c0_126 = arith.constant 0 : index
    %461 = vector.load %arg10[%c0_125, %460, %c0_126] : memref<1x16x1xf32, #tpu.memory_space<vmem>>, vector<1x2x1xf32>
    %462 = vector.shape_cast %461 : vector<1x2x1xf32> to vector<2x1xf32>
    %463 = arith.subf %459, %408 : vector<2x32xf32>
    %464 = vector.broadcast %462 : vector<2x1xf32> to vector<2x32xf32>
    %465 = arith.mulf %464, %463 : vector<2x32xf32>
    %466 = arith.addf %408, %465 : vector<2x32xf32>
    %467 = arith.subf %449, %412 : vector<2x32xf32>
    %468 = vector.broadcast %462 : vector<2x1xf32> to vector<2x32xf32>
    %469 = arith.mulf %468, %467 : vector<2x32xf32>
    %470 = arith.addf %412, %469 : vector<2x32xf32>
    %c0_127 = arith.constant 0 : index
    %471 = arith.index_cast %418 : i32 to index
    %c0_128 = arith.constant 0 : index
    %472 = vector.load %arg13[%c0_127, %471, %c0_128] : memref<1x16x32xf32, #tpu.memory_space<vmem>>, vector<1x2x32xf32>
    %473 = vector.shape_cast %472 : vector<1x2x32xf32> to vector<2x32xf32>
    %474 = vector.shape_cast %466 : vector<2x32xf32> to vector<1x2x32xf32>
    tpu.vector_store %arg13[%c0_127, %471, %c0_128], %474 {strides = array<i32>} : memref<1x16x32xf32, #tpu.memory_space<vmem>>, vector<1x2x32xf32>,
    %c8_i32 = arith.constant 8 : i32
    %c0_129 = arith.constant 0 : index
    %c0_130 = arith.constant 0 : index
    %c0_131 = arith.constant 0 : index
    %c0_132 = arith.constant 0 : index
    %475 = vector.load %arg14[%c0_129, %c0_130, %c0_131, %c0_132] : memref<1x2x2x32xf32, #tpu.memory_space<vmem>>, vector<1x1x2x32xf32>
    %476 = vector.shape_cast %475 : vector<1x1x2x32xf32> to vector<2x32xf32>
    %477 = vector.shape_cast %466 : vector<2x32xf32> to vector<1x1x2x32xf32>
    tpu.vector_store %arg14[%c0_129, %c0_130, %c0_131, %c0_132], %477 {strides = array<i32>} : memref<1x2x2x32xf32, #tpu.memory_space<vmem>>, vector<1x1x2x32xf32>,
    %c0_133 = arith.constant 0 : index
    %c0_134 = arith.constant 0 : index
    %c0_135 = arith.constant 0 : index
    %c0_136 = arith.constant 0 : index
    %478 = vector.load %arg15[%c0_133, %c0_134, %c0_135, %c0_136] : memref<1x2x2x32xf32, #tpu.memory_space<vmem>>, vector<1x1x2x32xf32>
    %479 = vector.shape_cast %478 : vector<1x1x2x32xf32> to vector<2x32xf32>
    %480 = vector.shape_cast %470 : vector<2x32xf32> to vector<1x1x2x32xf32>
    tpu.vector_store %arg15[%c0_133, %c0_134, %c0_135, %c0_136], %480 {strides = array<i32>} : memref<1x2x2x32xf32, #tpu.memory_space<vmem>>, vector<1x1x2x32xf32>,
    %c0_137 = arith.constant 0 : index
    %c0_138 = arith.constant 0 : index
    %c0_139 = arith.constant 0 : index
    %481 = vector.load %arg13[%c0_137, %c0_138, %c0_139] : memref<1x16x32xf32, #tpu.memory_space<vmem>>, vector<1x16x32xf32>
    %482 = vector.shape_cast %481 : vector<1x16x32xf32> to vector<16x32xf32>
    %c0_140 = arith.constant 0 : index
    %c0_141 = arith.constant 0 : index
    %c0_142 = arith.constant 0 : index
    %483 = vector.load %arg3[%c0_140, %c0_141, %c0_142] : memref<1x32x128xf32, #tpu.memory_space<vmem>>, vector<1x32x128xf32>
    %484 = vector.shape_cast %483 : vector<1x32x128xf32> to vector<32x128xf32>
    %cst_143 = arith.constant dense<0.000000e+00> : vector<16x128xf32>
    %485 = tpu.matmul %482, %484, %cst_143 {dimension_numbers = #tpu.dot_dimension_numbers<[1], [0], [0], [1], [0, 0, 1, 1], [], []>} : vector<16x32xf32>, vector<32x128xf32>, vector<16x128xf32> -> vector<16x128xf32>
    %c0_144 = arith.constant 0 : index
    %c0_145 = arith.constant 0 : index
    %486 = vector.load %arg16[%c0_144, %c0_145] : memref<16x128xf32, #tpu.memory_space<vmem>>, vector<16x128xf32>
    tpu.vector_store %arg16[%c0_144, %c0_145], %485 {strides = array<i32>} : memref<16x128xf32, #tpu.memory_space<vmem>>, vector<16x128xf32>,
    %c1 = arith.constant 1 : index
    %c0_146 = arith.constant 0 : index
    %c0_147 = arith.constant 0 : index
    %487 = vector.load %arg4[%c1, %c0_146, %c0_147] : memref<2x32x128xf32, #tpu.memory_space<vmem>>, vector<1x32x128xf32>
    %488 = vector.shape_cast %487 : vector<1x32x128xf32> to vector<32x128xf32>
    %c0_148 = arith.constant 0 : index
    %c1_149 = arith.constant 1 : index
    %c0_150 = arith.constant 0 : index
    %c0_151 = arith.constant 0 : index
    %489 = vector.load %arg11[%c0_148, %c1_149, %c0_150, %c0_151] : memref<1x2x2x32xf32, #tpu.memory_space<vmem>>, vector<1x1x2x32xf32>
    %490 = vector.shape_cast %489 : vector<1x1x2x32xf32> to vector<2x32xf32>
    %c0_152 = arith.constant 0 : index
    %c1_153 = arith.constant 1 : index
    %c0_154 = arith.constant 0 : index
    %c0_155 = arith.constant 0 : index
    %491 = vector.load %arg12[%c0_152, %c1_153, %c0_154, %c0_155] : memref<1x2x2x32xf32, #tpu.memory_space<vmem>>, vector<1x1x2x32xf32>
    %492 = vector.shape_cast %491 : vector<1x1x2x32xf32> to vector<2x32xf32>
    %c0_i32_156 = arith.constant 0 : i32
    %c2_i32_157 = arith.constant 2 : i32
    %493 = arith.muli %c0_i32_156, %c2_i32_157 : i32
    %494 = tpu.assume_multiple %493, 2 : i32
    %c8_i32_158 = arith.constant 8 : i32
    %495 = arith.addi %c8_i32_158, %c0_i32_156 : i32
    %496 = arith.index_cast %494 : i32 to index
    %c0_159 = arith.constant 0 : index
    %497 = vector.load %arg16[%496, %c0_159] : memref<16x128xf32, #tpu.memory_space<vmem>>, vector<2x128xf32>
    %cst_160 = arith.constant dense<0.000000e+00> : vector<2x128xf32>
    %498 = tpu.matmul %490, %488, %cst_160 {dimension_numbers = #tpu.dot_dimension_numbers<[1], [0], [0], [1], [0, 0, 1, 1], [], []>} : vector<2x32xf32>, vector<32x128xf32>, vector<2x128xf32> -> vector<2x128xf32>
    %499 = arith.index_cast %495 : i32 to index
    %c0_161 = arith.constant 0 : index
    %500 = vector.load %arg5[%499, %c0_161] : memref<16x128xf32, #tpu.memory_space<vmem>>, vector<1x128xf32>
    %501 = vector.broadcast %500 : vector<1x128xf32> to vector<2x128xf32>
    %502 = arith.mulf %497, %501 : vector<2x128xf32>
    %503 = arith.index_cast %495 : i32 to index
    %c0_162 = arith.constant 0 : index
    %504 = vector.load %arg6[%503, %c0_162] : memref<16x128xf32, #tpu.memory_space<vmem>>, vector<1x128xf32>
    %505 = vector.broadcast %504 : vector<1x128xf32> to vector<2x128xf32>
    %506 = arith.mulf %498, %505 : vector<2x128xf32>
    %507 = arith.addf %502, %506 : vector<2x128xf32>
    %508 = arith.index_cast %495 : i32 to index
    %c0_163 = arith.constant 0 : index
    %509 = vector.load %arg7[%508, %c0_163] : memref<16x128xf32, #tpu.memory_space<vmem>>, vector<1x128xf32>
    %510 = vector.broadcast %509 : vector<1x128xf32> to vector<2x128xf32>
    %511 = arith.addf %507, %510 : vector<2x128xf32>
    %512 = vector.extract_strided_slice %511 {offsets = [0, 0], sizes = [2, 96], strides = [1, 1]} : vector<2x128xf32> to vector<2x96xf32>
    %513 = arith.negf %512 : vector<2x96xf32>
    %514 = math.exp %513 : vector<2x96xf32>
    %cst_164 = arith.constant 1.000000e+00 : f32
    %515 = vector.broadcast %cst_164 : f32 to vector<2x96xf32>
    %516 = arith.addf %515, %514 : vector<2x96xf32>
    %517 = arith.divf %515, %516 : vector<2x96xf32>
    %518 = vector.extract_strided_slice %517 {offsets = [0, 0], sizes = [2, 32], strides = [1, 1]} : vector<2x96xf32> to vector<2x32xf32>
    %519 = vector.extract_strided_slice %517 {offsets = [0, 32], sizes = [2, 32], strides = [1, 1]} : vector<2x96xf32> to vector<2x32xf32>
    %520 = vector.extract_strided_slice %517 {offsets = [0, 64], sizes = [2, 32], strides = [1, 1]} : vector<2x96xf32> to vector<2x32xf32>
    %521 = vector.extract_strided_slice %511 {offsets = [0, 96], sizes = [2, 32], strides = [1, 1]} : vector<2x128xf32> to vector<2x32xf32>
    %522 = math.tanh %521 : vector<2x32xf32>
    %523 = arith.mulf %518, %492 : vector<2x32xf32>
    %524 = arith.mulf %519, %522 : vector<2x32xf32>
    %525 = arith.addf %523, %524 : vector<2x32xf32>
    %526 = arith.index_cast %495 : i32 to index
    %c0_165 = arith.constant 0 : index
    %527 = vector.load %arg8[%526, %c0_165] : memref<16x32xf32, #tpu.memory_space<vmem>>, vector<1x32xf32>
    %528 = vector.broadcast %527 : vector<1x32xf32> to vector<2x32xf32>
    %529 = arith.mulf %525, %528 : vector<2x32xf32>
    %530 = arith.index_cast %495 : i32 to index
    %c0_166 = arith.constant 0 : index
    %531 = vector.load %arg9[%530, %c0_166] : memref<16x32xf32, #tpu.memory_space<vmem>>, vector<1x32xf32>
    %532 = vector.broadcast %531 : vector<1x32xf32> to vector<2x32xf32>
    %533 = arith.addf %529, %532 : vector<2x32xf32>
    %534 = math.tanh %533 : vector<2x32xf32>
    %535 = arith.mulf %520, %534 : vector<2x32xf32>
    %c0_167 = arith.constant 0 : index
    %536 = arith.index_cast %494 : i32 to index
    %c0_168 = arith.constant 0 : index
    %537 = vector.load %arg10[%c0_167, %536, %c0_168] : memref<1x16x1xf32, #tpu.memory_space<vmem>>, vector<1x2x1xf32>
    %538 = vector.shape_cast %537 : vector<1x2x1xf32> to vector<2x1xf32>
    %539 = arith.subf %535, %490 : vector<2x32xf32>
    %540 = vector.broadcast %538 : vector<2x1xf32> to vector<2x32xf32>
    %541 = arith.mulf %540, %539 : vector<2x32xf32>
    %542 = arith.addf %490, %541 : vector<2x32xf32>
    %543 = arith.subf %525, %492 : vector<2x32xf32>
    %544 = vector.broadcast %538 : vector<2x1xf32> to vector<2x32xf32>
    %545 = arith.mulf %544, %543 : vector<2x32xf32>
    %546 = arith.addf %492, %545 : vector<2x32xf32>
    %c0_169 = arith.constant 0 : index
    %547 = arith.index_cast %494 : i32 to index
    %c0_170 = arith.constant 0 : index
    %548 = vector.load %arg13[%c0_169, %547, %c0_170] : memref<1x16x32xf32, #tpu.memory_space<vmem>>, vector<1x2x32xf32>
    %549 = vector.shape_cast %548 : vector<1x2x32xf32> to vector<2x32xf32>
    %550 = vector.shape_cast %542 : vector<2x32xf32> to vector<1x2x32xf32>
    tpu.vector_store %arg13[%c0_169, %547, %c0_170], %550 {strides = array<i32>} : memref<1x16x32xf32, #tpu.memory_space<vmem>>, vector<1x2x32xf32>,
    %c1_i32_171 = arith.constant 1 : i32
    %c2_i32_172 = arith.constant 2 : i32
    %551 = arith.muli %c1_i32_171, %c2_i32_172 : i32
    %552 = tpu.assume_multiple %551, 2 : i32
    %c8_i32_173 = arith.constant 8 : i32
    %553 = arith.addi %c8_i32_173, %c1_i32_171 : i32
    %554 = arith.index_cast %552 : i32 to index
    %c0_174 = arith.constant 0 : index
    %555 = vector.load %arg16[%554, %c0_174] : memref<16x128xf32, #tpu.memory_space<vmem>>, vector<2x128xf32>
    %cst_175 = arith.constant dense<0.000000e+00> : vector<2x128xf32>
    %556 = tpu.matmul %542, %488, %cst_175 {dimension_numbers = #tpu.dot_dimension_numbers<[1], [0], [0], [1], [0, 0, 1, 1], [], []>} : vector<2x32xf32>, vector<32x128xf32>, vector<2x128xf32> -> vector<2x128xf32>
    %557 = arith.index_cast %553 : i32 to index
    %c0_176 = arith.constant 0 : index
    %558 = vector.load %arg5[%557, %c0_176] : memref<16x128xf32, #tpu.memory_space<vmem>>, vector<1x128xf32>
    %559 = vector.broadcast %558 : vector<1x128xf32> to vector<2x128xf32>
    %560 = arith.mulf %555, %559 : vector<2x128xf32>
    %561 = arith.index_cast %553 : i32 to index
    %c0_177 = arith.constant 0 : index
    %562 = vector.load %arg6[%561, %c0_177] : memref<16x128xf32, #tpu.memory_space<vmem>>, vector<1x128xf32>
    %563 = vector.broadcast %562 : vector<1x128xf32> to vector<2x128xf32>
    %564 = arith.mulf %556, %563 : vector<2x128xf32>
    %565 = arith.addf %560, %564 : vector<2x128xf32>
    %566 = arith.index_cast %553 : i32 to index
    %c0_178 = arith.constant 0 : index
    %567 = vector.load %arg7[%566, %c0_178] : memref<16x128xf32, #tpu.memory_space<vmem>>, vector<1x128xf32>
    %568 = vector.broadcast %567 : vector<1x128xf32> to vector<2x128xf32>
    %569 = arith.addf %565, %568 : vector<2x128xf32>
    %570 = vector.extract_strided_slice %569 {offsets = [0, 0], sizes = [2, 96], strides = [1, 1]} : vector<2x128xf32> to vector<2x96xf32>
    %571 = arith.negf %570 : vector<2x96xf32>
    %572 = math.exp %571 : vector<2x96xf32>
    %cst_179 = arith.constant 1.000000e+00 : f32
    %573 = vector.broadcast %cst_179 : f32 to vector<2x96xf32>
    %574 = arith.addf %573, %572 : vector<2x96xf32>
    %575 = arith.divf %573, %574 : vector<2x96xf32>
    %576 = vector.extract_strided_slice %575 {offsets = [0, 0], sizes = [2, 32], strides = [1, 1]} : vector<2x96xf32> to vector<2x32xf32>
    %577 = vector.extract_strided_slice %575 {offsets = [0, 32], sizes = [2, 32], strides = [1, 1]} : vector<2x96xf32> to vector<2x32xf32>
    %578 = vector.extract_strided_slice %575 {offsets = [0, 64], sizes = [2, 32], strides = [1, 1]} : vector<2x96xf32> to vector<2x32xf32>
    %579 = vector.extract_strided_slice %569 {offsets = [0, 96], sizes = [2, 32], strides = [1, 1]} : vector<2x128xf32> to vector<2x32xf32>
    %580 = math.tanh %579 : vector<2x32xf32>
    %581 = arith.mulf %576, %546 : vector<2x32xf32>
    %582 = arith.mulf %577, %580 : vector<2x32xf32>
    %583 = arith.addf %581, %582 : vector<2x32xf32>
    %584 = arith.index_cast %553 : i32 to index
    %c0_180 = arith.constant 0 : index
    %585 = vector.load %arg8[%584, %c0_180] : memref<16x32xf32, #tpu.memory_space<vmem>>, vector<1x32xf32>
    %586 = vector.broadcast %585 : vector<1x32xf32> to vector<2x32xf32>
    %587 = arith.mulf %583, %586 : vector<2x32xf32>
    %588 = arith.index_cast %553 : i32 to index
    %c0_181 = arith.constant 0 : index
    %589 = vector.load %arg9[%588, %c0_181] : memref<16x32xf32, #tpu.memory_space<vmem>>, vector<1x32xf32>
    %590 = vector.broadcast %589 : vector<1x32xf32> to vector<2x32xf32>
    %591 = arith.addf %587, %590 : vector<2x32xf32>
    %592 = math.tanh %591 : vector<2x32xf32>
    %593 = arith.mulf %578, %592 : vector<2x32xf32>
    %c0_182 = arith.constant 0 : index
    %594 = arith.index_cast %552 : i32 to index
    %c0_183 = arith.constant 0 : index
    %595 = vector.load %arg10[%c0_182, %594, %c0_183] : memref<1x16x1xf32, #tpu.memory_space<vmem>>, vector<1x2x1xf32>
    %596 = vector.shape_cast %595 : vector<1x2x1xf32> to vector<2x1xf32>
    %597 = arith.subf %593, %542 : vector<2x32xf32>
    %598 = vector.broadcast %596 : vector<2x1xf32> to vector<2x32xf32>
    %599 = arith.mulf %598, %597 : vector<2x32xf32>
    %600 = arith.addf %542, %599 : vector<2x32xf32>
    %601 = arith.subf %583, %546 : vector<2x32xf32>
    %602 = vector.broadcast %596 : vector<2x1xf32> to vector<2x32xf32>
    %603 = arith.mulf %602, %601 : vector<2x32xf32>
    %604 = arith.addf %546, %603 : vector<2x32xf32>
    %c0_184 = arith.constant 0 : index
    %605 = arith.index_cast %552 : i32 to index
    %c0_185 = arith.constant 0 : index
    %606 = vector.load %arg13[%c0_184, %605, %c0_185] : memref<1x16x32xf32, #tpu.memory_space<vmem>>, vector<1x2x32xf32>
    %607 = vector.shape_cast %606 : vector<1x2x32xf32> to vector<2x32xf32>
    %608 = vector.shape_cast %600 : vector<2x32xf32> to vector<1x2x32xf32>
    tpu.vector_store %arg13[%c0_184, %605, %c0_185], %608 {strides = array<i32>} : memref<1x16x32xf32, #tpu.memory_space<vmem>>, vector<1x2x32xf32>,
    %c2_i32_186 = arith.constant 2 : i32
    %c2_i32_187 = arith.constant 2 : i32
    %609 = arith.muli %c2_i32_186, %c2_i32_187 : i32
    %610 = tpu.assume_multiple %609, 2 : i32
    %c8_i32_188 = arith.constant 8 : i32
    %611 = arith.addi %c8_i32_188, %c2_i32_186 : i32
    %612 = arith.index_cast %610 : i32 to index
    %c0_189 = arith.constant 0 : index
    %613 = vector.load %arg16[%612, %c0_189] : memref<16x128xf32, #tpu.memory_space<vmem>>, vector<2x128xf32>
    %cst_190 = arith.constant dense<0.000000e+00> : vector<2x128xf32>
    %614 = tpu.matmul %600, %488, %cst_190 {dimension_numbers = #tpu.dot_dimension_numbers<[1], [0], [0], [1], [0, 0, 1, 1], [], []>} : vector<2x32xf32>, vector<32x128xf32>, vector<2x128xf32> -> vector<2x128xf32>
    %615 = arith.index_cast %611 : i32 to index
    %c0_191 = arith.constant 0 : index
    %616 = vector.load %arg5[%615, %c0_191] : memref<16x128xf32, #tpu.memory_space<vmem>>, vector<1x128xf32>
    %617 = vector.broadcast %616 : vector<1x128xf32> to vector<2x128xf32>
    %618 = arith.mulf %613, %617 : vector<2x128xf32>
    %619 = arith.index_cast %611 : i32 to index
    %c0_192 = arith.constant 0 : index
    %620 = vector.load %arg6[%619, %c0_192] : memref<16x128xf32, #tpu.memory_space<vmem>>, vector<1x128xf32>
    %621 = vector.broadcast %620 : vector<1x128xf32> to vector<2x128xf32>
    %622 = arith.mulf %614, %621 : vector<2x128xf32>
    %623 = arith.addf %618, %622 : vector<2x128xf32>
    %624 = arith.index_cast %611 : i32 to index
    %c0_193 = arith.constant 0 : index
    %625 = vector.load %arg7[%624, %c0_193] : memref<16x128xf32, #tpu.memory_space<vmem>>, vector<1x128xf32>
    %626 = vector.broadcast %625 : vector<1x128xf32> to vector<2x128xf32>
    %627 = arith.addf %623, %626 : vector<2x128xf32>
    %628 = vector.extract_strided_slice %627 {offsets = [0, 0], sizes = [2, 96], strides = [1, 1]} : vector<2x128xf32> to vector<2x96xf32>
    %629 = arith.negf %628 : vector<2x96xf32>
    %630 = math.exp %629 : vector<2x96xf32>
    %cst_194 = arith.constant 1.000000e+00 : f32
    %631 = vector.broadcast %cst_194 : f32 to vector<2x96xf32>
    %632 = arith.addf %631, %630 : vector<2x96xf32>
    %633 = arith.divf %631, %632 : vector<2x96xf32>
    %634 = vector.extract_strided_slice %633 {offsets = [0, 0], sizes = [2, 32], strides = [1, 1]} : vector<2x96xf32> to vector<2x32xf32>
    %635 = vector.extract_strided_slice %633 {offsets = [0, 32], sizes = [2, 32], strides = [1, 1]} : vector<2x96xf32> to vector<2x32xf32>
    %636 = vector.extract_strided_slice %633 {offsets = [0, 64], sizes = [2, 32], strides = [1, 1]} : vector<2x96xf32> to vector<2x32xf32>
    %637 = vector.extract_strided_slice %627 {offsets = [0, 96], sizes = [2, 32], strides = [1, 1]} : vector<2x128xf32> to vector<2x32xf32>
    %638 = math.tanh %637 : vector<2x32xf32>
    %639 = arith.mulf %634, %604 : vector<2x32xf32>
    %640 = arith.mulf %635, %638 : vector<2x32xf32>
    %641 = arith.addf %639, %640 : vector<2x32xf32>
    %642 = arith.index_cast %611 : i32 to index
    %c0_195 = arith.constant 0 : index
    %643 = vector.load %arg8[%642, %c0_195] : memref<16x32xf32, #tpu.memory_space<vmem>>, vector<1x32xf32>
    %644 = vector.broadcast %643 : vector<1x32xf32> to vector<2x32xf32>
    %645 = arith.mulf %641, %644 : vector<2x32xf32>
    %646 = arith.index_cast %611 : i32 to index
    %c0_196 = arith.constant 0 : index
    %647 = vector.load %arg9[%646, %c0_196] : memref<16x32xf32, #tpu.memory_space<vmem>>, vector<1x32xf32>
    %648 = vector.broadcast %647 : vector<1x32xf32> to vector<2x32xf32>
    %649 = arith.addf %645, %648 : vector<2x32xf32>
    %650 = math.tanh %649 : vector<2x32xf32>
    %651 = arith.mulf %636, %650 : vector<2x32xf32>
    %c0_197 = arith.constant 0 : index
    %652 = arith.index_cast %610 : i32 to index
    %c0_198 = arith.constant 0 : index
    %653 = vector.load %arg10[%c0_197, %652, %c0_198] : memref<1x16x1xf32, #tpu.memory_space<vmem>>, vector<1x2x1xf32>
    %654 = vector.shape_cast %653 : vector<1x2x1xf32> to vector<2x1xf32>
    %655 = arith.subf %651, %600 : vector<2x32xf32>
    %656 = vector.broadcast %654 : vector<2x1xf32> to vector<2x32xf32>
    %657 = arith.mulf %656, %655 : vector<2x32xf32>
    %658 = arith.addf %600, %657 : vector<2x32xf32>
    %659 = arith.subf %641, %604 : vector<2x32xf32>
    %660 = vector.broadcast %654 : vector<2x1xf32> to vector<2x32xf32>
    %661 = arith.mulf %660, %659 : vector<2x32xf32>
    %662 = arith.addf %604, %661 : vector<2x32xf32>
    %c0_199 = arith.constant 0 : index
    %663 = arith.index_cast %610 : i32 to index
    %c0_200 = arith.constant 0 : index
    %664 = vector.load %arg13[%c0_199, %663, %c0_200] : memref<1x16x32xf32, #tpu.memory_space<vmem>>, vector<1x2x32xf32>
    %665 = vector.shape_cast %664 : vector<1x2x32xf32> to vector<2x32xf32>
    %666 = vector.shape_cast %658 : vector<2x32xf32> to vector<1x2x32xf32>
    tpu.vector_store %arg13[%c0_199, %663, %c0_200], %666 {strides = array<i32>} : memref<1x16x32xf32, #tpu.memory_space<vmem>>, vector<1x2x32xf32>,
    %c3_i32_201 = arith.constant 3 : i32
    %c2_i32_202 = arith.constant 2 : i32
    %667 = arith.muli %c3_i32_201, %c2_i32_202 : i32
    %668 = tpu.assume_multiple %667, 2 : i32
    %c8_i32_203 = arith.constant 8 : i32
    %669 = arith.addi %c8_i32_203, %c3_i32_201 : i32
    %670 = arith.index_cast %668 : i32 to index
    %c0_204 = arith.constant 0 : index
    %671 = vector.load %arg16[%670, %c0_204] : memref<16x128xf32, #tpu.memory_space<vmem>>, vector<2x128xf32>
    %cst_205 = arith.constant dense<0.000000e+00> : vector<2x128xf32>
    %672 = tpu.matmul %658, %488, %cst_205 {dimension_numbers = #tpu.dot_dimension_numbers<[1], [0], [0], [1], [0, 0, 1, 1], [], []>} : vector<2x32xf32>, vector<32x128xf32>, vector<2x128xf32> -> vector<2x128xf32>
    %673 = arith.index_cast %669 : i32 to index
    %c0_206 = arith.constant 0 : index
    %674 = vector.load %arg5[%673, %c0_206] : memref<16x128xf32, #tpu.memory_space<vmem>>, vector<1x128xf32>
    %675 = vector.broadcast %674 : vector<1x128xf32> to vector<2x128xf32>
    %676 = arith.mulf %671, %675 : vector<2x128xf32>
    %677 = arith.index_cast %669 : i32 to index
    %c0_207 = arith.constant 0 : index
    %678 = vector.load %arg6[%677, %c0_207] : memref<16x128xf32, #tpu.memory_space<vmem>>, vector<1x128xf32>
    %679 = vector.broadcast %678 : vector<1x128xf32> to vector<2x128xf32>
    %680 = arith.mulf %672, %679 : vector<2x128xf32>
    %681 = arith.addf %676, %680 : vector<2x128xf32>
    %682 = arith.index_cast %669 : i32 to index
    %c0_208 = arith.constant 0 : index
    %683 = vector.load %arg7[%682, %c0_208] : memref<16x128xf32, #tpu.memory_space<vmem>>, vector<1x128xf32>
    %684 = vector.broadcast %683 : vector<1x128xf32> to vector<2x128xf32>
    %685 = arith.addf %681, %684 : vector<2x128xf32>
    %686 = vector.extract_strided_slice %685 {offsets = [0, 0], sizes = [2, 96], strides = [1, 1]} : vector<2x128xf32> to vector<2x96xf32>
    %687 = arith.negf %686 : vector<2x96xf32>
    %688 = math.exp %687 : vector<2x96xf32>
    %cst_209 = arith.constant 1.000000e+00 : f32
    %689 = vector.broadcast %cst_209 : f32 to vector<2x96xf32>
    %690 = arith.addf %689, %688 : vector<2x96xf32>
    %691 = arith.divf %689, %690 : vector<2x96xf32>
    %692 = vector.extract_strided_slice %691 {offsets = [0, 0], sizes = [2, 32], strides = [1, 1]} : vector<2x96xf32> to vector<2x32xf32>
    %693 = vector.extract_strided_slice %691 {offsets = [0, 32], sizes = [2, 32], strides = [1, 1]} : vector<2x96xf32> to vector<2x32xf32>
    %694 = vector.extract_strided_slice %691 {offsets = [0, 64], sizes = [2, 32], strides = [1, 1]} : vector<2x96xf32> to vector<2x32xf32>
    %695 = vector.extract_strided_slice %685 {offsets = [0, 96], sizes = [2, 32], strides = [1, 1]} : vector<2x128xf32> to vector<2x32xf32>
    %696 = math.tanh %695 : vector<2x32xf32>
    %697 = arith.mulf %692, %662 : vector<2x32xf32>
    %698 = arith.mulf %693, %696 : vector<2x32xf32>
    %699 = arith.addf %697, %698 : vector<2x32xf32>
    %700 = arith.index_cast %669 : i32 to index
    %c0_210 = arith.constant 0 : index
    %701 = vector.load %arg8[%700, %c0_210] : memref<16x32xf32, #tpu.memory_space<vmem>>, vector<1x32xf32>
    %702 = vector.broadcast %701 : vector<1x32xf32> to vector<2x32xf32>
    %703 = arith.mulf %699, %702 : vector<2x32xf32>
    %704 = arith.index_cast %669 : i32 to index
    %c0_211 = arith.constant 0 : index
    %705 = vector.load %arg9[%704, %c0_211] : memref<16x32xf32, #tpu.memory_space<vmem>>, vector<1x32xf32>
    %706 = vector.broadcast %705 : vector<1x32xf32> to vector<2x32xf32>
    %707 = arith.addf %703, %706 : vector<2x32xf32>
    %708 = math.tanh %707 : vector<2x32xf32>
    %709 = arith.mulf %694, %708 : vector<2x32xf32>
    %c0_212 = arith.constant 0 : index
    %710 = arith.index_cast %668 : i32 to index
    %c0_213 = arith.constant 0 : index
    %711 = vector.load %arg10[%c0_212, %710, %c0_213] : memref<1x16x1xf32, #tpu.memory_space<vmem>>, vector<1x2x1xf32>
    %712 = vector.shape_cast %711 : vector<1x2x1xf32> to vector<2x1xf32>
    %713 = arith.subf %709, %658 : vector<2x32xf32>
    %714 = vector.broadcast %712 : vector<2x1xf32> to vector<2x32xf32>
    %715 = arith.mulf %714, %713 : vector<2x32xf32>
    %716 = arith.addf %658, %715 : vector<2x32xf32>
    %717 = arith.subf %699, %662 : vector<2x32xf32>
    %718 = vector.broadcast %712 : vector<2x1xf32> to vector<2x32xf32>
    %719 = arith.mulf %718, %717 : vector<2x32xf32>
    %720 = arith.addf %662, %719 : vector<2x32xf32>
    %c0_214 = arith.constant 0 : index
    %721 = arith.index_cast %668 : i32 to index
    %c0_215 = arith.constant 0 : index
    %722 = vector.load %arg13[%c0_214, %721, %c0_215] : memref<1x16x32xf32, #tpu.memory_space<vmem>>, vector<1x2x32xf32>
    %723 = vector.shape_cast %722 : vector<1x2x32xf32> to vector<2x32xf32>
    %724 = vector.shape_cast %716 : vector<2x32xf32> to vector<1x2x32xf32>
    tpu.vector_store %arg13[%c0_214, %721, %c0_215], %724 {strides = array<i32>} : memref<1x16x32xf32, #tpu.memory_space<vmem>>, vector<1x2x32xf32>,
    %c4_i32_216 = arith.constant 4 : i32
    %c2_i32_217 = arith.constant 2 : i32
    %725 = arith.muli %c4_i32_216, %c2_i32_217 : i32
    %726 = tpu.assume_multiple %725, 2 : i32
    %c8_i32_218 = arith.constant 8 : i32
    %727 = arith.addi %c8_i32_218, %c4_i32_216 : i32
    %728 = arith.index_cast %726 : i32 to index
    %c0_219 = arith.constant 0 : index
    %729 = vector.load %arg16[%728, %c0_219] : memref<16x128xf32, #tpu.memory_space<vmem>>, vector<2x128xf32>
    %cst_220 = arith.constant dense<0.000000e+00> : vector<2x128xf32>
    %730 = tpu.matmul %716, %488, %cst_220 {dimension_numbers = #tpu.dot_dimension_numbers<[1], [0], [0], [1], [0, 0, 1, 1], [], []>} : vector<2x32xf32>, vector<32x128xf32>, vector<2x128xf32> -> vector<2x128xf32>
    %731 = arith.index_cast %727 : i32 to index
    %c0_221 = arith.constant 0 : index
    %732 = vector.load %arg5[%731, %c0_221] : memref<16x128xf32, #tpu.memory_space<vmem>>, vector<1x128xf32>
    %733 = vector.broadcast %732 : vector<1x128xf32> to vector<2x128xf32>
    %734 = arith.mulf %729, %733 : vector<2x128xf32>
    %735 = arith.index_cast %727 : i32 to index
    %c0_222 = arith.constant 0 : index
    %736 = vector.load %arg6[%735, %c0_222] : memref<16x128xf32, #tpu.memory_space<vmem>>, vector<1x128xf32>
    %737 = vector.broadcast %736 : vector<1x128xf32> to vector<2x128xf32>
    %738 = arith.mulf %730, %737 : vector<2x128xf32>
    %739 = arith.addf %734, %738 : vector<2x128xf32>
    %740 = arith.index_cast %727 : i32 to index
    %c0_223 = arith.constant 0 : index
    %741 = vector.load %arg7[%740, %c0_223] : memref<16x128xf32, #tpu.memory_space<vmem>>, vector<1x128xf32>
    %742 = vector.broadcast %741 : vector<1x128xf32> to vector<2x128xf32>
    %743 = arith.addf %739, %742 : vector<2x128xf32>
    %744 = vector.extract_strided_slice %743 {offsets = [0, 0], sizes = [2, 96], strides = [1, 1]} : vector<2x128xf32> to vector<2x96xf32>
    %745 = arith.negf %744 : vector<2x96xf32>
    %746 = math.exp %745 : vector<2x96xf32>
    %cst_224 = arith.constant 1.000000e+00 : f32
    %747 = vector.broadcast %cst_224 : f32 to vector<2x96xf32>
    %748 = arith.addf %747, %746 : vector<2x96xf32>
    %749 = arith.divf %747, %748 : vector<2x96xf32>
    %750 = vector.extract_strided_slice %749 {offsets = [0, 0], sizes = [2, 32], strides = [1, 1]} : vector<2x96xf32> to vector<2x32xf32>
    %751 = vector.extract_strided_slice %749 {offsets = [0, 32], sizes = [2, 32], strides = [1, 1]} : vector<2x96xf32> to vector<2x32xf32>
    %752 = vector.extract_strided_slice %749 {offsets = [0, 64], sizes = [2, 32], strides = [1, 1]} : vector<2x96xf32> to vector<2x32xf32>
    %753 = vector.extract_strided_slice %743 {offsets = [0, 96], sizes = [2, 32], strides = [1, 1]} : vector<2x128xf32> to vector<2x32xf32>
    %754 = math.tanh %753 : vector<2x32xf32>
    %755 = arith.mulf %750, %720 : vector<2x32xf32>
    %756 = arith.mulf %751, %754 : vector<2x32xf32>
    %757 = arith.addf %755, %756 : vector<2x32xf32>
    %758 = arith.index_cast %727 : i32 to index
    %c0_225 = arith.constant 0 : index
    %759 = vector.load %arg8[%758, %c0_225] : memref<16x32xf32, #tpu.memory_space<vmem>>, vector<1x32xf32>
    %760 = vector.broadcast %759 : vector<1x32xf32> to vector<2x32xf32>
    %761 = arith.mulf %757, %760 : vector<2x32xf32>
    %762 = arith.index_cast %727 : i32 to index
    %c0_226 = arith.constant 0 : index
    %763 = vector.load %arg9[%762, %c0_226] : memref<16x32xf32, #tpu.memory_space<vmem>>, vector<1x32xf32>
    %764 = vector.broadcast %763 : vector<1x32xf32> to vector<2x32xf32>
    %765 = arith.addf %761, %764 : vector<2x32xf32>
    %766 = math.tanh %765 : vector<2x32xf32>
    %767 = arith.mulf %752, %766 : vector<2x32xf32>
    %c0_227 = arith.constant 0 : index
    %768 = arith.index_cast %726 : i32 to index
    %c0_228 = arith.constant 0 : index
    %769 = vector.load %arg10[%c0_227, %768, %c0_228] : memref<1x16x1xf32, #tpu.memory_space<vmem>>, vector<1x2x1xf32>
    %770 = vector.shape_cast %769 : vector<1x2x1xf32> to vector<2x1xf32>
    %771 = arith.subf %767, %716 : vector<2x32xf32>
    %772 = vector.broadcast %770 : vector<2x1xf32> to vector<2x32xf32>
    %773 = arith.mulf %772, %771 : vector<2x32xf32>
    %774 = arith.addf %716, %773 : vector<2x32xf32>
    %775 = arith.subf %757, %720 : vector<2x32xf32>
    %776 = vector.broadcast %770 : vector<2x1xf32> to vector<2x32xf32>
    %777 = arith.mulf %776, %775 : vector<2x32xf32>
    %778 = arith.addf %720, %777 : vector<2x32xf32>
    %c0_229 = arith.constant 0 : index
    %779 = arith.index_cast %726 : i32 to index
    %c0_230 = arith.constant 0 : index
    %780 = vector.load %arg13[%c0_229, %779, %c0_230] : memref<1x16x32xf32, #tpu.memory_space<vmem>>, vector<1x2x32xf32>
    %781 = vector.shape_cast %780 : vector<1x2x32xf32> to vector<2x32xf32>
    %782 = vector.shape_cast %774 : vector<2x32xf32> to vector<1x2x32xf32>
    tpu.vector_store %arg13[%c0_229, %779, %c0_230], %782 {strides = array<i32>} : memref<1x16x32xf32, #tpu.memory_space<vmem>>, vector<1x2x32xf32>,
    %c5_i32_231 = arith.constant 5 : i32
    %c2_i32_232 = arith.constant 2 : i32
    %783 = arith.muli %c5_i32_231, %c2_i32_232 : i32
    %784 = tpu.assume_multiple %783, 2 : i32
    %c8_i32_233 = arith.constant 8 : i32
    %785 = arith.addi %c8_i32_233, %c5_i32_231 : i32
    %786 = arith.index_cast %784 : i32 to index
    %c0_234 = arith.constant 0 : index
    %787 = vector.load %arg16[%786, %c0_234] : memref<16x128xf32, #tpu.memory_space<vmem>>, vector<2x128xf32>
    %cst_235 = arith.constant dense<0.000000e+00> : vector<2x128xf32>
    %788 = tpu.matmul %774, %488, %cst_235 {dimension_numbers = #tpu.dot_dimension_numbers<[1], [0], [0], [1], [0, 0, 1, 1], [], []>} : vector<2x32xf32>, vector<32x128xf32>, vector<2x128xf32> -> vector<2x128xf32>
    %789 = arith.index_cast %785 : i32 to index
    %c0_236 = arith.constant 0 : index
    %790 = vector.load %arg5[%789, %c0_236] : memref<16x128xf32, #tpu.memory_space<vmem>>, vector<1x128xf32>
    %791 = vector.broadcast %790 : vector<1x128xf32> to vector<2x128xf32>
    %792 = arith.mulf %787, %791 : vector<2x128xf32>
    %793 = arith.index_cast %785 : i32 to index
    %c0_237 = arith.constant 0 : index
    %794 = vector.load %arg6[%793, %c0_237] : memref<16x128xf32, #tpu.memory_space<vmem>>, vector<1x128xf32>
    %795 = vector.broadcast %794 : vector<1x128xf32> to vector<2x128xf32>
    %796 = arith.mulf %788, %795 : vector<2x128xf32>
    %797 = arith.addf %792, %796 : vector<2x128xf32>
    %798 = arith.index_cast %785 : i32 to index
    %c0_238 = arith.constant 0 : index
    %799 = vector.load %arg7[%798, %c0_238] : memref<16x128xf32, #tpu.memory_space<vmem>>, vector<1x128xf32>
    %800 = vector.broadcast %799 : vector<1x128xf32> to vector<2x128xf32>
    %801 = arith.addf %797, %800 : vector<2x128xf32>
    %802 = vector.extract_strided_slice %801 {offsets = [0, 0], sizes = [2, 96], strides = [1, 1]} : vector<2x128xf32> to vector<2x96xf32>
    %803 = arith.negf %802 : vector<2x96xf32>
    %804 = math.exp %803 : vector<2x96xf32>
    %cst_239 = arith.constant 1.000000e+00 : f32
    %805 = vector.broadcast %cst_239 : f32 to vector<2x96xf32>
    %806 = arith.addf %805, %804 : vector<2x96xf32>
    %807 = arith.divf %805, %806 : vector<2x96xf32>
    %808 = vector.extract_strided_slice %807 {offsets = [0, 0], sizes = [2, 32], strides = [1, 1]} : vector<2x96xf32> to vector<2x32xf32>
    %809 = vector.extract_strided_slice %807 {offsets = [0, 32], sizes = [2, 32], strides = [1, 1]} : vector<2x96xf32> to vector<2x32xf32>
    %810 = vector.extract_strided_slice %807 {offsets = [0, 64], sizes = [2, 32], strides = [1, 1]} : vector<2x96xf32> to vector<2x32xf32>
    %811 = vector.extract_strided_slice %801 {offsets = [0, 96], sizes = [2, 32], strides = [1, 1]} : vector<2x128xf32> to vector<2x32xf32>
    %812 = math.tanh %811 : vector<2x32xf32>
    %813 = arith.mulf %808, %778 : vector<2x32xf32>
    %814 = arith.mulf %809, %812 : vector<2x32xf32>
    %815 = arith.addf %813, %814 : vector<2x32xf32>
    %816 = arith.index_cast %785 : i32 to index
    %c0_240 = arith.constant 0 : index
    %817 = vector.load %arg8[%816, %c0_240] : memref<16x32xf32, #tpu.memory_space<vmem>>, vector<1x32xf32>
    %818 = vector.broadcast %817 : vector<1x32xf32> to vector<2x32xf32>
    %819 = arith.mulf %815, %818 : vector<2x32xf32>
    %820 = arith.index_cast %785 : i32 to index
    %c0_241 = arith.constant 0 : index
    %821 = vector.load %arg9[%820, %c0_241] : memref<16x32xf32, #tpu.memory_space<vmem>>, vector<1x32xf32>
    %822 = vector.broadcast %821 : vector<1x32xf32> to vector<2x32xf32>
    %823 = arith.addf %819, %822 : vector<2x32xf32>
    %824 = math.tanh %823 : vector<2x32xf32>
    %825 = arith.mulf %810, %824 : vector<2x32xf32>
    %c0_242 = arith.constant 0 : index
    %826 = arith.index_cast %784 : i32 to index
    %c0_243 = arith.constant 0 : index
    %827 = vector.load %arg10[%c0_242, %826, %c0_243] : memref<1x16x1xf32, #tpu.memory_space<vmem>>, vector<1x2x1xf32>
    %828 = vector.shape_cast %827 : vector<1x2x1xf32> to vector<2x1xf32>
    %829 = arith.subf %825, %774 : vector<2x32xf32>
    %830 = vector.broadcast %828 : vector<2x1xf32> to vector<2x32xf32>
    %831 = arith.mulf %830, %829 : vector<2x32xf32>
    %832 = arith.addf %774, %831 : vector<2x32xf32>
    %833 = arith.subf %815, %778 : vector<2x32xf32>
    %834 = vector.broadcast %828 : vector<2x1xf32> to vector<2x32xf32>
    %835 = arith.mulf %834, %833 : vector<2x32xf32>
    %836 = arith.addf %778, %835 : vector<2x32xf32>
    %c0_244 = arith.constant 0 : index
    %837 = arith.index_cast %784 : i32 to index
    %c0_245 = arith.constant 0 : index
    %838 = vector.load %arg13[%c0_244, %837, %c0_245] : memref<1x16x32xf32, #tpu.memory_space<vmem>>, vector<1x2x32xf32>
    %839 = vector.shape_cast %838 : vector<1x2x32xf32> to vector<2x32xf32>
    %840 = vector.shape_cast %832 : vector<2x32xf32> to vector<1x2x32xf32>
    tpu.vector_store %arg13[%c0_244, %837, %c0_245], %840 {strides = array<i32>} : memref<1x16x32xf32, #tpu.memory_space<vmem>>, vector<1x2x32xf32>,
    %c6_i32_246 = arith.constant 6 : i32
    %c2_i32_247 = arith.constant 2 : i32
    %841 = arith.muli %c6_i32_246, %c2_i32_247 : i32
    %842 = tpu.assume_multiple %841, 2 : i32
    %c8_i32_248 = arith.constant 8 : i32
    %843 = arith.addi %c8_i32_248, %c6_i32_246 : i32
    %844 = arith.index_cast %842 : i32 to index
    %c0_249 = arith.constant 0 : index
    %845 = vector.load %arg16[%844, %c0_249] : memref<16x128xf32, #tpu.memory_space<vmem>>, vector<2x128xf32>
    %cst_250 = arith.constant dense<0.000000e+00> : vector<2x128xf32>
    %846 = tpu.matmul %832, %488, %cst_250 {dimension_numbers = #tpu.dot_dimension_numbers<[1], [0], [0], [1], [0, 0, 1, 1], [], []>} : vector<2x32xf32>, vector<32x128xf32>, vector<2x128xf32> -> vector<2x128xf32>
    %847 = arith.index_cast %843 : i32 to index
    %c0_251 = arith.constant 0 : index
    %848 = vector.load %arg5[%847, %c0_251] : memref<16x128xf32, #tpu.memory_space<vmem>>, vector<1x128xf32>
    %849 = vector.broadcast %848 : vector<1x128xf32> to vector<2x128xf32>
    %850 = arith.mulf %845, %849 : vector<2x128xf32>
    %851 = arith.index_cast %843 : i32 to index
    %c0_252 = arith.constant 0 : index
    %852 = vector.load %arg6[%851, %c0_252] : memref<16x128xf32, #tpu.memory_space<vmem>>, vector<1x128xf32>
    %853 = vector.broadcast %852 : vector<1x128xf32> to vector<2x128xf32>
    %854 = arith.mulf %846, %853 : vector<2x128xf32>
    %855 = arith.addf %850, %854 : vector<2x128xf32>
    %856 = arith.index_cast %843 : i32 to index
    %c0_253 = arith.constant 0 : index
    %857 = vector.load %arg7[%856, %c0_253] : memref<16x128xf32, #tpu.memory_space<vmem>>, vector<1x128xf32>
    %858 = vector.broadcast %857 : vector<1x128xf32> to vector<2x128xf32>
    %859 = arith.addf %855, %858 : vector<2x128xf32>
    %860 = vector.extract_strided_slice %859 {offsets = [0, 0], sizes = [2, 96], strides = [1, 1]} : vector<2x128xf32> to vector<2x96xf32>
    %861 = arith.negf %860 : vector<2x96xf32>
    %862 = math.exp %861 : vector<2x96xf32>
    %cst_254 = arith.constant 1.000000e+00 : f32
    %863 = vector.broadcast %cst_254 : f32 to vector<2x96xf32>
    %864 = arith.addf %863, %862 : vector<2x96xf32>
    %865 = arith.divf %863, %864 : vector<2x96xf32>
    %866 = vector.extract_strided_slice %865 {offsets = [0, 0], sizes = [2, 32], strides = [1, 1]} : vector<2x96xf32> to vector<2x32xf32>
    %867 = vector.extract_strided_slice %865 {offsets = [0, 32], sizes = [2, 32], strides = [1, 1]} : vector<2x96xf32> to vector<2x32xf32>
    %868 = vector.extract_strided_slice %865 {offsets = [0, 64], sizes = [2, 32], strides = [1, 1]} : vector<2x96xf32> to vector<2x32xf32>
    %869 = vector.extract_strided_slice %859 {offsets = [0, 96], sizes = [2, 32], strides = [1, 1]} : vector<2x128xf32> to vector<2x32xf32>
    %870 = math.tanh %869 : vector<2x32xf32>
    %871 = arith.mulf %866, %836 : vector<2x32xf32>
    %872 = arith.mulf %867, %870 : vector<2x32xf32>
    %873 = arith.addf %871, %872 : vector<2x32xf32>
    %874 = arith.index_cast %843 : i32 to index
    %c0_255 = arith.constant 0 : index
    %875 = vector.load %arg8[%874, %c0_255] : memref<16x32xf32, #tpu.memory_space<vmem>>, vector<1x32xf32>
    %876 = vector.broadcast %875 : vector<1x32xf32> to vector<2x32xf32>
    %877 = arith.mulf %873, %876 : vector<2x32xf32>
    %878 = arith.index_cast %843 : i32 to index
    %c0_256 = arith.constant 0 : index
    %879 = vector.load %arg9[%878, %c0_256] : memref<16x32xf32, #tpu.memory_space<vmem>>, vector<1x32xf32>
    %880 = vector.broadcast %879 : vector<1x32xf32> to vector<2x32xf32>
    %881 = arith.addf %877, %880 : vector<2x32xf32>
    %882 = math.tanh %881 : vector<2x32xf32>
    %883 = arith.mulf %868, %882 : vector<2x32xf32>
    %c0_257 = arith.constant 0 : index
    %884 = arith.index_cast %842 : i32 to index
    %c0_258 = arith.constant 0 : index
    %885 = vector.load %arg10[%c0_257, %884, %c0_258] : memref<1x16x1xf32, #tpu.memory_space<vmem>>, vector<1x2x1xf32>
    %886 = vector.shape_cast %885 : vector<1x2x1xf32> to vector<2x1xf32>
    %887 = arith.subf %883, %832 : vector<2x32xf32>
    %888 = vector.broadcast %886 : vector<2x1xf32> to vector<2x32xf32>
    %889 = arith.mulf %888, %887 : vector<2x32xf32>
    %890 = arith.addf %832, %889 : vector<2x32xf32>
    %891 = arith.subf %873, %836 : vector<2x32xf32>
    %892 = vector.broadcast %886 : vector<2x1xf32> to vector<2x32xf32>
    %893 = arith.mulf %892, %891 : vector<2x32xf32>
    %894 = arith.addf %836, %893 : vector<2x32xf32>
    %c0_259 = arith.constant 0 : index
    %895 = arith.index_cast %842 : i32 to index
    %c0_260 = arith.constant 0 : index
    %896 = vector.load %arg13[%c0_259, %895, %c0_260] : memref<1x16x32xf32, #tpu.memory_space<vmem>>, vector<1x2x32xf32>
    %897 = vector.shape_cast %896 : vector<1x2x32xf32> to vector<2x32xf32>
    %898 = vector.shape_cast %890 : vector<2x32xf32> to vector<1x2x32xf32>
    tpu.vector_store %arg13[%c0_259, %895, %c0_260], %898 {strides = array<i32>} : memref<1x16x32xf32, #tpu.memory_space<vmem>>, vector<1x2x32xf32>,
    %c7_i32_261 = arith.constant 7 : i32
    %c2_i32_262 = arith.constant 2 : i32
    %899 = arith.muli %c7_i32_261, %c2_i32_262 : i32
    %900 = tpu.assume_multiple %899, 2 : i32
    %c8_i32_263 = arith.constant 8 : i32
    %901 = arith.addi %c8_i32_263, %c7_i32_261 : i32
    %902 = arith.index_cast %900 : i32 to index
    %c0_264 = arith.constant 0 : index
    %903 = vector.load %arg16[%902, %c0_264] : memref<16x128xf32, #tpu.memory_space<vmem>>, vector<2x128xf32>
    %cst_265 = arith.constant dense<0.000000e+00> : vector<2x128xf32>
    %904 = tpu.matmul %890, %488, %cst_265 {dimension_numbers = #tpu.dot_dimension_numbers<[1], [0], [0], [1], [0, 0, 1, 1], [], []>} : vector<2x32xf32>, vector<32x128xf32>, vector<2x128xf32> -> vector<2x128xf32>
    %905 = arith.index_cast %901 : i32 to index
    %c0_266 = arith.constant 0 : index
    %906 = vector.load %arg5[%905, %c0_266] : memref<16x128xf32, #tpu.memory_space<vmem>>, vector<1x128xf32>
    %907 = vector.broadcast %906 : vector<1x128xf32> to vector<2x128xf32>
    %908 = arith.mulf %903, %907 : vector<2x128xf32>
    %909 = arith.index_cast %901 : i32 to index
    %c0_267 = arith.constant 0 : index
    %910 = vector.load %arg6[%909, %c0_267] : memref<16x128xf32, #tpu.memory_space<vmem>>, vector<1x128xf32>
    %911 = vector.broadcast %910 : vector<1x128xf32> to vector<2x128xf32>
    %912 = arith.mulf %904, %911 : vector<2x128xf32>
    %913 = arith.addf %908, %912 : vector<2x128xf32>
    %914 = arith.index_cast %901 : i32 to index
    %c0_268 = arith.constant 0 : index
    %915 = vector.load %arg7[%914, %c0_268] : memref<16x128xf32, #tpu.memory_space<vmem>>, vector<1x128xf32>
    %916 = vector.broadcast %915 : vector<1x128xf32> to vector<2x128xf32>
    %917 = arith.addf %913, %916 : vector<2x128xf32>
    %918 = vector.extract_strided_slice %917 {offsets = [0, 0], sizes = [2, 96], strides = [1, 1]} : vector<2x128xf32> to vector<2x96xf32>
    %919 = arith.negf %918 : vector<2x96xf32>
    %920 = math.exp %919 : vector<2x96xf32>
    %cst_269 = arith.constant 1.000000e+00 : f32
    %921 = vector.broadcast %cst_269 : f32 to vector<2x96xf32>
    %922 = arith.addf %921, %920 : vector<2x96xf32>
    %923 = arith.divf %921, %922 : vector<2x96xf32>
    %924 = vector.extract_strided_slice %923 {offsets = [0, 0], sizes = [2, 32], strides = [1, 1]} : vector<2x96xf32> to vector<2x32xf32>
    %925 = vector.extract_strided_slice %923 {offsets = [0, 32], sizes = [2, 32], strides = [1, 1]} : vector<2x96xf32> to vector<2x32xf32>
    %926 = vector.extract_strided_slice %923 {offsets = [0, 64], sizes = [2, 32], strides = [1, 1]} : vector<2x96xf32> to vector<2x32xf32>
    %927 = vector.extract_strided_slice %917 {offsets = [0, 96], sizes = [2, 32], strides = [1, 1]} : vector<2x128xf32> to vector<2x32xf32>
    %928 = math.tanh %927 : vector<2x32xf32>
    %929 = arith.mulf %924, %894 : vector<2x32xf32>
    %930 = arith.mulf %925, %928 : vector<2x32xf32>
    %931 = arith.addf %929, %930 : vector<2x32xf32>
    %932 = arith.index_cast %901 : i32 to index
    %c0_270 = arith.constant 0 : index
    %933 = vector.load %arg8[%932, %c0_270] : memref<16x32xf32, #tpu.memory_space<vmem>>, vector<1x32xf32>
    %934 = vector.broadcast %933 : vector<1x32xf32> to vector<2x32xf32>
    %935 = arith.mulf %931, %934 : vector<2x32xf32>
    %936 = arith.index_cast %901 : i32 to index
    %c0_271 = arith.constant 0 : index
    %937 = vector.load %arg9[%936, %c0_271] : memref<16x32xf32, #tpu.memory_space<vmem>>, vector<1x32xf32>
    %938 = vector.broadcast %937 : vector<1x32xf32> to vector<2x32xf32>
    %939 = arith.addf %935, %938 : vector<2x32xf32>
    %940 = math.tanh %939 : vector<2x32xf32>
    %941 = arith.mulf %926, %940 : vector<2x32xf32>
    %c0_272 = arith.constant 0 : index
    %942 = arith.index_cast %900 : i32 to index
    %c0_273 = arith.constant 0 : index
    %943 = vector.load %arg10[%c0_272, %942, %c0_273] : memref<1x16x1xf32, #tpu.memory_space<vmem>>, vector<1x2x1xf32>
    %944 = vector.shape_cast %943 : vector<1x2x1xf32> to vector<2x1xf32>
    %945 = arith.subf %941, %890 : vector<2x32xf32>
    %946 = vector.broadcast %944 : vector<2x1xf32> to vector<2x32xf32>
    %947 = arith.mulf %946, %945 : vector<2x32xf32>
    %948 = arith.addf %890, %947 : vector<2x32xf32>
    %949 = arith.subf %931, %894 : vector<2x32xf32>
    %950 = vector.broadcast %944 : vector<2x1xf32> to vector<2x32xf32>
    %951 = arith.mulf %950, %949 : vector<2x32xf32>
    %952 = arith.addf %894, %951 : vector<2x32xf32>
    %c0_274 = arith.constant 0 : index
    %953 = arith.index_cast %900 : i32 to index
    %c0_275 = arith.constant 0 : index
    %954 = vector.load %arg13[%c0_274, %953, %c0_275] : memref<1x16x32xf32, #tpu.memory_space<vmem>>, vector<1x2x32xf32>
    %955 = vector.shape_cast %954 : vector<1x2x32xf32> to vector<2x32xf32>
    %956 = vector.shape_cast %948 : vector<2x32xf32> to vector<1x2x32xf32>
    tpu.vector_store %arg13[%c0_274, %953, %c0_275], %956 {strides = array<i32>} : memref<1x16x32xf32, #tpu.memory_space<vmem>>, vector<1x2x32xf32>,
    %c8_i32_276 = arith.constant 8 : i32
    %c0_277 = arith.constant 0 : index
    %c1_278 = arith.constant 1 : index
    %c0_279 = arith.constant 0 : index
    %c0_280 = arith.constant 0 : index
    %957 = vector.load %arg14[%c0_277, %c1_278, %c0_279, %c0_280] : memref<1x2x2x32xf32, #tpu.memory_space<vmem>>, vector<1x1x2x32xf32>
    %958 = vector.shape_cast %957 : vector<1x1x2x32xf32> to vector<2x32xf32>
    %959 = vector.shape_cast %948 : vector<2x32xf32> to vector<1x1x2x32xf32>
    tpu.vector_store %arg14[%c0_277, %c1_278, %c0_279, %c0_280], %959 {strides = array<i32>} : memref<1x2x2x32xf32, #tpu.memory_space<vmem>>, vector<1x1x2x32xf32>,
    %c0_281 = arith.constant 0 : index
    %c1_282 = arith.constant 1 : index
    %c0_283 = arith.constant 0 : index
    %c0_284 = arith.constant 0 : index
    %960 = vector.load %arg15[%c0_281, %c1_282, %c0_283, %c0_284] : memref<1x2x2x32xf32, #tpu.memory_space<vmem>>, vector<1x1x2x32xf32>
    %961 = vector.shape_cast %960 : vector<1x1x2x32xf32> to vector<2x32xf32>
    %962 = vector.shape_cast %952 : vector<2x32xf32> to vector<1x1x2x32xf32>
    tpu.vector_store %arg15[%c0_281, %c1_282, %c0_283, %c0_284], %962 {strides = array<i32>} : memref<1x2x2x32xf32, #tpu.memory_space<vmem>>, vector<1x1x2x32xf32>,
    return
  }
  func.func @transform_0(%arg0: i32) -> (i32, i32, i32) {
    %c0_i32 = arith.constant 0 : i32
    %c0_i32_0 = arith.constant 0 : i32
    %c0_i32_1 = arith.constant 0 : i32
    return %arg0, %c0_i32, %c0_i32_0 : i32, i32, i32
  }
  func.func @transform_1(%arg0: i32) -> (i32, i32) {
    %c0_i32 = arith.constant 0 : i32
    %c0_i32_0 = arith.constant 0 : i32
    %c0_i32_1 = arith.constant 0 : i32
    return %c0_i32, %c0_i32_0 : i32, i32
  }
  func.func @transform_2(%arg0: i32) -> (i32, i32, i32) {
    %c0_i32 = arith.constant 0 : i32
    %c0_i32_0 = arith.constant 0 : i32
    %c0_i32_1 = arith.constant 0 : i32
    %c0_i32_2 = arith.constant 0 : i32
    return %c0_i32, %c0_i32_0, %c0_i32_1 : i32, i32, i32
  }
  func.func @transform_3(%arg0: i32) -> (i32, i32, i32) {
    %c0_i32 = arith.constant 0 : i32
    %c0_i32_0 = arith.constant 0 : i32
    %c0_i32_1 = arith.constant 0 : i32
    %c0_i32_2 = arith.constant 0 : i32
    return %c0_i32, %c0_i32_0, %c0_i32_1 : i32, i32, i32
  }
  func.func @transform_4(%arg0: i32) -> (i32, i32) {
    %c0_i32 = arith.constant 0 : i32
    %c0_i32_0 = arith.constant 0 : i32
    %c0_i32_1 = arith.constant 0 : i32
    return %c0_i32, %c0_i32_0 : i32, i32
  }
  func.func @transform_5(%arg0: i32) -> (i32, i32) {
    %c0_i32 = arith.constant 0 : i32
    %c0_i32_0 = arith.constant 0 : i32
    %c0_i32_1 = arith.constant 0 : i32
    return %c0_i32, %c0_i32_0 : i32, i32
  }
  func.func @transform_6(%arg0: i32) -> (i32, i32) {
    %c0_i32 = arith.constant 0 : i32
    %c0_i32_0 = arith.constant 0 : i32
    %c0_i32_1 = arith.constant 0 : i32
    return %c0_i32, %c0_i32_0 : i32, i32
  }
  func.func @transform_7(%arg0: i32) -> (i32, i32) {
    %c0_i32 = arith.constant 0 : i32
    %c0_i32_0 = arith.constant 0 : i32
    %c0_i32_1 = arith.constant 0 : i32
    return %c0_i32, %c0_i32_0 : i32, i32
  }
  func.func @transform_8(%arg0: i32) -> (i32, i32) {
    %c0_i32 = arith.constant 0 : i32
    %c0_i32_0 = arith.constant 0 : i32
    %c0_i32_1 = arith.constant 0 : i32
    return %c0_i32, %c0_i32_0 : i32, i32
  }
  func.func @transform_9(%arg0: i32) -> (i32, i32, i32) {
    %c0_i32 = arith.constant 0 : i32
    %c0_i32_0 = arith.constant 0 : i32
    %c0_i32_1 = arith.constant 0 : i32
    return %arg0, %c0_i32, %c0_i32_0 : i32, i32, i32
  }
  func.func @transform_10(%arg0: i32) -> (i32, i32, i32, i32) {
    %c0_i32 = arith.constant 0 : i32
    %c0_i32_0 = arith.constant 0 : i32
    %c0_i32_1 = arith.constant 0 : i32
    %c0_i32_2 = arith.constant 0 : i32
    return %arg0, %c0_i32, %c0_i32_0, %c0_i32_1 : i32, i32, i32, i32
  }
  func.func @transform_11(%arg0: i32) -> (i32, i32, i32, i32) {
    %c0_i32 = arith.constant 0 : i32
    %c0_i32_0 = arith.constant 0 : i32
    %c0_i32_1 = arith.constant 0 : i32
    %c0_i32_2 = arith.constant 0 : i32
    return %arg0, %c0_i32, %c0_i32_0, %c0_i32_1 : i32, i32, i32, i32
  }
  func.func @transform_12(%arg0: i32) -> (i32, i32, i32) {
    %c0_i32 = arith.constant 0 : i32
    %c0_i32_0 = arith.constant 0 : i32
    %c0_i32_1 = arith.constant 0 : i32
    return %arg0, %c0_i32, %c0_i32_0 : i32, i32, i32
  }
  func.func @transform_13(%arg0: i32) -> (i32, i32, i32, i32) {
    %c0_i32 = arith.constant 0 : i32
    %c0_i32_0 = arith.constant 0 : i32
    %c0_i32_1 = arith.constant 0 : i32
    %c0_i32_2 = arith.constant 0 : i32
    return %arg0, %c0_i32, %c0_i32_0, %c0_i32_1 : i32, i32, i32, i32
  }
  func.func @transform_14(%arg0: i32) -> (i32, i32, i32, i32) {
    %c0_i32 = arith.constant 0 : i32
    %c0_i32_0 = arith.constant 0 : i32
    %c0_i32_1 = arith.constant 0 : i32
    %c0_i32_2 = arith.constant 0 : i32
    return %arg0, %c0_i32, %c0_i32_0, %c0_i32_1 : i32, i32, i32, i32
  }
}

</mosaic_0001>

<bundles_post_ra>
// kernel: tpu_custom_call.1
= control target key start
LH: loop header
LB: loop body
LE: loop exit
PB: predicated region body
PF: predicated region fallthrough
CT: control target
= control target key end

     0   :  { %20 = vsyncpa [#allocation4], 0  ;;  %s4115_s0 = inlined_call_operand.vmem [shape: f32[1,16,8], index: 0, kind: input, shape index: {}]   ;;  %s4116_s1 = inlined_call_operand.hbm [shape: f32[8,128], index: 1, kind: input, shape index: {}]   ;;  %s4117_s2 = inlined_call_operand.vmem [shape: f32[1,32,128], index: 2, kind: input, shape index: {}]   ;;  %s4118_s3 = inlined_call_operand.hbm [shape: f32[2,32,128], index: 3, kind: input, shape index: {}]   ;;  %s4119_s4 = inlined_call_operand.vmem [shape: f32[16,128], index: 4, kind: input, shape index: {}]   ;;  %s4120_s5 = inlined_call_operand.hbm [shape: f32[16,128], index: 5, kind: input, shape index: {}]   ;;  %s4121_s6 = inlined_call_operand.hbm [shape: f32[16,128], index: 6, kind: input, shape index: {}]   ;;  %s4122_s7 = inlined_call_operand.hbm [shape: f32[16,32], index: 7, kind: input, shape index: {}]   ;;  %s4123_s8 = inlined_call_operand.hbm [shape: f32[16,32], index: 8, kind: input, shape index: {}]   ;;  %s4124_s9 = inlined_call_operand.vmem [shape: f32[1,16,1], index: 9, kind: input, shape index: {}]   ;;  %s4125_s10 = inlined_call_operand.vmem [shape: f32[1,2,2,32], index: 10, kind: input, shape index: {}]   ;;  %s4126_s11 = inlined_call_operand.vmem [shape: f32[1,2,2,32], index: 11, kind: input, shape index: {}]   ;;  %s4127_s12 = inlined_call_operand.hbm [shape: f32[1,16,32], index: 12, kind: output, shape index: {0}]   ;;  %s4128_s13 = inlined_call_operand.hbm [shape: f32[1,2,2,32], index: 13, kind: output, shape index: {1}]   ;;  %s4129_s14 = inlined_call_operand.hbm [shape: f32[1,2,2,32], index: 14, kind: output, shape index: {2}]  }
   0x1   :  { %21 = vsyncpa [#allocation7], 0 }
   0x2   :  { %22 = vsyncpa [#allocation10], 0 }
   0x3   :  { %23 = vsyncpa [#allocation13], 0 }
   0x4   :  { %24 = vsyncpa [#allocation5], 0 }
   0x5   :  { %25 = vsyncpa [#allocation16], 0  ;;  %s3534_s29 = smov [#allocation6]  }
   0x6   :  { %s45_s30 = sshll.u32 %s3534_s29, 4  ;;  %s46_s30 = int_to_ptr.vmem [resolvable:$true] %s45_s30 }
   0x7   :  { %s3350_s15 = scalar_lea.vmem %s46_s30, 1024  ;;  %p3355_p1 = scmp.lt.s32.totalorder %s46_s30, %s46_s30 }
   0x8   :  { %p3351_p0 = scmp.ne.s32.totalorder %s46_s30, %s3350_s15  ;;  %p3356_p2 = scmp.lt.s32.totalorder %s3350_s15, %s3350_s15 }
   0xa   :  { %p3357_p3 = por %p3356_p2, %p3355_p1 }
   0xc   :  { %p3358_p4 = pnand %p3357_p3, %p3351_p0 }
   0xe   :  { %3361 = shalt.err (!%p3358_p4)
}
   0xf   :  { %s3535_s16 = smov 128   ;;  %s3536_s17 = smov 8  }
  0x10   :  { %51 = dma.hbm_to_vmem [thread:$0]  %s4118_s3, 1024, %s46_s30, [#allocation7], %s3535_s16, %s3535_s16, %s3536_s17  }
  0x11   :  { %s3537_s20 = smov [#allocation9]   ;;  %s3538_s22 = smov [#allocation3]  }
  0x12   :  { %s71_s21 = sshll.u32 %s3537_s20, 4  ;;  %s34_s23 = sshll.u32 %s3538_s22, 4  ;;  %s72_s21 = int_to_ptr.vmem [resolvable:$true] %s71_s21  ;;  %s35_s23 = int_to_ptr.vmem [resolvable:$true] %s34_s23 }
  0x13   :  { %s3370_s24 = scalar_lea.vmem %s72_s21, 256  ;;  %p3375_p6 = scmp.lt.s32.totalorder %s72_s21, %s72_s21 }
  0x14   :  { %p3371_p5 = scmp.ne.s32.totalorder %s72_s21, %s3370_s24  ;;  %p3376_p7 = scmp.lt.s32.totalorder %s3370_s24, %s3370_s24 }
  0x16   :  { %p3377_p8 = por %p3376_p7, %p3375_p6 }
  0x18   :  { %p3378_p9 = pnand %p3377_p8, %p3371_p5 }
  0x1a   :  { %3381 = shalt.err (!%p3378_p9)
}
  0x1b   :  { %77 = dma.hbm_to_vmem [thread:$0]  %s4121_s6, 256, %s72_s21, [#allocation10], %s3535_s16, %s3535_s16, %s3536_s17  }
  0x1c   :  { %s3390_s3 = scalar_lea.vmem %s35_s23, 128  ;;  %p3395_p11 = scmp.lt.s32.totalorder %s35_s23, %s35_s23 }
  0x1d   :  { %p3391_p10 = scmp.ne.s32.totalorder %s35_s23, %s3390_s3  ;;  %p3396_p12 = scmp.lt.s32.totalorder %s3390_s3, %s3390_s3 }
  0x1f   :  { %p3397_p13 = por %p3396_p12, %p3395_p11 }
  0x21   :  { %p3398_p0 = pnand %p3397_p13, %p3391_p10 }
  0x23   :  { %3401 = shalt.err (!%p3398_p0)
}
  0x24   :  { %37 = dma.hbm_to_vmem [thread:$0]  %s4116_s1, 128, %s35_s23, [#allocation4]  }
  0x25   :  { %s3539_s29 = smov [#allocation8]   ;;  %s3540_s15 = smov [#allocation11]  }
  0x26   :  { %s59_s30 = sshll.u32 %s3539_s29, 4  ;;  %s83_s18 = sshll.u32 %s3540_s15, 4  ;;  %s60_s30 = int_to_ptr.vmem [resolvable:$true] %s59_s30  ;;  %s84_s18 = int_to_ptr.vmem [resolvable:$true] %s83_s18 }
  0x27   :  { %s3410_s19 = scalar_lea.vmem %s60_s30, 256  ;;  %p3415_p2 = scmp.lt.s32.totalorder %s60_s30, %s60_s30 }
  0x28   :  { %p3411_p1 = scmp.ne.s32.totalorder %s60_s30, %s3410_s19  ;;  %p3416_p3 = scmp.lt.s32.totalorder %s3410_s19, %s3410_s19 }
  0x2a   :  { %p3417_p4 = por %p3416_p3, %p3415_p2 }
  0x2c   :  { %p3418_p5 = pnand %p3417_p4, %p3411_p1 }
  0x2e   :  { %3421 = shalt.err (!%p3418_p5)
}
  0x2f   :  { %65 = dma.hbm_to_vmem [thread:$0]  %s4120_s5, 256, %s60_s30, [#allocation7], %s3535_s16, %s3535_s16, %s3536_s17  }
  0x30   :  { %s3430_s1 = scalar_lea.vmem %s84_s18, 256  ;;  %p3435_p7 = scmp.lt.s32.totalorder %s84_s18, %s84_s18 }
  0x31   :  { %p3431_p6 = scmp.ne.s32.totalorder %s84_s18, %s3430_s1  ;;  %p3436_p8 = scmp.lt.s32.totalorder %s3430_s1, %s3430_s1 }
  0x33   :  { %p3437_p9 = por %p3436_p8, %p3435_p7 }
  0x35   :  { %p3438_p10 = pnand %p3437_p9, %p3431_p6 }
  0x37   :  { %3441 = shalt.err (!%p3438_p10)
}
  0x38   :  { %89 = dma.hbm_to_vmem [thread:$0]  %s4122_s7, 256, %s84_s18, [#allocation10], %s3535_s16, %s3535_s16, %s3536_s17  }
  0x39   :  { %s3541_s23 = smov [#allocation12]  }
  0x3a   :  { %s95_s24 = sshll.u32 %s3541_s23, 4  ;;  %s96_s24 = int_to_ptr.vmem [resolvable:$true] %s95_s24 }
  0x3b   :  { %s3450_s25 = scalar_lea.vmem %s96_s24, 256  ;;  %p3455_p12 = scmp.lt.s32.totalorder %s96_s24, %s96_s24 }
  0x3c   :  { %p3451_p11 = scmp.ne.s32.totalorder %s96_s24, %s3450_s25  ;;  %p3456_p13 = scmp.lt.s32.totalorder %s3450_s25, %s3450_s25 }
  0x3e   :  { %p3457_p0 = por %p3456_p13, %p3455_p12 }
  0x40   :  { %p3458_p1 = pnand %p3457_p0, %p3451_p11 }
  0x42   :  { %3461 = shalt.err (!%p3458_p1)
}
  0x43   :  { %101 = dma.hbm_to_vmem [thread:$0]  %s4123_s8, 256, %s96_s24, [#allocation13], %s3535_s16, %s3535_s16, %s3536_s17  }
  0x44   :  { %3522 = dma.done.wait [#allocation4], 128  }
  0x45   :  { %3523 = vsyncadd [#allocation4], 4294967168 }
  0x46   :  { %3524 = dma.done.wait [#allocation7], 1280  }
  0x47   :  { %3525 = vsyncadd [#allocation7], 4294966016 }
  0x48   :  { %3526 = dma.done.wait [#allocation10], 512  }
  0x49   :  { %3527 = vsyncadd [#allocation10], 4294966784 }
  0x4a   :  { %3528 = dma.done.wait [#allocation13], 256  }
  0x4b   :  { %3529 = vsyncadd [#allocation13], 4294967040  ;;  %v3542_v0 = vmov 0.0   ;;  %vm3543_vm0 = vmmov 0   ;;  %vm129_vm1 = vcmask 64512   ;;  %v128_v1 = vld [vmem:[#allocation3] sm:$0xff] }
  0x4c   :  { %3007 = vmatprep.subr.mxu1 %v3542_v0  ;;  %3015 = vmatprep.mubr.msk.f32.mxu1 %vm3543_vm0, %v3542_v0  ;;  %v126_v2 = vld [vmem:[%s4115_s0] sm:$0xff]  ;;  %v127_v3 = vld [vmem:[%s4115_s0 + $0x8] sm:$0xff]  ;;  %v3669_v4 = vld [vmem:[#allocation6 + $0x18] sm:$0xff]  ;;  %vm220_vm2 = vcmask 261120   ;;  %v3544_v10 = vmov 0   ;;  %s3545_s19 = smov 64  }
  0x4d   :  { %3002 = vmatprep.subr.mxu0 %v128_v1  ;;  %3004 = vmatprep.mubr.msk.f32.mxu0 %vm129_vm1, %v126_v2  ;;  %v3671_v5 = vld [vmem:[#allocation6 + $0x10] sm:$0xff]  ;;  %v3675_v6 = vld [vmem:[#allocation6 + $0x8] sm:$0xff]  ;;  %v3680_v7 = vld [vmem:[#allocation6] sm:$0xff]  ;;  %s3546_s6 = smov 96   ;;  %vm368_vm3 = vcmask 254976   ;;  %s3549_s27 = smov [#allocation17]  }
  0x4e   :  { %3003 = vmatpush3.msra.mxu0 %v128_v1  ;;  %3008 = vmatpush3.msra.mxu1 %v3669_v4  ;;  %v3687_v8 = vld [vmem:[%s4125_s10] sm:$0x3]  ;;  %v2785_v14 = vld [vmem:[#allocation8] ss:$0 sm:$0xff]  ;;  %v2786_v20 = vld [vmem:[#allocation9] ss:$0 sm:$0xff] }
  0x4f   :  { %3005 = vmatmul.mubr.msk.f32.vlgmr.msra.gmra.mxu0 %vm129_vm1, %v127_v3  ;;  %3009 = vmatprep.subr.mxu1 %v3542_v0  ;;  %v349_v9 = vld [vmem:[%s4124_s9] sm:$0x3]  ;;  %v2788_v32 = vld [vmem:[#allocation11] ss:$0 sm:$0xff]  ;;  %v2789_v35 = vld [vmem:[#allocation12] ss:$0 sm:$0xff] }
  0x50   :  { %3010 = vmatpush3.msra.mxu1 %v3671_v5  ;;  %3018 = vmatprep.subr.mxu0 %v3542_v0  ;;  %v2784_v15 = vld [vmem:[%s4119_s4] ss:$0 sm:$0xff]  ;;  %v2791_v48 = vld [vmem:[%s4119_s4 + $0x1] ss:$0 sm:$0xff]  ;;  %v2792_v49 = vld [vmem:[#allocation8 + $0x1] ss:$0 sm:$0xff] }
  0x51   :  { %3011 = vmatprep.subr.mxu1 %v3542_v0  ;;  %3019 = vmatpush3.msra.mxu0 %v3669_v4  ;;  %v218_v30 = vld [vmem:[%s4126_s11] sm:$0x3]  ;;  %v2793_v53 = vld [vmem:[#allocation9 + $0x1] ss:$0 sm:$0xff]  ;;  %v2797_v58 = vld [vmem:[%s4124_s9 + $0x2] sm:$0x3] }
  0x52   :  { %3012 = vmatpush3.msra.mxu1 %v3675_v6  ;;  %3020 = vmatprep.subr.mxu0 %v3542_v0  ;;  %s2759_s0 = sshll.u32 %s3549_s27, 4  ;;  %s4096_s0 = int_to_ptr.vmem [resolvable:$true] %s2759_s0 }
  0x53   :  { %3013 = vmatprep.subr.mxu1 %v3542_v0  ;;  %3021 = vmatpush3.msra.mxu0 %v3671_v5 }
  0x54   :  { %3014 = vmatpush3.msra.mxu1 %v3680_v7  ;;  %3022 = vmatprep.subr.mxu0 %v3542_v0 }
  0x55   :  { %3016 = vmatmul.mubr.msk.f32.vlgmr.msra.gmra.mxu1 %vm220_vm2, %v3687_v8  ;;  %3023 = vmatpush3.msra.mxu0 %v3675_v6 }
  0x56   :  { %3024 = vmatprep.subr.mxu0 %v3542_v0  ;;  %3026 = vmatprep.mubr.msk.f32.mxu0 %vm3543_vm0, %v3542_v0 }
  0x57   :  { %3025 = vmatpush3.msra.mxu0 %v3680_v7  ;;  %3029 = vmatprep.subr.mxu1 %v3542_v0 }
  0x58   :  { %3030 = vmatpush3.msra.mxu1 %v3669_v4  ;;  %3037 = vmatprep.mubr.msk.f32.mxu1 %vm3543_vm0, %v3542_v0 }
  0x59   :  { %3031 = vmatprep.subr.mxu1 %v3542_v0  ;;  %3040 = vmatprep.subr.mxu0 %v3542_v0 }
  0x5a   :  { %3032 = vmatpush3.msra.mxu1 %v3671_v5  ;;  %3212 = vset.pattern.permute.xlu1 %v3544_v10 }
  0x5b   :  { %3033 = vmatprep.subr.mxu1 %v3542_v0  ;;  %3213 = vset.pattern.permute.xlu0 %v3544_v10  ;;  %v2795_v10 = vld [vmem:[#allocation11 + $0x1] ss:$0 sm:$0xff] }
  0x5c   :  { %3034 = vmatpush3.msra.mxu1 %v3675_v6  ;;  %356 = vperm.xlu1 %3212, %v349_v9  }
  0x5d   :  { %3035 = vmatprep.subr.mxu1 %v3542_v0 }
  0x5e   :  { %3036 = vmatpush3.msra.mxu1 %v3680_v7 }
  0x5f   :  { %3051 = vmatprep.subr.mxu1 %v3542_v0 }
  0xd7   :  { %v357_v39 = vpop.permute.xlu1 %356 }
 0x10f   :  { %v3006_v11 = vpop.f32.mrf.mxu0 }
 0x110   :  { %212 = vst [vmem:[#allocation2 + $0x8] sm:$0xff] %v3006_v11 }
 0x111   :  { %v202_v12 = vpop.f32.mrf.mxu0 }
 0x112   :  { %211 = vst [vmem:[#allocation2] sm:$0xff] %v202_v12 }
 0x115   :  { %v290_v13 = vpop.f32.mrf.mxu1 }
 0x116   :  { %v305_v17 = vmul.f32 %v2785_v14, %v290_v13  ;;  %v2796_v13 = vld [vmem:[#allocation12 + $0x1] ss:$0 sm:$0xff] }
 0x117   :  { %v3017_v16 = vpop.f32.mrf.mxu1 }
 0x119   :  { %v219_v18 = vld [vmem:[#allocation2] sm:$0x3]  ;;  %v371_v47 = vld [vmem:[#allocation2 + $0x2] sm:$0x3] }
 0x11a   :  { %v299_v19 = vmul.f32 %v2784_v15, %v219_v18  ;;  %v450_v51 = vmul.f32 %v2791_v48, %v371_v47  ;;  %v2803_v47 = vld [vmem:[#allocation11 + $0x2] ss:$0 sm:$0xff] }
 0x11c   :  { %v306_v21 = vadd.f32 %v305_v17, %v299_v19 }
 0x11e   :  { %v312_v22 = vadd.f32 %v2786_v20, %v306_v21 }
 0x120   :  { %3214 = vtanh.f32 %v312_v22  ;;  %v2787_v24 = vmul.f32 -1.442695, %v312_v22 }
 0x122   :  { %3216 = vpow2.f32 %v2787_v24 }
 0x12d   :  { %v3215_v23 = vpop.eup %3214 }
 0x12e   :  { %322 = vrot.lane.b32.xlu0 %v3215_v23, %s3545_s19 }
 0x12f   :  { %v3217_v25 = vpop.eup %3216 }
 0x130   :  { %v316_v26 = vadd.f32 1.0, %v3217_v25  ;;  %v523_v25 = vld [vmem:[#allocation2 + $0x4] sm:$0x3] }
 0x132   :  { %3218 = vrcp.f32 %v316_v26  ;;  %v2799_v26 = vld [vmem:[%s4119_s4 + $0x2] ss:$0 sm:$0xff] }
 0x13f   :  { %v3219_v27 = vpop.eup %3218 }
 0x140   :  { %v320_v31 = vmul.f32 %v3219_v27, %v218_v30 }
 0x1a0   :  { %v323_v28 = vpop.permute.xlu0 %322 }
 0x1a1   :  { %v325_v29 = vmul.f32 %v3219_v27, %v323_v28 }
 0x1a3   :  { %327 = vrot.lane.b32.xlu0 %v325_v29, %s3546_s6  ;;  %v602_v29 = vmul.f32 %v2799_v26, %v523_v25  ;;  %v2811_v25 = vld [vmem:[#allocation11 + $0x3] ss:$0 sm:$0xff] }
 0x1a7   :  { %350 = vrot.lane.b32.xlu0 %v3687_v8, %s3545_s19 }
 0x215   :  { %v328_v33 = vpop.permute.xlu0 %327 }
 0x216   :  { %v330_v34 = vadd.f32 %v328_v33, %v320_v31  ;;  %v2801_v31 = vld [vmem:[#allocation9 + $0x2] ss:$0 sm:$0xff] }
 0x218   :  { %v336_v36 = vmul.f32 %v2788_v32, %v330_v34  ;;  %v365_v2 = vsub.f32 %v330_v34, %v218_v30 }
 0x219   :  { %v351_v41 = vpop.permute.xlu0 %350 }
 0x21a   :  { %v342_v37 = vadd.f32 %v2789_v35, %v336_v36  ;;  %v366_v3 = vmul.f32 %v365_v2, %v357_v39  ;;  %v2805_v36 = vld [vmem:[%s4124_s9 + $0x4] sm:$0x3] }
 0x21c   :  { %3220 = vtanh.f32 %v342_v37 }
 0x229   :  { %v3221_v38 = vpop.eup %3220 }
 0x22a   :  { %345 = vrot.lane.b32.xlu1 %v3221_v38, %s3545_s19 }
 0x29c   :  { %v346_v40 = vpop.permute.xlu1 %345 }
 0x29d   :  { %v348_v42 = vmul.f32 %v3219_v27, %v346_v40  ;;  %v2800_v27 = vld [vmem:[#allocation8 + $0x2] ss:$0 sm:$0xff] }
 0x29f   :  { %v353_v43 = vsub.f32 %v348_v42, %v351_v41 }
 0x2a1   :  { %v359_v44 = vmul.f32 %v357_v39, %v353_v43 }
 0x2a3   :  { %361 = vrot.lane.b32.xlu1 %v359_v44, %s3545_s19 }
 0x315   :  { %v362_v45 = vpop.permute.xlu1 %361 }
 0x316   :  { %v364_v46 = vadd.f32 %v362_v45, %v3687_v8  ;;  %v367_v8 = vadd.f32 %v366_v3, %v218_v30 }
 0x318   :  { %369 = vst.msk [vmem:[#allocation14] sm:$0x3] %vm368_vm3, %v364_v46  ;;  %3027 = vmatmul.mubr.msk.f32.vlgmr.msra.gmra.mxu0 %vm220_vm2, %v364_v46 }
 0x319   :  { %3041 = vmatpush3.msra.mxu0 %v3669_v4  ;;  %3048 = vmatprep.mubr.msk.f32.mxu0 %vm3543_vm0, %v3542_v0 }
 0x31a   :  { %3042 = vmatprep.subr.mxu0 %v3542_v0 }
 0x31b   :  { %3043 = vmatpush3.msra.mxu0 %v3671_v5 }
 0x31c   :  { %3044 = vmatprep.subr.mxu0 %v3542_v0 }
 0x31d   :  { %3045 = vmatpush3.msra.mxu0 %v3675_v6 }
 0x31e   :  { %3046 = vmatprep.subr.mxu0 %v3542_v0 }
 0x31f   :  { %3047 = vmatpush3.msra.mxu0 %v3680_v7 }
 0x320   :  { %3062 = vmatprep.subr.mxu0 %v3542_v0 }
 0x3d8   :  { %v441_v50 = vpop.f32.mrf.mxu0 }
 0x3d9   :  { %v456_v52 = vmul.f32 %v2792_v49, %v441_v50  ;;  %v2804_v50 = vld [vmem:[#allocation12 + $0x2] ss:$0 sm:$0xff] }
 0x3da   :  { %v3028_v54 = vpop.f32.mrf.mxu0 }
 0x3db   :  { %v457_v55 = vadd.f32 %v456_v52, %v450_v51 }
 0x3dd   :  { %v463_v56 = vadd.f32 %v2793_v53, %v457_v55 }
 0x3df   :  { %3222 = vtanh.f32 %v463_v56  ;;  %v2794_v59 = vmul.f32 -1.442695, %v463_v56 }
 0x3e1   :  { %3224 = vpow2.f32 %v2794_v59 }
 0x3ec   :  { %v3223_v57 = vpop.eup %3222 }
 0x3ed   :  { %473 = vrot.lane.b32.xlu0 %v3223_v57, %s3545_s19 }
 0x3ee   :  { %v3225_v60 = vpop.eup %3224 }
 0x3ef   :  { %v467_v61 = vadd.f32 1.0, %v3225_v60 }
 0x3f1   :  { %508 = vperm.xlu0 %3213, %v2797_v58   ;;  %3226 = vrcp.f32 %v467_v61 }
 0x3fe   :  { %v3227_v62 = vpop.eup %3226 }
 0x3ff   :  { %v471_v9 = vmul.f32 %v3227_v62, %v367_v8 }
 0x45f   :  { %v474_v63 = vpop.permute.xlu0 %473 }
 0x460   :  { %v476_v1 = vmul.f32 %v3227_v62, %v474_v63  ;;  %v2807_v63 = vld [vmem:[%s4119_s4 + $0x3] ss:$0 sm:$0xff] }
 0x462   :  { %478 = vrot.lane.b32.xlu1 %v476_v1, %s3546_s6  ;;  %v2808_v1 = vld [vmem:[#allocation8 + $0x3] ss:$0 sm:$0xff] }
 0x46c   :  { %v509_v21 = vpop.permute.xlu0 %508 }
 0x4d4   :  { %v479_v11 = vpop.permute.xlu1 %478 }
 0x4d5   :  { %v481_v12 = vadd.f32 %v479_v11, %v471_v9  ;;  %v2809_v9 = vld [vmem:[#allocation9 + $0x3] ss:$0 sm:$0xff] }
 0x4d7   :  { %v487_v14 = vmul.f32 %v2795_v10, %v481_v12  ;;  %v517_v43 = vsub.f32 %v481_v12, %v367_v8 }
 0x4d9   :  { %v493_v15 = vadd.f32 %v2796_v13, %v487_v14  ;;  %v518_v44 = vmul.f32 %v517_v43, %v509_v21  ;;  %v2813_v14 = vld [vmem:[%s4124_s9 + $0x6] sm:$0x3] }
 0x4db   :  { %3228 = vtanh.f32 %v493_v15  ;;  %v519_v45 = vadd.f32 %v518_v44, %v367_v8 }
 0x4e8   :  { %v3229_v16 = vpop.eup %3228 }
 0x4e9   :  { %496 = vrot.lane.b32.xlu1 %v3229_v16, %s3545_s19 }
 0x4ed   :  { %502 = vrot.lane.b32.xlu1 %v364_v46, %s3545_s19 }
 0x55b   :  { %v497_v17 = vpop.permute.xlu1 %496 }
 0x55c   :  { %v499_v18 = vmul.f32 %v3227_v62, %v497_v17  ;;  %v675_v62 = vld [vmem:[#allocation2 + $0x6] sm:$0x3] }
 0x55d   :  { %v754_v3 = vmul.f32 %v2807_v63, %v675_v62  ;;  %v2819_v62 = vld [vmem:[#allocation11 + $0x4] ss:$0 sm:$0xff] }
 0x55f   :  { %v503_v19 = vpop.permute.xlu1 %502 }
 0x560   :  { %v505_v20 = vsub.f32 %v499_v18, %v503_v19 }
 0x562   :  { %v511_v22 = vmul.f32 %v509_v21, %v505_v20 }
 0x564   :  { %513 = vrot.lane.b32.xlu0 %v511_v22, %s3545_s19 }
 0x5d6   :  { %v514_v23 = vpop.permute.xlu0 %513 }
 0x5d7   :  { %v516_v24 = vadd.f32 %v514_v23, %v364_v46 }
 0x5d9   :  { %521 = vst.msk [vmem:[#allocation14 + $0x2] sm:$0x3] %vm368_vm3, %v516_v24  ;;  %3038 = vmatmul.mubr.msk.f32.vlgmr.msra.gmra.mxu1 %vm220_vm2, %v516_v24 }
 0x5da   :  { %3052 = vmatpush3.msra.mxu1 %v3669_v4  ;;  %3059 = vmatprep.mubr.msk.f32.mxu1 %vm3543_vm0, %v3542_v0 }
 0x5db   :  { %3053 = vmatprep.subr.mxu1 %v3542_v0 }
 0x5dc   :  { %3054 = vmatpush3.msra.mxu1 %v3671_v5 }
 0x5dd   :  { %3055 = vmatprep.subr.mxu1 %v3542_v0 }
 0x5de   :  { %3056 = vmatpush3.msra.mxu1 %v3675_v6 }
 0x5df   :  { %3057 = vmatprep.subr.mxu1 %v3542_v0 }
 0x5e0   :  { %3058 = vmatpush3.msra.mxu1 %v3680_v7 }
 0x5e1   :  { %3073 = vmatprep.subr.mxu1 %v3542_v0 }
 0x699   :  { %v593_v28 = vpop.f32.mrf.mxu1 }
 0x69a   :  { %v608_v30 = vmul.f32 %v2800_v27, %v593_v28  ;;  %v2812_v28 = vld [vmem:[#allocation12 + $0x3] ss:$0 sm:$0xff] }
 0x69b   :  { %v3039_v32 = vpop.f32.mrf.mxu1 }
 0x69c   :  { %v609_v33 = vadd.f32 %v608_v30, %v602_v29 }
 0x69e   :  { %v615_v34 = vadd.f32 %v2801_v31, %v609_v33 }
 0x6a0   :  { %3230 = vtanh.f32 %v615_v34  ;;  %v2802_v37 = vmul.f32 -1.442695, %v615_v34 }
 0x6a2   :  { %3232 = vpow2.f32 %v2802_v37 }
 0x6ad   :  { %v3231_v35 = vpop.eup %3230 }
 0x6ae   :  { %625 = vrot.lane.b32.xlu1 %v3231_v35, %s3545_s19 }
 0x6af   :  { %v3233_v38 = vpop.eup %3232 }
 0x6b0   :  { %v619_v39 = vadd.f32 1.0, %v3233_v38 }
 0x6b2   :  { %660 = vperm.xlu1 %3212, %v2805_v36   ;;  %3234 = vrcp.f32 %v619_v39 }
 0x6b6   :  { %654 = vrot.lane.b32.xlu1 %v516_v24, %s3545_s19 }
 0x6bf   :  { %v3235_v40 = vpop.eup %3234 }
 0x6c0   :  { %v623_v46 = vmul.f32 %v3235_v40, %v519_v45 }
 0x720   :  { %v626_v41 = vpop.permute.xlu1 %625 }
 0x721   :  { %v628_v42 = vmul.f32 %v3235_v40, %v626_v41  ;;  %v2815_v41 = vld [vmem:[%s4119_s4 + $0x4] ss:$0 sm:$0xff] }
 0x723   :  { %630 = vrot.lane.b32.xlu0 %v628_v42, %s3546_s6  ;;  %v2816_v42 = vld [vmem:[#allocation8 + $0x4] ss:$0 sm:$0xff] }
 0x72d   :  { %v661_v54 = vpop.permute.xlu1 %660 }
 0x731   :  { %v655_v57 = vpop.permute.xlu1 %654 }
 0x795   :  { %v631_v48 = vpop.permute.xlu0 %630 }
 0x796   :  { %v633_v49 = vadd.f32 %v631_v48, %v623_v46  ;;  %v2817_v46 = vld [vmem:[#allocation9 + $0x4] ss:$0 sm:$0xff] }
 0x798   :  { %v639_v51 = vmul.f32 %v2803_v47, %v633_v49  ;;  %v669_v21 = vsub.f32 %v633_v49, %v519_v45 }
 0x79a   :  { %v645_v52 = vadd.f32 %v2804_v50, %v639_v51  ;;  %v670_v22 = vmul.f32 %v669_v21, %v661_v54  ;;  %v2821_v51 = vld [vmem:[%s4124_s9 + $0x8] sm:$0x3] }
 0x79c   :  { %3236 = vtanh.f32 %v645_v52  ;;  %v671_v23 = vadd.f32 %v670_v22, %v519_v45 }
 0x7a9   :  { %v3237_v53 = vpop.eup %3236 }
 0x7aa   :  { %648 = vrot.lane.b32.xlu0 %v3237_v53, %s3545_s19 }
 0x81c   :  { %v649_v55 = vpop.permute.xlu0 %648 }
 0x81d   :  { %v651_v56 = vmul.f32 %v3235_v40, %v649_v55  ;;  %v827_v40 = vld [vmem:[#allocation2 + $0x8] sm:$0x3] }
 0x81e   :  { %v906_v44 = vmul.f32 %v2815_v41, %v827_v40 }
 0x81f   :  { %v657_v58 = vsub.f32 %v651_v56, %v655_v57 }
 0x821   :  { %v663_v59 = vmul.f32 %v661_v54, %v657_v58 }
 0x823   :  { %665 = vrot.lane.b32.xlu0 %v663_v59, %s3545_s19 }
 0x895   :  { %v666_v60 = vpop.permute.xlu0 %665 }
 0x896   :  { %v668_v61 = vadd.f32 %v666_v60, %v516_v24 }
 0x898   :  { %673 = vst.msk [vmem:[#allocation14 + $0x4] sm:$0x3] %vm368_vm3, %v668_v61  ;;  %3049 = vmatmul.mubr.msk.f32.vlgmr.msra.gmra.mxu0 %vm220_vm2, %v668_v61 }
 0x899   :  { %3063 = vmatpush3.msra.mxu0 %v3669_v4  ;;  %3070 = vmatprep.mubr.msk.f32.mxu0 %vm3543_vm0, %v3542_v0 }
 0x89a   :  { %3064 = vmatprep.subr.mxu0 %v3542_v0 }
 0x89b   :  { %3065 = vmatpush3.msra.mxu0 %v3671_v5 }
 0x89c   :  { %3066 = vmatprep.subr.mxu0 %v3542_v0 }
 0x89d   :  { %3067 = vmatpush3.msra.mxu0 %v3675_v6 }
 0x89e   :  { %3068 = vmatprep.subr.mxu0 %v3542_v0 }
 0x89f   :  { %3069 = vmatpush3.msra.mxu0 %v3680_v7 }
 0x8a0   :  { %3084 = vmatprep.subr.mxu0 %v3542_v0 }
 0x958   :  { %v745_v2 = vpop.f32.mrf.mxu0 }
 0x959   :  { %v760_v8 = vmul.f32 %v2808_v1, %v745_v2  ;;  %v2820_v2 = vld [vmem:[#allocation12 + $0x4] ss:$0 sm:$0xff] }
 0x95a   :  { %v3050_v10 = vpop.f32.mrf.mxu0 }
 0x95b   :  { %v761_v11 = vadd.f32 %v760_v8, %v754_v3 }
 0x95d   :  { %v767_v12 = vadd.f32 %v2809_v9, %v761_v11 }
 0x95f   :  { %3238 = vtanh.f32 %v767_v12  ;;  %v2810_v15 = vmul.f32 -1.442695, %v767_v12 }
 0x961   :  { %3240 = vpow2.f32 %v2810_v15 }
 0x96c   :  { %v3239_v13 = vpop.eup %3238 }
 0x96d   :  { %777 = vrot.lane.b32.xlu1 %v3239_v13, %s3545_s19 }
 0x96e   :  { %v3241_v16 = vpop.eup %3240 }
 0x96f   :  { %v771_v17 = vadd.f32 1.0, %v3241_v16 }
 0x971   :  { %812 = vperm.xlu1 %3212, %v2813_v14   ;;  %3242 = vrcp.f32 %v771_v17 }
 0x975   :  { %806 = vrot.lane.b32.xlu1 %v668_v61, %s3545_s19 }
 0x97e   :  { %v3243_v18 = vpop.eup %3242 }
 0x97f   :  { %v775_v24 = vmul.f32 %v3243_v18, %v671_v23 }
 0x9df   :  { %v778_v19 = vpop.permute.xlu1 %777 }
 0x9e0   :  { %v780_v20 = vmul.f32 %v3243_v18, %v778_v19  ;;  %v2824_v19 = vld [vmem:[#allocation8 + $0x5] ss:$0 sm:$0xff] }
 0x9e2   :  { %782 = vrot.lane.b32.xlu0 %v780_v20, %s3546_s6 }
 0x9ec   :  { %v813_v32 = vpop.permute.xlu1 %812 }
 0x9f0   :  { %v807_v35 = vpop.permute.xlu1 %806 }
 0xa54   :  { %v783_v26 = vpop.permute.xlu0 %782 }
 0xa55   :  { %v785_v27 = vadd.f32 %v783_v26, %v775_v24 }
 0xa57   :  { %v791_v29 = vmul.f32 %v2811_v25, %v785_v27  ;;  %v821_v58 = vsub.f32 %v785_v27, %v671_v23 }
 0xa59   :  { %v797_v30 = vadd.f32 %v2812_v28, %v791_v29  ;;  %v822_v59 = vmul.f32 %v821_v58, %v813_v32  ;;  %v2833_v58 = vld [vmem:[#allocation9 + $0x6] ss:$0 sm:$0xff] }
 0xa5b   :  { %3244 = vtanh.f32 %v797_v30  ;;  %v823_v60 = vadd.f32 %v822_v59, %v671_v23 }
 0xa68   :  { %v3245_v31 = vpop.eup %3244 }
 0xa69   :  { %800 = vrot.lane.b32.xlu0 %v3245_v31, %s3545_s19 }
 0xadb   :  { %v801_v33 = vpop.permute.xlu0 %800 }
 0xadc   :  { %v803_v34 = vmul.f32 %v3243_v18, %v801_v33  ;;  %v979_v18 = vld [vmem:[#allocation2 + $0xa] sm:$0x3] }
 0xade   :  { %v809_v36 = vsub.f32 %v803_v34, %v807_v35 }
 0xae0   :  { %v815_v37 = vmul.f32 %v813_v32, %v809_v36  ;;  %v2827_v36 = vld [vmem:[#allocation11 + $0x5] ss:$0 sm:$0xff] }
 0xae2   :  { %817 = vrot.lane.b32.xlu0 %v815_v37, %s3545_s19 }
 0xb54   :  { %v818_v38 = vpop.permute.xlu0 %817 }
 0xb55   :  { %v820_v39 = vadd.f32 %v818_v38, %v668_v61 }
 0xb57   :  { %825 = vst.msk [vmem:[#allocation14 + $0x6] sm:$0x3] %vm368_vm3, %v820_v39  ;;  %3060 = vmatmul.mubr.msk.f32.vlgmr.msra.gmra.mxu1 %vm220_vm2, %v820_v39 }
 0xb58   :  { %3074 = vmatpush3.msra.mxu1 %v3669_v4  ;;  %3081 = vmatprep.mubr.msk.f32.mxu1 %vm3543_vm0, %v3542_v0 }
 0xb59   :  { %3075 = vmatprep.subr.mxu1 %v3542_v0 }
 0xb5a   :  { %3076 = vmatpush3.msra.mxu1 %v3671_v5 }
 0xb5b   :  { %3077 = vmatprep.subr.mxu1 %v3542_v0 }
 0xb5c   :  { %3078 = vmatpush3.msra.mxu1 %v3675_v6 }
 0xb5d   :  { %3079 = vmatprep.subr.mxu1 %v3542_v0 }
 0xb5e   :  { %3080 = vmatpush3.msra.mxu1 %v3680_v7 }
 0xc17   :  { %v897_v43 = vpop.f32.mrf.mxu1 }
 0xc18   :  { %v912_v45 = vmul.f32 %v2816_v42, %v897_v43 }
 0xc19   :  { %v3061_v47 = vpop.f32.mrf.mxu1 }
 0xc1a   :  { %v913_v48 = vadd.f32 %v912_v45, %v906_v44 }
 0xc1c   :  { %v919_v49 = vadd.f32 %v2817_v46, %v913_v48 }
 0xc1e   :  { %3246 = vtanh.f32 %v919_v49  ;;  %v2818_v52 = vmul.f32 -1.442695, %v919_v49 }
 0xc20   :  { %3248 = vpow2.f32 %v2818_v52  ;;  %v1131_v52 = vld [vmem:[#allocation2 + $0xc] sm:$0x3] }
 0xc2b   :  { %v3247_v50 = vpop.eup %3246 }
 0xc2c   :  { %929 = vrot.lane.b32.xlu1 %v3247_v50, %s3545_s19 }
 0xc2d   :  { %v3249_v53 = vpop.eup %3248 }
 0xc2e   :  { %v923_v54 = vadd.f32 1.0, %v3249_v53  ;;  %v2831_v53 = vld [vmem:[%s4119_s4 + $0x6] ss:$0 sm:$0xff] }
 0xc30   :  { %964 = vperm.xlu1 %3212, %v2821_v51   ;;  %3250 = vrcp.f32 %v923_v54  ;;  %v1436_v51 = vld [vmem:[#allocation14] sm:$0xff] }
 0xc31   :  { %v2832_v54 = vld [vmem:[#allocation8 + $0x6] ss:$0 sm:$0xff] }
 0xc34   :  { %958 = vrot.lane.b32.xlu1 %v820_v39, %s3545_s19 }
 0xc3d   :  { %v3251_v55 = vpop.eup %3250 }
 0xc3e   :  { %v927_v61 = vmul.f32 %v3251_v55, %v823_v60 }
 0xc9e   :  { %v930_v56 = vpop.permute.xlu1 %929 }
 0xc9f   :  { %v932_v57 = vmul.f32 %v3251_v55, %v930_v56  ;;  %v1210_v56 = vmul.f32 %v2831_v53, %v1131_v52 }
 0xca1   :  { %934 = vrot.lane.b32.xlu0 %v932_v57, %s3546_s6 }
 0xcab   :  { %v965_v10 = vpop.permute.xlu1 %964 }
 0xcaf   :  { %v959_v13 = vpop.permute.xlu1 %958 }
 0xd13   :  { %v935_v63 = vpop.permute.xlu0 %934 }
 0xd14   :  { %v937_v1 = vadd.f32 %v935_v63, %v927_v61  ;;  %v2837_v63 = vld [vmem:[%s4124_s9 + $0xc] sm:$0x3] }
 0xd16   :  { %v943_v3 = vmul.f32 %v2819_v62, %v937_v1  ;;  %v973_v32 = vsub.f32 %v937_v1, %v823_v60 }
 0xd18   :  { %v949_v8 = vadd.f32 %v2820_v2, %v943_v3  ;;  %v974_v33 = vmul.f32 %v973_v32, %v965_v10  ;;  %v2841_v32 = vld [vmem:[#allocation9 + $0x7] ss:$0 sm:$0xff] }
 0xd1a   :  { %3252 = vtanh.f32 %v949_v8  ;;  %v975_v34 = vadd.f32 %v974_v33, %v823_v60 }
 0xd27   :  { %v3253_v9 = vpop.eup %3252 }
 0xd28   :  { %952 = vrot.lane.b32.xlu0 %v3253_v9, %s3545_s19 }
 0xd9a   :  { %v953_v11 = vpop.permute.xlu0 %952 }
 0xd9b   :  { %v955_v12 = vmul.f32 %v3251_v55, %v953_v11 }
 0xd9d   :  { %v961_v14 = vsub.f32 %v955_v12, %v959_v13 }
 0xd9f   :  { %v967_v15 = vmul.f32 %v965_v10, %v961_v14 }
 0xda1   :  { %969 = vrot.lane.b32.xlu0 %v967_v15, %s3545_s19  ;;  %v2835_v15 = vld [vmem:[#allocation11 + $0x6] ss:$0 sm:$0xff] }
 0xe13   :  { %v970_v16 = vpop.permute.xlu0 %969 }
 0xe14   :  { %v972_v17 = vadd.f32 %v970_v16, %v820_v39  ;;  %v2828_v39 = vld [vmem:[#allocation12 + $0x5] ss:$0 sm:$0xff] }
 0xe16   :  { %977 = vst.msk [vmem:[#allocation14 + $0x8] sm:$0x3] %vm368_vm3, %v972_v17  ;;  %3071 = vmatmul.mubr.msk.f32.vlgmr.msra.gmra.mxu0 %vm220_vm2, %v972_v17 }
 0xe17   :  { %3085 = vmatpush3.msra.mxu0 %v3669_v4  ;;  %3092 = vmatprep.mubr.msk.f32.mxu0 %vm3543_vm0, %v3542_v0  ;;  %v2823_v4 = vld [vmem:[%s4119_s4 + $0x5] ss:$0 sm:$0xff] }
 0xe18   :  { %3086 = vmatprep.subr.mxu0 %v3542_v0  ;;  %v1058_v21 = vmul.f32 %v2823_v4, %v979_v18  ;;  %v2836_v18 = vld [vmem:[#allocation12 + $0x6] ss:$0 sm:$0xff] }
 0xe19   :  { %3087 = vmatpush3.msra.mxu0 %v3671_v5  ;;  %v2825_v5 = vld [vmem:[#allocation9 + $0x5] ss:$0 sm:$0xff] }
 0xe1a   :  { %3088 = vmatprep.subr.mxu0 %v3542_v0 }
 0xe1b   :  { %3089 = vmatpush3.msra.mxu0 %v3675_v6 }
 0xe1c   :  { %3090 = vmatprep.subr.mxu0 %v3542_v0 }
 0xe1d   :  { %3091 = vmatpush3.msra.mxu0 %v3680_v7  ;;  %v2829_v7 = vld [vmem:[%s4124_s9 + $0xa] sm:$0x3] }
 0xe1e   :  { %3106 = vmatprep.subr.mxu0 %v3542_v0 }
 0xed6   :  { %v1049_v20 = vpop.f32.mrf.mxu0 }
 0xed7   :  { %v1064_v22 = vmul.f32 %v2824_v19, %v1049_v20 }
 0xed8   :  { %v3072_v23 = vpop.f32.mrf.mxu0 }
 0xed9   :  { %v1065_v24 = vadd.f32 %v1064_v22, %v1058_v21 }
 0xedb   :  { %v1071_v25 = vadd.f32 %v2825_v5, %v1065_v24 }
 0xedd   :  { %3254 = vtanh.f32 %v1071_v25  ;;  %v2826_v26 = vmul.f32 -1.442695, %v1071_v25 }
 0xedf   :  { %3256 = vpow2.f32 %v2826_v26  ;;  %v1283_v26 = vld [vmem:[#allocation2 + $0xe] sm:$0x3] }
 0xeea   :  { %v3255_v6 = vpop.eup %3254 }
 0xeeb   :  { %1081 = vrot.lane.b32.xlu1 %v3255_v6, %s3545_s19 }
 0xeec   :  { %v3257_v27 = vpop.eup %3256 }
 0xeed   :  { %v1075_v28 = vadd.f32 1.0, %v3257_v27  ;;  %v2839_v27 = vld [vmem:[%s4119_s4 + $0x7] ss:$0 sm:$0xff] }
 0xeef   :  { %1116 = vperm.xlu1 %3212, %v2829_v7   ;;  %3258 = vrcp.f32 %v1075_v28  ;;  %v2840_v28 = vld [vmem:[#allocation8 + $0x7] ss:$0 sm:$0xff] }
 0xef3   :  { %1110 = vrot.lane.b32.xlu1 %v972_v17, %s3545_s19 }
 0xefc   :  { %v3259_v29 = vpop.eup %3258 }
 0xefd   :  { %v1079_v35 = vmul.f32 %v3259_v29, %v975_v34 }
 0xf5d   :  { %v1082_v30 = vpop.permute.xlu1 %1081 }
 0xf5e   :  { %v1084_v31 = vmul.f32 %v3259_v29, %v1082_v30  ;;  %v1362_v30 = vmul.f32 %v2839_v27, %v1283_v26  ;;  %v1663_v26 = vld [vmem:[%s4124_s9] sm:$0x3] }
 0xf60   :  { %1086 = vrot.lane.b32.xlu0 %v1084_v31, %s3546_s6 }
 0xf6a   :  { %v1117_v43 = vpop.permute.xlu1 %1116 }
 0xf6e   :  { %v1111_v46 = vpop.permute.xlu1 %1110 }
 0xfd2   :  { %v1087_v37 = vpop.permute.xlu0 %1086 }
 0xfd3   :  { %v1089_v38 = vadd.f32 %v1087_v37, %v1079_v35  ;;  %v2845_v37 = vld [vmem:[%s4124_s9 + $0xe] sm:$0x3] }
 0xfd5   :  { %v1095_v40 = vmul.f32 %v2827_v36, %v1089_v38  ;;  %v1125_v11 = vsub.f32 %v1089_v38, %v975_v34 }
 0xfd7   :  { %v1101_v41 = vadd.f32 %v2828_v39, %v1095_v40  ;;  %v1126_v12 = vmul.f32 %v1125_v11, %v1117_v43  ;;  %v3896_v11 = vld [vmem:[#allocation6 + $0x28] sm:$0xff] }
 0xfd9   :  { %3260 = vtanh.f32 %v1101_v41  ;;  %v1127_v13 = vadd.f32 %v1126_v12, %v975_v34  ;;  %v3901_v12 = vld [vmem:[#allocation6 + $0x20] sm:$0xff] }
 0xfe6   :  { %v3261_v42 = vpop.eup %3260 }
 0xfe7   :  { %1104 = vrot.lane.b32.xlu0 %v3261_v42, %s3545_s19 }
0x1059   :  { %v1105_v44 = vpop.permute.xlu0 %1104 }
0x105a   :  { %v1107_v45 = vmul.f32 %v3259_v29, %v1105_v44 }
0x105c   :  { %v1113_v47 = vsub.f32 %v1107_v45, %v1111_v46 }
0x105e   :  { %v1119_v48 = vmul.f32 %v1117_v43, %v1113_v47 }
0x1060   :  { %1121 = vrot.lane.b32.xlu0 %v1119_v48, %s3545_s19  ;;  %v2843_v48 = vld [vmem:[#allocation11 + $0x7] ss:$0 sm:$0xff] }
0x10d2   :  { %v1122_v49 = vpop.permute.xlu0 %1121 }
0x10d3   :  { %v1124_v50 = vadd.f32 %v1122_v49, %v972_v17 }
0x10d5   :  { %1129 = vst.msk [vmem:[#allocation14 + $0xa] sm:$0x3] %vm368_vm3, %v1124_v50  ;;  %3082 = vmatmul.mubr.msk.f32.vlgmr.msra.gmra.mxu1 %vm220_vm2, %v1124_v50 }
0x10d6   :  { %3103 = vmatprep.mubr.msk.f32.mxu1 %vm220_vm2, %v1436_v51  ;;  %v2844_v51 = vld [vmem:[#allocation12 + $0x7] ss:$0 sm:$0xff] }
0x1195   :  { %v1201_v55 = vpop.f32.mrf.mxu1 }
0x1196   :  { %v1216_v57 = vmul.f32 %v2832_v54, %v1201_v55 }
0x1197   :  { %v3083_v59 = vpop.f32.mrf.mxu1 }
0x1198   :  { %v1217_v60 = vadd.f32 %v1216_v57, %v1210_v56  ;;  %v1441_v59 = vld [vmem:[%s4117_s2 + $0x18] sm:$0xff] }
0x1199   :  { %3095 = vmatprep.subr.mxu1 %v1441_v59 }
0x119a   :  { %v1223_v61 = vadd.f32 %v2833_v58, %v1217_v60  ;;  %v1440_v60 = vld [vmem:[%s4117_s2 + $0x10] sm:$0xff]  ;;  %3096 = vmatpush3.msra.mxu1 %v1441_v59 }
0x119b   :  { %3097 = vmatprep.subr.mxu1 %v1440_v60 }
0x119c   :  { %3262 = vtanh.f32 %v1223_v61  ;;  %v2834_v1 = vmul.f32 -1.442695, %v1223_v61  ;;  %v1439_v61 = vld [vmem:[%s4117_s2 + $0x8] sm:$0xff]  ;;  %3098 = vmatpush3.msra.mxu1 %v1440_v60 }
0x119d   :  { %3099 = vmatprep.subr.mxu1 %v1439_v61 }
0x119e   :  { %3264 = vpow2.f32 %v2834_v1  ;;  %3100 = vmatpush3.msra.mxu1 %v1439_v61  ;;  %v2864_v61 = vld [vmem:[%s4124_s9 + $0x2] sm:$0x3] }
0x11a9   :  { %v3263_v62 = vpop.eup %3262 }
0x11aa   :  { %1233 = vrot.lane.b32.xlu1 %v3263_v62, %s3545_s19 }
0x11ab   :  { %v3265_v2 = vpop.eup %3264 }
0x11ac   :  { %v1227_v3 = vadd.f32 1.0, %v3265_v2 }
0x11ae   :  { %1268 = vperm.xlu1 %3212, %v2837_v63   ;;  %3266 = vrcp.f32 %v1227_v3  ;;  %v1438_v63 = vld [vmem:[%s4117_s2] sm:$0xff] }
0x11af   :  { %3101 = vmatprep.subr.mxu1 %v1438_v63 }
0x11b0   :  { %3102 = vmatpush3.msra.mxu1 %v1438_v63 }
0x11b1   :  { %3117 = vmatprep.subr.mxu1 %v3542_v0 }
0x11b2   :  { %1262 = vrot.lane.b32.xlu1 %v1124_v50, %s3545_s19 }
0x11bb   :  { %v3267_v8 = vpop.eup %3266 }
0x11bc   :  { %v1231_v14 = vmul.f32 %v3267_v8, %v1127_v13 }
0x121c   :  { %v1234_v9 = vpop.permute.xlu1 %1233 }
0x121d   :  { %v1236_v10 = vmul.f32 %v3267_v8, %v1234_v9  ;;  %v3891_v9 = vld [vmem:[#allocation6 + $0x30] sm:$0xff] }
0x121f   :  { %1238 = vrot.lane.b32.xlu0 %v1236_v10, %s3546_s6 }
0x1229   :  { %v1269_v21 = vpop.permute.xlu1 %1268 }
0x122d   :  { %v1263_v23 = vpop.permute.xlu1 %1262 }
0x1291   :  { %v1239_v16 = vpop.permute.xlu0 %1238 }
0x1292   :  { %v1241_v17 = vadd.f32 %v1239_v16, %v1231_v14 }
0x1294   :  { %v1247_v4 = vmul.f32 %v2835_v15, %v1241_v17  ;;  %v1277_v44 = vsub.f32 %v1241_v17, %v1127_v13 }
0x1296   :  { %v1253_v19 = vadd.f32 %v2836_v18, %v1247_v4  ;;  %v1278_v45 = vmul.f32 %v1277_v44, %v1269_v21 }
0x1298   :  { %3268 = vtanh.f32 %v1253_v19  ;;  %v1279_v46 = vadd.f32 %v1278_v45, %v1127_v13  ;;  %v3907_v13 = vld [vmem:[%s4125_s10 + $0x2] sm:$0x3] }
0x12a5   :  { %v3269_v20 = vpop.eup %3268 }
0x12a6   :  { %1256 = vrot.lane.b32.xlu0 %v3269_v20, %s3545_s19  ;;  %v2852_v20 = vld [vmem:[#allocation8 + $0x8] ss:$0 sm:$0xff] }
0x1318   :  { %v1257_v22 = vpop.permute.xlu0 %1256 }
0x1319   :  { %v1259_v5 = vmul.f32 %v3267_v8, %v1257_v22  ;;  %v3889_v8 = vld [vmem:[#allocation6 + $0x38] sm:$0xff] }
0x131b   :  { %v1265_v24 = vsub.f32 %v1259_v5, %v1263_v23 }
0x131d   :  { %v1271_v25 = vmul.f32 %v1269_v21, %v1265_v24  ;;  %v2851_v21 = vld [vmem:[%s4119_s4 + $0x8] ss:$0 sm:$0xff]  ;;  %v2853_v24 = vld [vmem:[#allocation9 + $0x8] ss:$0 sm:$0xff] }
0x131f   :  { %1273 = vrot.lane.b32.xlu0 %v1271_v25, %s3545_s19 }
0x1391   :  { %v1274_v6 = vpop.permute.xlu0 %1273 }
0x1392   :  { %v3857_v7 = vadd.f32 %v1274_v6, %v1124_v50 }
0x1394   :  { %1281 = vst.msk [vmem:[#allocation14 + $0xc] sm:$0x3] %vm368_vm3, %v3857_v7  ;;  %3093 = vmatmul.mubr.msk.f32.vlgmr.msra.gmra.mxu0 %vm220_vm2, %v3857_v7 }
0x1395   :  { %3114 = vmatprep.mubr.msk.f32.mxu0 %vm3543_vm0, %v3542_v0  ;;  %3107 = vmatpush3.msra.mxu0 %v3889_v8 }
0x1396   :  { %3108 = vmatprep.subr.mxu0 %v3542_v0 }
0x1397   :  { %3109 = vmatpush3.msra.mxu0 %v3891_v9 }
0x1398   :  { %3110 = vmatprep.subr.mxu0 %v3542_v0 }
0x1399   :  { %3111 = vmatpush3.msra.mxu0 %v3896_v11 }
0x139a   :  { %3112 = vmatprep.subr.mxu0 %v3542_v0 }
0x139b   :  { %3113 = vmatpush3.msra.mxu0 %v3901_v12 }
0x139c   :  { %3115 = vmatmul.mubr.msk.f32.vlgmr.msra.gmra.mxu0 %vm220_vm2, %v3907_v13  ;;  %3128 = vmatprep.subr.mxu0 %v3542_v0 }
0x139d   :  { %3129 = vmatpush3.msra.mxu0 %v3889_v8  ;;  %3136 = vmatprep.mubr.msk.f32.mxu0 %vm3543_vm0, %v3542_v0 }
0x139e   :  { %3130 = vmatprep.subr.mxu0 %v3542_v0 }
0x139f   :  { %3131 = vmatpush3.msra.mxu0 %v3891_v9 }
0x13a0   :  { %3132 = vmatprep.subr.mxu0 %v3542_v0 }
0x13a1   :  { %3133 = vmatpush3.msra.mxu0 %v3896_v11 }
0x13a2   :  { %3134 = vmatprep.subr.mxu0 %v3542_v0 }
0x13a3   :  { %3135 = vmatpush3.msra.mxu0 %v3901_v12 }
0x13a4   :  { %3150 = vmatprep.subr.mxu0 %v3542_v0 }
0x1454   :  { %v1353_v29 = vpop.f32.mrf.mxu0 }
0x1455   :  { %v1368_v31 = vmul.f32 %v2840_v28, %v1353_v29 }
0x1456   :  { %v3094_v33 = vpop.f32.mrf.mxu0 }
0x1457   :  { %v1369_v34 = vadd.f32 %v1368_v31, %v1362_v30  ;;  %v2849_v33 = vld [vmem:[%s4126_s11 + $0x2] sm:$0x3] }
0x1459   :  { %v1375_v35 = vadd.f32 %v2841_v32, %v1369_v34 }
0x145b   :  { %3270 = vtanh.f32 %v1375_v35  ;;  %v2842_v38 = vmul.f32 -1.442695, %v1375_v35  ;;  %v2855_v35 = vld [vmem:[#allocation11 + $0x8] ss:$0 sm:$0xff] }
0x145c   :  { %v1604_v17 = vpop.f32.mrf.mxu0 }
0x145d   :  { %3272 = vpow2.f32 %v2842_v38  ;;  %v1619_v22 = vmul.f32 %v2852_v20, %v1604_v17  ;;  %v2856_v38 = vld [vmem:[#allocation12 + $0x8] ss:$0 sm:$0xff]  ;;  %v2862_v17 = vld [vmem:[#allocation11 + $0x9] ss:$0 sm:$0xff] }
0x145e   :  { %v3116_v18 = vpop.f32.mrf.mxu0 }
0x1468   :  { %v3271_v36 = vpop.eup %3270 }
0x1469   :  { %1385 = vrot.lane.b32.xlu1 %v3271_v36, %s3545_s19 }
0x146a   :  { %v3273_v39 = vpop.eup %3272 }
0x146b   :  { %v1379_v40 = vadd.f32 1.0, %v3273_v39 }
0x146d   :  { %1420 = vperm.xlu1 %3212, %v2845_v37   ;;  %3274 = vrcp.f32 %v1379_v40 }
0x1471   :  { %1414 = vrot.lane.b32.xlu1 %v3857_v7, %s3545_s19 }
0x147a   :  { %v3275_v41 = vpop.eup %3274 }
0x147b   :  { %v1383_v47 = vmul.f32 %v3275_v41, %v1279_v46 }
0x14db   :  { %v1386_v42 = vpop.permute.xlu1 %1385 }
0x14dc   :  { %v1388_v43 = vmul.f32 %v3275_v41, %v1386_v42 }
0x14de   :  { %1390 = vrot.lane.b32.xlu0 %v1388_v43, %s3546_s6 }
0x14e8   :  { %v1421_v54 = vpop.permute.xlu1 %1420 }
0x14ec   :  { %v1415_v2 = vpop.permute.xlu1 %1414 }
0x1550   :  { %v1391_v49 = vpop.permute.xlu0 %1390 }
0x1551   :  { %v1393_v50 = vadd.f32 %v1391_v49, %v1383_v47 }
0x1553   :  { %v1399_v52 = vmul.f32 %v2843_v48, %v1393_v50  ;;  %v1429_v53 = vsub.f32 %v1393_v50, %v1279_v46 }
0x1555   :  { %v1405_v55 = vadd.f32 %v2844_v51, %v1399_v52  ;;  %v1430_v56 = vmul.f32 %v1429_v53, %v1421_v54  ;;  %v2858_v51 = vld [vmem:[%s4119_s4 + $0x9] ss:$0 sm:$0xff]  ;;  %v2859_v52 = vld [vmem:[#allocation8 + $0x9] ss:$0 sm:$0xff] }
0x1557   :  { %3276 = vtanh.f32 %v1405_v55  ;;  %v1431_v57 = vadd.f32 %v1430_v56, %v1279_v46  ;;  %v2860_v56 = vld [vmem:[#allocation9 + $0x9] ss:$0 sm:$0xff] }
0x1559   :  { %1435 = vst.msk [vmem:[#allocation17] sm:$0x3] %vm368_vm3, %v1431_v57 }
0x1564   :  { %v3277_v58 = vpop.eup %3276 }
0x1565   :  { %1408 = vrot.lane.b32.xlu0 %v3277_v58, %s3545_s19 }
0x15d7   :  { %v1409_v62 = vpop.permute.xlu0 %1408 }
0x15d8   :  { %v1411_v1 = vmul.f32 %v3275_v41, %v1409_v62 }
0x15da   :  { %v1417_v3 = vsub.f32 %v1411_v1, %v1415_v2 }
0x15dc   :  { %v1423_v10 = vmul.f32 %v1421_v54, %v1417_v3 }
0x15de   :  { %1425 = vrot.lane.b32.xlu0 %v1423_v10, %s3545_s19 }
0x1650   :  { %v1426_v14 = vpop.permute.xlu0 %1425 }
0x1651   :  { %v1428_v15 = vadd.f32 %v1426_v14, %v3857_v7 }
0x1653   :  { %1433 = vst.msk [vmem:[#allocation14 + $0xe] sm:$0x3] %vm368_vm3, %v1428_v15  ;;  %1434 = vst.msk [vmem:[#allocation15] sm:$0x3] %vm368_vm3, %v1428_v15 }
0x165a   :  { %v1437_v16 = vld [vmem:[#allocation14 + $0x8] sm:$0xff] }
0x165b   :  { %3104 = vmatmul.mubr.msk.f32.vlgmr.msra.gmra.mxu1 %vm220_vm2, %v1437_v16 }
0x165c   :  { %3118 = vmatpush3.msra.mxu1 %v3889_v8  ;;  %3125 = vmatprep.mubr.msk.f32.mxu1 %vm3543_vm0, %v3542_v0 }
0x165d   :  { %3119 = vmatprep.subr.mxu1 %v3542_v0 }
0x165e   :  { %3120 = vmatpush3.msra.mxu1 %v3891_v9 }
0x165f   :  { %3121 = vmatprep.subr.mxu1 %v3542_v0 }
0x1660   :  { %3122 = vmatpush3.msra.mxu1 %v3896_v11 }
0x1661   :  { %3123 = vmatprep.subr.mxu1 %v3542_v0 }
0x1662   :  { %3124 = vmatpush3.msra.mxu1 %v3901_v12 }
0x1663   :  { %3139 = vmatprep.subr.mxu1 %v3542_v0 }
0x171b   :  { %v3105_v4 = vpop.f32.mrf.mxu1 }
0x171c   :  { %1524 = vst [vmem:[#allocation2 + $0x8] sm:$0xff] %v3105_v4 }
0x171d   :  { %v1514_v19 = vpop.f32.mrf.mxu1 }
0x171e   :  { %1523 = vst [vmem:[#allocation2] sm:$0xff] %v1514_v19  ;;  %v2863_v19 = vld [vmem:[#allocation12 + $0x9] ss:$0 sm:$0xff] }
0x1725   :  { %v1534_v5 = vld [vmem:[#allocation2] sm:$0x3]  ;;  %v1683_v50 = vld [vmem:[#allocation2 + $0x2] sm:$0x3] }
0x1726   :  { %v1613_v23 = vmul.f32 %v2851_v21, %v1534_v5  ;;  %v1762_v54 = vmul.f32 %v2858_v51, %v1683_v50  ;;  %v2870_v50 = vld [vmem:[#allocation11 + $0xa] ss:$0 sm:$0xff] }
0x1728   :  { %v1620_v25 = vadd.f32 %v1619_v22, %v1613_v23 }
0x172a   :  { %v1626_v6 = vadd.f32 %v2853_v24, %v1620_v25 }
0x172c   :  { %3278 = vtanh.f32 %v1626_v6  ;;  %v2854_v27 = vmul.f32 -1.442695, %v1626_v6 }
0x172e   :  { %3280 = vpow2.f32 %v2854_v27 }
0x1739   :  { %v3279_v7 = vpop.eup %3278 }
0x173a   :  { %1636 = vrot.lane.b32.xlu1 %v3279_v7, %s3545_s19 }
0x173b   :  { %v3281_v28 = vpop.eup %3280 }
0x173c   :  { %v1630_v29 = vadd.f32 1.0, %v3281_v28  ;;  %v1832_v28 = vld [vmem:[#allocation2 + $0x4] sm:$0x3] }
0x173e   :  { %1670 = vperm.xlu1 %3212, %v1663_v26   ;;  %3282 = vrcp.f32 %v1630_v29  ;;  %v2866_v29 = vld [vmem:[%s4119_s4 + $0xa] ss:$0 sm:$0xff] }
0x1742   :  { %1664 = vrot.lane.b32.xlu1 %v3907_v13, %s3545_s19 }
0x174b   :  { %v3283_v30 = vpop.eup %3282 }
0x174c   :  { %v1634_v34 = vmul.f32 %v3283_v30, %v2849_v33 }
0x17ac   :  { %v1637_v31 = vpop.permute.xlu1 %1636 }
0x17ad   :  { %v1639_v32 = vmul.f32 %v3283_v30, %v1637_v31 }
0x17af   :  { %1641 = vrot.lane.b32.xlu0 %v1639_v32, %s3546_s6  ;;  %v1911_v32 = vmul.f32 %v2866_v29, %v1832_v28  ;;  %v2878_v28 = vld [vmem:[#allocation11 + $0xb] ss:$0 sm:$0xff] }
0x17b9   :  { %v1671_v42 = vpop.permute.xlu1 %1670 }
0x17bd   :  { %v1665_v44 = vpop.permute.xlu1 %1664 }
0x1821   :  { %v1642_v36 = vpop.permute.xlu0 %1641 }
0x1822   :  { %v1644_v37 = vadd.f32 %v1642_v36, %v1634_v34  ;;  %v2868_v34 = vld [vmem:[#allocation9 + $0xa] ss:$0 sm:$0xff] }
0x1824   :  { %v1650_v39 = vmul.f32 %v2855_v35, %v1644_v37 }
0x1826   :  { %v1656_v40 = vadd.f32 %v2856_v38, %v1650_v39  ;;  %v2872_v39 = vld [vmem:[%s4124_s9 + $0x4] sm:$0x3] }
0x1828   :  { %3284 = vtanh.f32 %v1656_v40 }
0x1835   :  { %v3285_v41 = vpop.eup %3284 }
0x1836   :  { %1659 = vrot.lane.b32.xlu0 %v3285_v41, %s3545_s19 }
0x18a8   :  { %v1660_v43 = vpop.permute.xlu0 %1659 }
0x18a9   :  { %v1662_v45 = vmul.f32 %v3283_v30, %v1660_v43  ;;  %v2867_v30 = vld [vmem:[#allocation8 + $0xa] ss:$0 sm:$0xff] }
0x18ab   :  { %v1667_v46 = vsub.f32 %v1662_v45, %v1665_v44 }
0x18ad   :  { %v1673_v47 = vmul.f32 %v1671_v42, %v1667_v46 }
0x18af   :  { %1675 = vrot.lane.b32.xlu0 %v1673_v47, %s3545_s19 }
0x1921   :  { %v1676_v48 = vpop.permute.xlu0 %1675 }
0x1922   :  { %v1678_v49 = vadd.f32 %v3907_v13, %v1676_v48  ;;  %v1679_v13 = vsub.f32 %v1644_v37, %v2849_v33 }
0x1924   :  { %1682 = vst.msk [vmem:[#allocation14] sm:$0x3] %vm368_vm3, %v1678_v49  ;;  %3126 = vmatmul.mubr.msk.f32.vlgmr.msra.gmra.mxu1 %vm220_vm2, %v1678_v49  ;;  %v1680_v14 = vmul.f32 %v1679_v13, %v1671_v42 }
0x1925   :  { %3140 = vmatpush3.msra.mxu1 %v3889_v8  ;;  %3147 = vmatprep.mubr.msk.f32.mxu1 %vm3543_vm0, %v3542_v0 }
0x1926   :  { %3141 = vmatprep.subr.mxu1 %v3542_v0  ;;  %v1681_v15 = vadd.f32 %v2849_v33, %v1680_v14 }
0x1927   :  { %3142 = vmatpush3.msra.mxu1 %v3891_v9 }
0x1928   :  { %3143 = vmatprep.subr.mxu1 %v3542_v0 }
0x1929   :  { %3144 = vmatpush3.msra.mxu1 %v3896_v11 }
0x192a   :  { %3145 = vmatprep.subr.mxu1 %v3542_v0 }
0x192b   :  { %3146 = vmatpush3.msra.mxu1 %v3901_v12 }
0x192c   :  { %3161 = vmatprep.subr.mxu1 %v3542_v0 }
0x19e4   :  { %v1753_v53 = vpop.f32.mrf.mxu1 }
0x19e5   :  { %v1768_v55 = vmul.f32 %v2859_v52, %v1753_v53  ;;  %v2871_v53 = vld [vmem:[#allocation12 + $0xa] ss:$0 sm:$0xff] }
0x19e6   :  { %v3127_v57 = vpop.f32.mrf.mxu1 }
0x19e7   :  { %v1769_v58 = vadd.f32 %v1768_v55, %v1762_v54 }
0x19e9   :  { %v1775_v59 = vadd.f32 %v2860_v56, %v1769_v58 }
0x19eb   :  { %3286 = vtanh.f32 %v1775_v59  ;;  %v2861_v62 = vmul.f32 -1.442695, %v1775_v59 }
0x19ed   :  { %3288 = vpow2.f32 %v2861_v62 }
0x19f8   :  { %v3287_v60 = vpop.eup %3286 }
0x19f9   :  { %1785 = vrot.lane.b32.xlu1 %v3287_v60, %s3545_s19 }
0x19fa   :  { %v3289_v63 = vpop.eup %3288 }
0x19fb   :  { %v1779_v1 = vadd.f32 1.0, %v3289_v63 }
0x19fd   :  { %1819 = vperm.xlu1 %3212, %v2864_v61   ;;  %3290 = vrcp.f32 %v1779_v1 }
0x1a01   :  { %1813 = vrot.lane.b32.xlu1 %v1678_v49, %s3545_s19 }
0x1a0a   :  { %v3291_v2 = vpop.eup %3290 }
0x1a0b   :  { %v1783_v16 = vmul.f32 %v3291_v2, %v1681_v15 }
0x1a6b   :  { %v1786_v3 = vpop.permute.xlu1 %1785 }
0x1a6c   :  { %v1788_v10 = vmul.f32 %v3291_v2, %v1786_v3  ;;  %v2874_v3 = vld [vmem:[%s4119_s4 + $0xb] ss:$0 sm:$0xff] }
0x1a6e   :  { %1790 = vrot.lane.b32.xlu0 %v1788_v10, %s3546_s6  ;;  %v2875_v10 = vld [vmem:[#allocation8 + $0xb] ss:$0 sm:$0xff] }
0x1a78   :  { %v1820_v5 = vpop.permute.xlu1 %1819 }
0x1a7c   :  { %v1814_v25 = vpop.permute.xlu1 %1813 }
0x1ae0   :  { %v1791_v18 = vpop.permute.xlu0 %1790 }
0x1ae1   :  { %v1793_v4 = vadd.f32 %v1791_v18, %v1783_v16  ;;  %v2876_v16 = vld [vmem:[#allocation9 + $0xb] ss:$0 sm:$0xff] }
0x1ae3   :  { %v1799_v20 = vmul.f32 %v2862_v17, %v1793_v4  ;;  %v1828_v46 = vsub.f32 %v1793_v4, %v1681_v15 }
0x1ae5   :  { %v1805_v21 = vadd.f32 %v2863_v19, %v1799_v20  ;;  %v1829_v47 = vmul.f32 %v1828_v46, %v1820_v5  ;;  %v2880_v20 = vld [vmem:[%s4124_s9 + $0x6] sm:$0x3] }
0x1ae7   :  { %3292 = vtanh.f32 %v1805_v21  ;;  %v1830_v48 = vadd.f32 %v1829_v47, %v1681_v15 }
0x1af4   :  { %v3293_v22 = vpop.eup %3292 }
0x1af5   :  { %1808 = vrot.lane.b32.xlu0 %v3293_v22, %s3545_s19 }
0x1b67   :  { %v1809_v23 = vpop.permute.xlu0 %1808 }
0x1b68   :  { %v1811_v24 = vmul.f32 %v3291_v2, %v1809_v23  ;;  %v1981_v2 = vld [vmem:[#allocation2 + $0x6] sm:$0x3] }
0x1b69   :  { %v2060_v14 = vmul.f32 %v2874_v3, %v1981_v2  ;;  %v2886_v2 = vld [vmem:[#allocation11 + $0xc] ss:$0 sm:$0xff] }
0x1b6a   :  { %v1816_v6 = vsub.f32 %v1811_v24, %v1814_v25 }
0x1b6c   :  { %v1822_v7 = vmul.f32 %v1820_v5, %v1816_v6 }
0x1b6e   :  { %1824 = vrot.lane.b32.xlu0 %v1822_v7, %s3545_s19 }
0x1be0   :  { %v1825_v26 = vpop.permute.xlu0 %1824 }
0x1be1   :  { %v1827_v27 = vadd.f32 %v1825_v26, %v1678_v49 }
0x1be3   :  { %1831 = vst.msk [vmem:[#allocation14 + $0x2] sm:$0x3] %vm368_vm3, %v1827_v27  ;;  %3137 = vmatmul.mubr.msk.f32.vlgmr.msra.gmra.mxu0 %vm220_vm2, %v1827_v27 }
0x1be4   :  { %3151 = vmatpush3.msra.mxu0 %v3889_v8  ;;  %3158 = vmatprep.mubr.msk.f32.mxu0 %vm3543_vm0, %v3542_v0 }
0x1be5   :  { %3152 = vmatprep.subr.mxu0 %v3542_v0 }
0x1be6   :  { %3153 = vmatpush3.msra.mxu0 %v3891_v9 }
0x1be7   :  { %3154 = vmatprep.subr.mxu0 %v3542_v0 }
0x1be8   :  { %3155 = vmatpush3.msra.mxu0 %v3896_v11 }
0x1be9   :  { %3156 = vmatprep.subr.mxu0 %v3542_v0 }
0x1bea   :  { %3157 = vmatpush3.msra.mxu0 %v3901_v12 }
0x1beb   :  { %3172 = vmatprep.subr.mxu0 %v3542_v0 }
0x1ca3   :  { %v1902_v31 = vpop.f32.mrf.mxu0 }
0x1ca4   :  { %v1917_v33 = vmul.f32 %v2867_v30, %v1902_v31  ;;  %v2879_v31 = vld [vmem:[#allocation12 + $0xb] ss:$0 sm:$0xff] }
0x1ca5   :  { %v3138_v35 = vpop.f32.mrf.mxu0 }
0x1ca6   :  { %v1918_v36 = vadd.f32 %v1917_v33, %v1911_v32 }
0x1ca8   :  { %v1924_v37 = vadd.f32 %v2868_v34, %v1918_v36 }
0x1caa   :  { %3294 = vtanh.f32 %v1924_v37  ;;  %v2869_v40 = vmul.f32 -1.442695, %v1924_v37 }
0x1cac   :  { %3296 = vpow2.f32 %v2869_v40 }
0x1cb7   :  { %v3295_v38 = vpop.eup %3294 }
0x1cb8   :  { %1934 = vrot.lane.b32.xlu1 %v3295_v38, %s3545_s19 }
0x1cb9   :  { %v3297_v41 = vpop.eup %3296 }
0x1cba   :  { %v1928_v42 = vadd.f32 1.0, %v3297_v41 }
0x1cbc   :  { %1968 = vperm.xlu1 %3212, %v2872_v39   ;;  %3298 = vrcp.f32 %v1928_v42 }
0x1cc0   :  { %1962 = vrot.lane.b32.xlu1 %v1827_v27, %s3545_s19 }
0x1cc9   :  { %v3299_v43 = vpop.eup %3298 }
0x1cca   :  { %v1932_v49 = vmul.f32 %v3299_v43, %v1830_v48 }
0x1d2a   :  { %v1935_v44 = vpop.permute.xlu1 %1934 }
0x1d2b   :  { %v1937_v45 = vmul.f32 %v3299_v43, %v1935_v44  ;;  %v2882_v44 = vld [vmem:[%s4119_s4 + $0xc] ss:$0 sm:$0xff] }
0x1d2d   :  { %1939 = vrot.lane.b32.xlu0 %v1937_v45, %s3546_s6  ;;  %v2883_v45 = vld [vmem:[#allocation8 + $0xc] ss:$0 sm:$0xff] }
0x1d37   :  { %v1969_v57 = vpop.permute.xlu1 %1968 }
0x1d3b   :  { %v1963_v60 = vpop.permute.xlu1 %1962 }
0x1d9f   :  { %v1940_v51 = vpop.permute.xlu0 %1939 }
0x1da0   :  { %v1942_v52 = vadd.f32 %v1940_v51, %v1932_v49  ;;  %v2884_v49 = vld [vmem:[#allocation9 + $0xc] ss:$0 sm:$0xff] }
0x1da2   :  { %v1948_v54 = vmul.f32 %v2870_v50, %v1942_v52  ;;  %v1977_v6 = vsub.f32 %v1942_v52, %v1830_v48 }
0x1da4   :  { %v1954_v55 = vadd.f32 %v2871_v53, %v1948_v54  ;;  %v1978_v7 = vmul.f32 %v1977_v6, %v1969_v57  ;;  %v2888_v54 = vld [vmem:[%s4124_s9 + $0x8] sm:$0x3] }
0x1da6   :  { %3300 = vtanh.f32 %v1954_v55  ;;  %v1979_v26 = vadd.f32 %v1978_v7, %v1830_v48 }
0x1db3   :  { %v3301_v56 = vpop.eup %3300 }
0x1db4   :  { %1957 = vrot.lane.b32.xlu0 %v3301_v56, %s3545_s19 }
0x1e26   :  { %v1958_v58 = vpop.permute.xlu0 %1957 }
0x1e27   :  { %v1960_v59 = vmul.f32 %v3299_v43, %v1958_v58  ;;  %v2130_v43 = vld [vmem:[#allocation2 + $0x8] sm:$0x3] }
0x1e28   :  { %v2209_v47 = vmul.f32 %v2882_v44, %v2130_v43 }
0x1e29   :  { %v1965_v61 = vsub.f32 %v1960_v59, %v1963_v60 }
0x1e2b   :  { %v1971_v62 = vmul.f32 %v1969_v57, %v1965_v61 }
0x1e2d   :  { %1973 = vrot.lane.b32.xlu0 %v1971_v62, %s3545_s19 }
0x1e9f   :  { %v1974_v63 = vpop.permute.xlu0 %1973 }
0x1ea0   :  { %v1976_v1 = vadd.f32 %v1974_v63, %v1827_v27 }
0x1ea2   :  { %1980 = vst.msk [vmem:[#allocation14 + $0x4] sm:$0x3] %vm368_vm3, %v1976_v1  ;;  %3148 = vmatmul.mubr.msk.f32.vlgmr.msra.gmra.mxu1 %vm220_vm2, %v1976_v1 }
0x1ea3   :  { %3162 = vmatpush3.msra.mxu1 %v3889_v8  ;;  %3169 = vmatprep.mubr.msk.f32.mxu1 %vm3543_vm0, %v3542_v0 }
0x1ea4   :  { %3163 = vmatprep.subr.mxu1 %v3542_v0 }
0x1ea5   :  { %3164 = vmatpush3.msra.mxu1 %v3891_v9 }
0x1ea6   :  { %3165 = vmatprep.subr.mxu1 %v3542_v0 }
0x1ea7   :  { %3166 = vmatpush3.msra.mxu1 %v3896_v11 }
0x1ea8   :  { %3167 = vmatprep.subr.mxu1 %v3542_v0 }
0x1ea9   :  { %3168 = vmatpush3.msra.mxu1 %v3901_v12 }
0x1eaa   :  { %3183 = vmatprep.subr.mxu1 %v3542_v0 }
0x1f62   :  { %v2051_v13 = vpop.f32.mrf.mxu1 }
0x1f63   :  { %v2066_v15 = vmul.f32 %v2875_v10, %v2051_v13  ;;  %v2887_v13 = vld [vmem:[#allocation12 + $0xc] ss:$0 sm:$0xff] }
0x1f64   :  { %v3149_v17 = vpop.f32.mrf.mxu1 }
0x1f65   :  { %v2067_v18 = vadd.f32 %v2066_v15, %v2060_v14 }
0x1f67   :  { %v2073_v4 = vadd.f32 %v2876_v16, %v2067_v18 }
0x1f69   :  { %3302 = vtanh.f32 %v2073_v4  ;;  %v2877_v21 = vmul.f32 -1.442695, %v2073_v4 }
0x1f6b   :  { %3304 = vpow2.f32 %v2877_v21 }
0x1f76   :  { %v3303_v19 = vpop.eup %3302 }
0x1f77   :  { %2083 = vrot.lane.b32.xlu1 %v3303_v19, %s3545_s19 }
0x1f78   :  { %v3305_v22 = vpop.eup %3304 }
0x1f79   :  { %v2077_v5 = vadd.f32 1.0, %v3305_v22 }
0x1f7b   :  { %2117 = vperm.xlu1 %3212, %v2880_v20   ;;  %3306 = vrcp.f32 %v2077_v5 }
0x1f7f   :  { %2111 = vrot.lane.b32.xlu1 %v1976_v1, %s3545_s19 }
0x1f88   :  { %v3307_v23 = vpop.eup %3306 }
0x1f89   :  { %v2081_v27 = vmul.f32 %v3307_v23, %v1979_v26 }
0x1fe9   :  { %v2084_v24 = vpop.permute.xlu1 %2083 }
0x1fea   :  { %v2086_v25 = vmul.f32 %v3307_v23, %v2084_v24  ;;  %v2891_v24 = vld [vmem:[#allocation8 + $0xd] ss:$0 sm:$0xff] }
0x1fec   :  { %2088 = vrot.lane.b32.xlu0 %v2086_v25, %s3546_s6 }
0x1ff6   :  { %v2118_v35 = vpop.permute.xlu1 %2117 }
0x1ffa   :  { %v2112_v38 = vpop.permute.xlu1 %2111 }
0x205e   :  { %v2089_v29 = vpop.permute.xlu0 %2088 }
0x205f   :  { %v2091_v30 = vadd.f32 %v2089_v29, %v2081_v27 }
0x2061   :  { %v2097_v32 = vmul.f32 %v2878_v28, %v2091_v30  ;;  %v2126_v61 = vsub.f32 %v2091_v30, %v1979_v26 }
0x2063   :  { %v2103_v33 = vadd.f32 %v2879_v31, %v2097_v32  ;;  %v2127_v62 = vmul.f32 %v2126_v61, %v2118_v35 }
0x2065   :  { %3308 = vtanh.f32 %v2103_v33  ;;  %v2128_v63 = vadd.f32 %v2127_v62, %v1979_v26  ;;  %v2892_v26 = vld [vmem:[#allocation9 + $0xd] ss:$0 sm:$0xff] }
0x2072   :  { %v3309_v34 = vpop.eup %3308 }
0x2073   :  { %2106 = vrot.lane.b32.xlu0 %v3309_v34, %s3545_s19 }
0x20e5   :  { %v2107_v36 = vpop.permute.xlu0 %2106 }
0x20e6   :  { %v2109_v37 = vmul.f32 %v3307_v23, %v2107_v36  ;;  %v2279_v23 = vld [vmem:[#allocation2 + $0xa] sm:$0x3] }
0x20e8   :  { %v2114_v39 = vsub.f32 %v2109_v37, %v2112_v38  ;;  %v2894_v38 = vld [vmem:[#allocation11 + $0xd] ss:$0 sm:$0xff] }
0x20ea   :  { %v2120_v40 = vmul.f32 %v2118_v35, %v2114_v39 }
0x20ec   :  { %2122 = vrot.lane.b32.xlu0 %v2120_v40, %s3545_s19 }
0x215e   :  { %v2123_v41 = vpop.permute.xlu0 %2122 }
0x215f   :  { %v2125_v42 = vadd.f32 %v2123_v41, %v1976_v1  ;;  %v2895_v41 = vld [vmem:[#allocation12 + $0xd] ss:$0 sm:$0xff] }
0x2161   :  { %2129 = vst.msk [vmem:[#allocation14 + $0x6] sm:$0x3] %vm368_vm3, %v2125_v42  ;;  %3159 = vmatmul.mubr.msk.f32.vlgmr.msra.gmra.mxu0 %vm220_vm2, %v2125_v42 }
0x2162   :  { %3173 = vmatpush3.msra.mxu0 %v3889_v8  ;;  %3180 = vmatprep.mubr.msk.f32.mxu0 %vm3543_vm0, %v3542_v0 }
0x2163   :  { %3174 = vmatprep.subr.mxu0 %v3542_v0 }
0x2164   :  { %3175 = vmatpush3.msra.mxu0 %v3891_v9 }
0x2165   :  { %3176 = vmatprep.subr.mxu0 %v3542_v0 }
0x2166   :  { %3177 = vmatpush3.msra.mxu0 %v3896_v11 }
0x2167   :  { %3178 = vmatprep.subr.mxu0 %v3542_v0 }
0x2168   :  { %3179 = vmatpush3.msra.mxu0 %v3901_v12 }
0x2221   :  { %v2200_v46 = vpop.f32.mrf.mxu0 }
0x2222   :  { %v2215_v48 = vmul.f32 %v2883_v45, %v2200_v46 }
0x2223   :  { %v3160_v50 = vpop.f32.mrf.mxu0 }
0x2224   :  { %v2216_v51 = vadd.f32 %v2215_v48, %v2209_v47 }
0x2226   :  { %v2222_v52 = vadd.f32 %v2884_v49, %v2216_v51 }
0x2228   :  { %3310 = vtanh.f32 %v2222_v52  ;;  %v2885_v55 = vmul.f32 -1.442695, %v2222_v52 }
0x222a   :  { %3312 = vpow2.f32 %v2885_v55  ;;  %v2899_v55 = vld [vmem:[#allocation8 + $0xe] ss:$0 sm:$0xff] }
0x2235   :  { %v3311_v53 = vpop.eup %3310 }
0x2236   :  { %2232 = vrot.lane.b32.xlu1 %v3311_v53, %s3545_s19  ;;  %v2428_v53 = vld [vmem:[#allocation2 + $0xc] sm:$0x3] }
0x2237   :  { %v3313_v56 = vpop.eup %3312 }
0x2238   :  { %v2226_v57 = vadd.f32 1.0, %v3313_v56 }
0x223a   :  { %2266 = vperm.xlu1 %3212, %v2888_v54   ;;  %3314 = vrcp.f32 %v2226_v57  ;;  %v2898_v54 = vld [vmem:[%s4119_s4 + $0xe] ss:$0 sm:$0xff] }
0x223b   :  { %v2507_v57 = vmul.f32 %v2898_v54, %v2428_v53 }
0x223e   :  { %2260 = vrot.lane.b32.xlu1 %v2125_v42, %s3545_s19 }
0x2247   :  { %v3315_v58 = vpop.eup %3314 }
0x2248   :  { %v2230_v1 = vmul.f32 %v3315_v58, %v2128_v63 }
0x22a8   :  { %v2233_v59 = vpop.permute.xlu1 %2232 }
0x22a9   :  { %v2235_v60 = vmul.f32 %v3315_v58, %v2233_v59  ;;  %v2900_v59 = vld [vmem:[#allocation9 + $0xe] ss:$0 sm:$0xff] }
0x22ab   :  { %2237 = vrot.lane.b32.xlu0 %v2235_v60, %s3546_s6 }
0x22b5   :  { %v2267_v17 = vpop.permute.xlu1 %2266 }
0x22b9   :  { %v2261_v19 = vpop.permute.xlu1 %2260 }
0x231d   :  { %v2238_v3 = vpop.permute.xlu0 %2237 }
0x231e   :  { %v2240_v10 = vadd.f32 %v2238_v3, %v2230_v1  ;;  %v2904_v1 = vld [vmem:[%s4124_s9 + $0xc] sm:$0x3] }
0x2320   :  { %v2246_v14 = vmul.f32 %v2886_v2, %v2240_v10  ;;  %v2275_v34 = vsub.f32 %v2240_v10, %v2128_v63 }
0x2322   :  { %v2252_v15 = vadd.f32 %v2887_v13, %v2246_v14  ;;  %v2276_v35 = vmul.f32 %v2275_v34, %v2267_v17 }
0x2324   :  { %3316 = vtanh.f32 %v2252_v15  ;;  %v2277_v36 = vadd.f32 %v2276_v35, %v2128_v63 }
0x2331   :  { %v3317_v16 = vpop.eup %3316 }
0x2332   :  { %2255 = vrot.lane.b32.xlu0 %v3317_v16, %s3545_s19 }
0x23a4   :  { %v2256_v18 = vpop.permute.xlu0 %2255 }
0x23a5   :  { %v2258_v4 = vmul.f32 %v3315_v58, %v2256_v18 }
0x23a7   :  { %v2263_v20 = vsub.f32 %v2258_v4, %v2261_v19  ;;  %v2902_v19 = vld [vmem:[#allocation11 + $0xe] ss:$0 sm:$0xff] }
0x23a9   :  { %v2269_v21 = vmul.f32 %v2267_v17, %v2263_v20 }
0x23ab   :  { %2271 = vrot.lane.b32.xlu0 %v2269_v21, %s3545_s19 }
0x241d   :  { %v2272_v22 = vpop.permute.xlu0 %2271 }
0x241e   :  { %v2274_v5 = vadd.f32 %v2272_v22, %v2125_v42  ;;  %v2903_v22 = vld [vmem:[#allocation12 + $0xe] ss:$0 sm:$0xff] }
0x2420   :  { %2278 = vst.msk [vmem:[#allocation14 + $0x8] sm:$0x3] %vm368_vm3, %v2274_v5  ;;  %3170 = vmatmul.mubr.msk.f32.vlgmr.msra.gmra.mxu1 %vm220_vm2, %v2274_v5 }
0x2421   :  { %3184 = vmatpush3.msra.mxu1 %v3889_v8  ;;  %3191 = vmatprep.mubr.msk.f32.mxu1 %vm3543_vm0, %v3542_v0  ;;  %v2890_v8 = vld [vmem:[%s4119_s4 + $0xd] ss:$0 sm:$0xff] }
0x2422   :  { %3185 = vmatprep.subr.mxu1 %v3542_v0  ;;  %v2358_v6 = vmul.f32 %v2890_v8, %v2279_v23 }
0x2423   :  { %3186 = vmatpush3.msra.mxu1 %v3891_v9 }
0x2424   :  { %3187 = vmatprep.subr.mxu1 %v3542_v0 }
0x2425   :  { %3188 = vmatpush3.msra.mxu1 %v3896_v11 }
0x2426   :  { %3189 = vmatprep.subr.mxu1 %v3542_v0  ;;  %v2896_v0 = vld [vmem:[%s4124_s9 + $0xa] sm:$0x3] }
0x2427   :  { %3190 = vmatpush3.msra.mxu1 %v3901_v12 }
0x24e0   :  { %v2349_v25 = vpop.f32.mrf.mxu1 }
0x24e1   :  { %v2364_v7 = vmul.f32 %v2891_v24, %v2349_v25 }
0x24e2   :  { %v3171_v27 = vpop.f32.mrf.mxu1 }
0x24e3   :  { %v2365_v9 = vadd.f32 %v2364_v7, %v2358_v6 }
0x24e5   :  { %v2371_v28 = vadd.f32 %v2892_v26, %v2365_v9 }
0x24e7   :  { %3318 = vtanh.f32 %v2371_v28  ;;  %v2893_v11 = vmul.f32 -1.442695, %v2371_v28 }
0x24e9   :  { %3320 = vpow2.f32 %v2893_v11  ;;  %v2907_v11 = vld [vmem:[#allocation8 + $0xf] ss:$0 sm:$0xff] }
0x24f4   :  { %v3319_v29 = vpop.eup %3318 }
0x24f5   :  { %2381 = vrot.lane.b32.xlu1 %v3319_v29, %s3545_s19  ;;  %v2577_v29 = vld [vmem:[#allocation2 + $0xe] sm:$0x3] }
0x24f6   :  { %v3321_v12 = vpop.eup %3320 }
0x24f7   :  { %v2375_v30 = vadd.f32 1.0, %v3321_v12 }
0x24f9   :  { %2415 = vperm.xlu1 %3212, %v2896_v0   ;;  %3322 = vrcp.f32 %v2375_v30  ;;  %v2906_v0 = vld [vmem:[%s4119_s4 + $0xf] ss:$0 sm:$0xff]  ;;  %s3547_s4 = smov [#allocation15]  }
0x24fa   :  { %v2656_v30 = vmul.f32 %v2906_v0, %v2577_v29 }
0x24fd   :  { %2409 = vrot.lane.b32.xlu1 %v2274_v5, %s3545_s19 }
0x2506   :  { %v3323_v31 = vpop.eup %3322 }
0x2507   :  { %v2379_v37 = vmul.f32 %v3323_v31, %v2277_v36 }
0x2567   :  { %v2382_v32 = vpop.permute.xlu1 %2381 }
0x2568   :  { %v2384_v33 = vmul.f32 %v3323_v31, %v2382_v32  ;;  %v2908_v32 = vld [vmem:[#allocation9 + $0xf] ss:$0 sm:$0xff] }
0x256a   :  { %2386 = vrot.lane.b32.xlu0 %v2384_v33, %s3546_s6 }
0x2574   :  { %v2416_v45 = vpop.permute.xlu1 %2415 }
0x2578   :  { %v2410_v48 = vpop.permute.xlu1 %2409 }
0x25dc   :  { %v2387_v39 = vpop.permute.xlu0 %2386 }
0x25dd   :  { %v2389_v40 = vadd.f32 %v2387_v39, %v2379_v37  ;;  %v2912_v37 = vld [vmem:[%s4124_s9 + $0xe] sm:$0x3]  ;;  %s2747_s9 = sshll.u32 %s3547_s4, 4  ;;  %s2748_s9 = int_to_ptr.vmem [resolvable:$true] %s2747_s9 }
0x25de   :  { %s3462_s28 = scalar_lea.vmem %s2748_s9, 64  ;;  %p3467_p3 = scmp.lt.s32.totalorder %s2748_s9, %s2748_s9 }
0x25df   :  { %v2395_v42 = vmul.f32 %v2894_v38, %v2389_v40  ;;  %v2424_v16 = vsub.f32 %v2389_v40, %v2277_v36  ;;  %p3463_p2 = scmp.ne.s32.totalorder %s2748_s9, %s3462_s28  ;;  %p3468_p4 = scmp.lt.s32.totalorder %s3462_s28, %s3462_s28 }
0x25e1   :  { %v2401_v43 = vadd.f32 %v2895_v41, %v2395_v42  ;;  %v2425_v17 = vmul.f32 %v2424_v16, %v2416_v45  ;;  %p3469_p5 = por %p3468_p4, %p3467_p3 }
0x25e3   :  { %3324 = vtanh.f32 %v2401_v43  ;;  %v2426_v18 = vadd.f32 %v2425_v17, %v2277_v36  ;;  %p3470_p6 = pnand %p3469_p5, %p3463_p2 }
0x25f0   :  { %v3325_v44 = vpop.eup %3324 }
0x25f1   :  { %2404 = vrot.lane.b32.xlu0 %v3325_v44, %s3545_s19 }
0x2663   :  { %v2405_v46 = vpop.permute.xlu0 %2404 }
0x2664   :  { %v2407_v47 = vmul.f32 %v3323_v31, %v2405_v46 }
0x2666   :  { %v2412_v49 = vsub.f32 %v2407_v47, %v2410_v48  ;;  %v2910_v48 = vld [vmem:[#allocation11 + $0xf] ss:$0 sm:$0xff] }
0x2668   :  { %v2418_v50 = vmul.f32 %v2416_v45, %v2412_v49 }
0x266a   :  { %2420 = vrot.lane.b32.xlu0 %v2418_v50, %s3545_s19 }
0x26dc   :  { %v2421_v51 = vpop.permute.xlu0 %2420 }
0x26dd   :  { %v2423_v52 = vadd.f32 %v2421_v51, %v2274_v5  ;;  %v2911_v51 = vld [vmem:[#allocation12 + $0xf] ss:$0 sm:$0xff] }
0x26df   :  { %2427 = vst.msk [vmem:[#allocation14 + $0xa] sm:$0x3] %vm368_vm3, %v2423_v52  ;;  %3181 = vmatmul.mubr.msk.f32.vlgmr.msra.gmra.mxu0 %vm220_vm2, %v2423_v52 }
0x279f   :  { %v2498_v56 = vpop.f32.mrf.mxu0 }
0x27a0   :  { %v2513_v58 = vmul.f32 %v2899_v55, %v2498_v56 }
0x27a1   :  { %v3182_v60 = vpop.f32.mrf.mxu0 }
0x27a2   :  { %v2514_v61 = vadd.f32 %v2513_v58, %v2507_v57 }
0x27a4   :  { %v2520_v62 = vadd.f32 %v2900_v59, %v2514_v61 }
0x27a6   :  { %3326 = vtanh.f32 %v2520_v62  ;;  %v2901_v2 = vmul.f32 -1.442695, %v2520_v62 }
0x27a8   :  { %3328 = vpow2.f32 %v2901_v2 }
0x27b3   :  { %v3327_v63 = vpop.eup %3326 }
0x27b4   :  { %2530 = vrot.lane.b32.xlu1 %v3327_v63, %s3545_s19 }
0x27b5   :  { %v3329_v3 = vpop.eup %3328 }
0x27b6   :  { %v2524_v10 = vadd.f32 1.0, %v3329_v3 }
0x27b8   :  { %2564 = vperm.xlu1 %3212, %v2904_v1   ;;  %3330 = vrcp.f32 %v2524_v10 }
0x27bc   :  { %2558 = vrot.lane.b32.xlu1 %v2423_v52, %s3545_s19 }
0x27c5   :  { %v3331_v13 = vpop.eup %3330 }
0x27c6   :  { %v2528_v4 = vmul.f32 %v3331_v13, %v2426_v18 }
0x2826   :  { %v2531_v14 = vpop.permute.xlu1 %2530 }
0x2827   :  { %v2533_v15 = vmul.f32 %v3331_v13, %v2531_v14 }
0x2829   :  { %2535 = vrot.lane.b32.xlu0 %v2533_v15, %s3546_s6 }
0x2833   :  { %v2565_v24 = vpop.permute.xlu1 %2564 }
0x2837   :  { %v2559_v7 = vpop.permute.xlu1 %2558 }
0x289b   :  { %v2536_v20 = vpop.permute.xlu0 %2535 }
0x289c   :  { %v2538_v21 = vadd.f32 %v2536_v20, %v2528_v4 }
0x289e   :  { %v2544_v5 = vmul.f32 %v2902_v19, %v2538_v21  ;;  %v2573_v44 = vsub.f32 %v2538_v21, %v2426_v18 }
0x28a0   :  { %v2550_v23 = vadd.f32 %v2903_v22, %v2544_v5  ;;  %v2574_v45 = vmul.f32 %v2573_v44, %v2565_v24 }
0x28a2   :  { %3332 = vtanh.f32 %v2550_v23  ;;  %v2575_v46 = vadd.f32 %v2574_v45, %v2426_v18 }
0x28af   :  { %v3333_v8 = vpop.eup %3332 }
0x28b0   :  { %2553 = vrot.lane.b32.xlu0 %v3333_v8, %s3545_s19 }
0x2922   :  { %v2554_v25 = vpop.permute.xlu0 %2553 }
0x2923   :  { %v2556_v6 = vmul.f32 %v3331_v13, %v2554_v25 }
0x2925   :  { %v2561_v26 = vsub.f32 %v2556_v6, %v2559_v7 }
0x2927   :  { %v2567_v27 = vmul.f32 %v2565_v24, %v2561_v26 }
0x2929   :  { %2569 = vrot.lane.b32.xlu0 %v2567_v27, %s3545_s19 }
0x299b   :  { %v2570_v9 = vpop.permute.xlu0 %2569 }
0x299c   :  { %v2572_v28 = vadd.f32 %v2570_v9, %v2423_v52 }
0x299e   :  { %2576 = vst.msk [vmem:[#allocation14 + $0xc] sm:$0x3] %vm368_vm3, %v2572_v28  ;;  %3192 = vmatmul.mubr.msk.f32.vlgmr.msra.gmra.mxu1 %vm220_vm2, %v2572_v28 }
0x2a5e   :  { %v2647_v12 = vpop.f32.mrf.mxu1 }
0x2a5f   :  { %v2662_v31 = vmul.f32 %v2907_v11, %v2647_v12 }
0x2a60   :  { %v3193_v33 = vpop.f32.mrf.mxu1 }
0x2a61   :  { %v2663_v34 = vadd.f32 %v2662_v31, %v2656_v30 }
0x2a63   :  { %v2669_v35 = vadd.f32 %v2908_v32, %v2663_v34 }
0x2a65   :  { %3334 = vtanh.f32 %v2669_v35  ;;  %v2909_v38 = vmul.f32 -1.442695, %v2669_v35 }
0x2a67   :  { %3336 = vpow2.f32 %v2909_v38 }
0x2a72   :  { %v3335_v36 = vpop.eup %3334 }
0x2a73   :  { %2679 = vrot.lane.b32.xlu1 %v3335_v36, %s3545_s19 }
0x2a74   :  { %v3337_v39 = vpop.eup %3336 }
0x2a75   :  { %v2673_v40 = vadd.f32 1.0, %v3337_v39 }
0x2a77   :  { %2713 = vperm.xlu1 %3212, %v2912_v37   ;;  %3338 = vrcp.f32 %v2673_v40 }
0x2a7b   :  { %2707 = vrot.lane.b32.xlu1 %v2572_v28, %s3545_s19 }
0x2a84   :  { %v3339_v41 = vpop.eup %3338 }
0x2a85   :  { %v2677_v47 = vmul.f32 %v3339_v41, %v2575_v46 }
0x2ae5   :  { %v2680_v42 = vpop.permute.xlu1 %2679 }
0x2ae6   :  { %v2682_v43 = vmul.f32 %v3339_v41, %v2680_v42 }
0x2ae8   :  { %2684 = vrot.lane.b32.xlu0 %v2682_v43, %s3546_s6  ;;  %s3548_s6 = smov [#allocation14]  }
0x2ae9   :  { %s2735_s8 = sshll.u32 %s3548_s6, 4  ;;  %s2736_s8 = int_to_ptr.vmem [resolvable:$true] %s2735_s8 }
0x2af2   :  { %v2714_v54 = vpop.permute.xlu1 %2713 }
0x2af6   :  { %v2708_v61 = vpop.permute.xlu1 %2707 }
0x2b5a   :  { %v2685_v49 = vpop.permute.xlu0 %2684 }
0x2b5b   :  { %v2687_v50 = vadd.f32 %v2685_v49, %v2677_v47 }
0x2b5d   :  { %v2693_v52 = vmul.f32 %v2910_v48, %v2687_v50  ;;  %v2722_v53 = vsub.f32 %v2687_v50, %v2575_v46 }
0x2b5f   :  { %v2699_v55 = vadd.f32 %v2911_v51, %v2693_v52  ;;  %v2723_v56 = vmul.f32 %v2722_v53, %v2714_v54 }
0x2b61   :  { %3340 = vtanh.f32 %v2699_v55  ;;  %v2724_v57 = vadd.f32 %v2723_v56, %v2575_v46 }
0x2b63   :  { %2729 = vst.msk [vmem:[#allocation17 + $0x2] sm:$0x3] %vm368_vm3, %v2724_v57 }
0x2b6e   :  { %v3341_v58 = vpop.eup %3340 }
0x2b6f   :  { %2702 = vrot.lane.b32.xlu0 %v3341_v58, %s3545_s19 }
0x2be1   :  { %v2703_v59 = vpop.permute.xlu0 %2702 }
0x2be2   :  { %v2705_v60 = vmul.f32 %v3339_v41, %v2703_v59 }
0x2be4   :  { %v2710_v62 = vsub.f32 %v2705_v60, %v2708_v61 }
0x2be6   :  { %v2716_v63 = vmul.f32 %v2714_v54, %v2710_v62 }
0x2be8   :  { %2718 = vrot.lane.b32.xlu0 %v2716_v63, %s3545_s19 }
0x2c5a   :  { %v2719_v1 = vpop.permute.xlu0 %2718 }
0x2c5b   :  { %v2721_v2 = vadd.f32 %v2719_v1, %v2572_v28 }
0x2c5d   :  { %2725 = vst.msk [vmem:[#allocation14 + $0xe] sm:$0x3] %vm368_vm3, %v2721_v2  ;;  %2727 = vst.msk [vmem:[#allocation15 + $0x2] sm:$0x3] %vm368_vm3, %v2721_v2 }
0x2c5e   :  { %3473 = shalt.err (!%p3470_p6)
}
0x2c5f   :  { %s3550_s19 = smov 32   ;;  %s3551_s29 = smov 2  }
0x2c60   :  { %2753 = dma.vmem_to_hbm [thread:$0]  %s2748_s9, 64, %s4128_s13, [#allocation16], %s3550_s19, %s3550_s19, %s3551_s29  }
0x2c61   :  { %s3482_s18 = scalar_lea.vmem %s2736_s8, 256  ;;  %p3487_p8 = scmp.lt.s32.totalorder %s2736_s8, %s2736_s8 }
0x2c62   :  { %p3483_p7 = scmp.ne.s32.totalorder %s2736_s8, %s3482_s18  ;;  %p3488_p9 = scmp.lt.s32.totalorder %s3482_s18, %s3482_s18 }
0x2c64   :  { %p3489_p10 = por %p3488_p9, %p3487_p8 }
0x2c66   :  { %p3490_p11 = pnand %p3489_p10, %p3483_p7 }
0x2c68   :  { %3493 = shalt.err (!%p3490_p11)
}
0x2c69   :  { %2741 = dma.vmem_to_hbm [thread:$0]  %s2736_s8, 256, %s4127_s12, [#allocation5], %s3535_s16, %s3535_s16, %s3536_s17  }
0x2c6a   :  { %s3502_s10 = scalar_lea.vmem %s4096_s0, 64  ;;  %p3507_p13 = scmp.lt.s32.totalorder %s4096_s0, %s4096_s0 }
0x2c6b   :  { %p3503_p12 = scmp.ne.s32.totalorder %s4096_s0, %s3502_s10  ;;  %p3508_p0 = scmp.lt.s32.totalorder %s3502_s10, %s3502_s10 }
0x2c6d   :  { %p3509_p1 = por %p3508_p0, %p3507_p13 }
0x2c6f   :  { %p3510_p2 = pnand %p3509_p1, %p3503_p12 }
0x2c71   :  { %3513 = shalt.err (!%p3510_p2)
}
0x2c72   :  { %2765 = dma.vmem_to_hbm [thread:$0]  %s4096_s0, 64, %s4129_s14, [#allocation16], %s3550_s19, %s3550_s19, %s3551_s29  }
0x2c73   :  { %3530 = dma.done.wait [#allocation5], 256  }
0x2c74   :  { %3531 = vsyncadd [#allocation5], 4294967040 }
0x2c75   :  { %3532 = dma.done.wait [#allocation16], 128  }
0x2c76   :  { %3533 = vsyncadd [#allocation16], 4294967168 }
0x2c77   :  { %2775 = vsyncpa [#allocation4], 1 }
0x2c78   :  { %2776 = vsyncpa [#allocation7], 1 }
0x2c79   :  { %2777 = vsyncpa [#allocation10], 1 }
0x2c7a   :  { %2778 = vsyncpa [#allocation13], 1 }
0x2c7b   :  { %2779 = vsyncpa [#allocation5], 1 }
0x2c7c   :  { %2780 = vsyncpa [#allocation16], 1 }

</bundles_post_ra>
